<compile_context>
chip_gen: v7x
topology: tpu7x:2x2x1
jax: 0.10.0
libtpu: 0.0.40
codegen_flags: <defaults>
</compile_context>

<pallas_src>
import functools

import jax
import jax.numpy as jnp
from jax.experimental import pallas as pl
from jax.experimental.pallas import tpu as pltpu

GAMMA = 1.5
ALPHA = 0.25
_LANE = 128
_SUBLANE = 8


def _round_up(x, m):
    return ((x + m - 1) // m) * m


def _focal_loss_kernel(pred_ref, label_ref, part_ref, *,
                       n_rows, n_cols, gamma, alpha, mask_rows, mask_cols):
    i = pl.program_id(0)

    x = pred_ref[...].astype(jnp.float32)
    y = label_ref[...].astype(jnp.float32)
    tm, cpad = x.shape

    # One shared transcendental: e = exp(-|x|) feeds both the numerically
    # stable BCE-with-logits and the sigmoid.
    e = jnp.exp(-jnp.abs(x))
    bce = jnp.maximum(x, 0.0) - x * y + jnp.log1p(e)

    # sigmoid(x) = 1/(1+e) for x >= 0, e/(1+e) for x < 0.
    # Approx EUP reciprocal (free slot) + one Newton step to recover ~f32
    # precision without a full-precision divide.
    d = 1.0 + e
    r0 = pl.reciprocal(d, approx=True)
    r = r0 * (2.0 - d * r0)
    p = jnp.where(x >= 0.0, r, e * r)

    p_t = y * p + (1.0 - y) * (1.0 - p)
    t = 1.0 - p_t
    if gamma == 1.5:
        mod = t * jnp.sqrt(t)          # t**1.5 without exp/log round trip
    else:
        mod = t ** gamma               # generic gamma fallback
    loss = bce * mod
    if alpha > 0:
        loss = loss * (y * alpha + (1.0 - y) * (1.0 - alpha))

    # Zero out padded rows / class columns (cheap VPU ops, only emitted when
    # padding actually exists).
    if mask_rows:
        rows = jax.lax.broadcasted_iota(jnp.int32, (tm, cpad), 0) + i * tm
        loss = jnp.where(rows < n_rows, loss, 0.0)
    if mask_cols:
        cols = jax.lax.broadcasted_iota(jnp.int32, (tm, cpad), 1)
        loss = jnp.where(cols < n_cols, loss, 0.0)

    # Per-step lane-dense partial sum: fold the row tile into sublane groups
    # of 8 with pure VPU adds.  The cross-lane reduce + single /C happens in
    # the (tiny) JAX wrapper, which also lets the grid axis be "parallel".
    part_ref[...] = jnp.sum(loss.reshape(tm // _SUBLANE, _SUBLANE, cpad), axis=0)


def focal_loss(pred, label, gamma=GAMMA, alpha=ALPHA, tm=None,
               cast_label_bf16=False, vmem_budget_bytes=16 * 1024 * 1024):
    """pred, label: (N, C) arrays. Returns scalar focal loss (= loss.mean(1).sum())."""
    assert pred.ndim == 2 and pred.shape == label.shape
    N, C = pred.shape
    C_pad = _round_up(C, _LANE)

    if tm is None:
        # 2 inputs x 2 pipeline buffers x (tm, C_pad) f32 kept under the VMEM
        # budget (safe on v7x's 32 MiB scoped default), capped at 2048 rows and
        # clamped to the (sublane-padded) problem size.
        tm = vmem_budget_bytes // (16 * C_pad)
        tm = min(2048, tm, _round_up(N, _SUBLANE))
    tm = max(_SUBLANE, (tm // _SUBLANE) * _SUBLANE)

    N_pad = _round_up(N, tm)
    grid = N_pad // tm

    pred32 = pred.astype(jnp.float32)
    # Optional bandwidth saver: 0/1 (or soft) labels survive bf16; upcast in-kernel.
    lbl = label.astype(jnp.bfloat16) if cast_label_bf16 else label.astype(jnp.float32)

    if (N_pad, C_pad) != (N, C):
        pred32 = jnp.pad(pred32, ((0, N_pad - N), (0, C_pad - C)))
        lbl = jnp.pad(lbl, ((0, N_pad - N), (0, C_pad - C)))

    kernel = functools.partial(
        _focal_loss_kernel,
        n_rows=N, n_cols=C, gamma=gamma, alpha=alpha,
        mask_rows=(N_pad != N), mask_cols=(C_pad != C))

    partials = pl.pallas_call(
        kernel,
        out_shape=jax.ShapeDtypeStruct((grid * _SUBLANE, C_pad), jnp.float32),
        grid_spec=pltpu.PrefetchScalarGridSpec(
            num_scalar_prefetch=0,
            grid=(grid,),
            in_specs=[
                pl.BlockSpec((tm, C_pad), lambda i: (i, 0)),
                pl.BlockSpec((tm, C_pad), lambda i: (i, 0)),
            ],
            out_specs=pl.BlockSpec((_SUBLANE, C_pad), lambda i: (i, 0)),
        ),
        compiler_params=pltpu.CompilerParams(
            dimension_semantics=("parallel",)),
    )(pred32, lbl)

    # loss.mean(1).sum() == sum(all elements) / C ; padded rows/cols are zero.
    return jnp.sum(partials) / C


def focal_loss_ref(pred, label, gamma=GAMMA, alpha=ALPHA):
    """Pure-JAX reference mirroring the PyTorch module exactly."""
    bce = jnp.maximum(pred, 0.0) - pred * label + jnp.log1p(jnp.exp(-jnp.abs(pred)))
    p = jax.nn.sigmoid(pred)
    p_t = label * p + (1.0 - label) * (1.0 - p)
    loss = bce * (1.0 - p_t) ** gamma
    if alpha > 0:
        loss = loss * (label * alpha + (1.0 - label) * (1.0 - alpha))
    return loss.mean(1).sum()


if __name__ == "__main__":
    key = jax.random.PRNGKey(0)
    k1, k2, k3, k4 = jax.random.split(key, 4)

    # Test 1: non-aligned shapes (row padding + class-lane padding), hard labels.
    N1, C1 = 300, 80
    pred1 = jax.random.normal(k1, (N1, C1), dtype=jnp.float32) * 2.0
    label1 = jax.random.bernoulli(k2, p=0.3, shape=(N1, C1)).astype(jnp.float32)
    out1 = jax.block_until_ready(focal_loss(pred1, label1))
    ref1 = focal_loss_ref(pred1, label1)
    assert jnp.allclose(out1, ref1, rtol=2e-3, atol=1e-4), (out1, ref1)

    # Test 2: multi-tile grid (explicit tm=512, last tile row-masked), soft labels.
    N2, C2 = 1100, 128
    pred2 = jax.random.normal(k3, (N2, C2), dtype=jnp.float32) * 2.0
    label2 = jax.random.uniform(k4, (N2, C2), dtype=jnp.float32)
    out2 = jax.block_until_ready(focal_loss(pred2, label2, tm=512))
    ref2 = focal_loss_ref(pred2, label2)
    assert jnp.allclose(out2, ref2, rtol=2e-3, atol=1e-4), (out2, ref2)

    print("KERNEL_OK")
</pallas_src>

<mosaic_0001>
module attributes {stable_mosaic.version = 11 : i64} {
  func.func @_focal_loss_kernel(%arg0: i32, %arg1: memref<304x128xf32, #tpu.memory_space<vmem>>, %arg2: memref<304x128xf32, #tpu.memory_space<vmem>>, %arg3: memref<8x128xf32, #tpu.memory_space<vmem>>) attributes {dimension_semantics = [#tpu.dimension_semantics<parallel>], iteration_bounds = array<i64: 1>, scalar_prefetch = 0 : i64, scratch_operands = 0 : i64, tpu.core_type = #tpu.core_type<tc>, window_params = [{transform_indices = @transform_0, window_bounds = array<i64: 304, 128>}, {transform_indices = @transform_1, window_bounds = array<i64: 304, 128>}, {transform_indices = @transform_2, window_bounds = array<i64: 8, 128>}]} {
    %c0 = arith.constant 0 : index
    %c0_0 = arith.constant 0 : index
    %0 = vector.load %arg1[%c0, %c0_0] : memref<304x128xf32, #tpu.memory_space<vmem>>, vector<304x128xf32>
    %c0_1 = arith.constant 0 : index
    %c0_2 = arith.constant 0 : index
    %1 = vector.load %arg2[%c0_1, %c0_2] : memref<304x128xf32, #tpu.memory_space<vmem>>, vector<304x128xf32>
    %2 = math.absf %0 : vector<304x128xf32>
    %cst = arith.constant 0.000000e+00 : f32
    %3 = vector.broadcast %cst : f32 to vector<304x128xf32>
    %4 = arith.subf %3, %2 : vector<304x128xf32>
    %5 = math.exp %4 : vector<304x128xf32>
    %cst_3 = arith.constant 0.000000e+00 : f32
    %6 = vector.broadcast %cst_3 : f32 to vector<304x128xf32>
    %7 = arith.maximumf %0, %6 : vector<304x128xf32>
    %8 = arith.mulf %0, %1 : vector<304x128xf32>
    %9 = arith.subf %7, %8 : vector<304x128xf32>
    %10 = math.log1p %5 : vector<304x128xf32>
    %11 = arith.addf %9, %10 : vector<304x128xf32>
    %cst_4 = arith.constant 1.000000e+00 : f32
    %12 = vector.broadcast %cst_4 : f32 to vector<304x128xf32>
    %13 = arith.addf %12, %5 : vector<304x128xf32>
    %14 = tpu.reciprocal %13 {approx = true} : vector<304x128xf32> -> vector<304x128xf32>
    %15 = arith.mulf %13, %14 : vector<304x128xf32>
    %cst_5 = arith.constant 2.000000e+00 : f32
    %16 = vector.broadcast %cst_5 : f32 to vector<304x128xf32>
    %17 = arith.subf %16, %15 : vector<304x128xf32>
    %18 = arith.mulf %14, %17 : vector<304x128xf32>
    %cst_6 = arith.constant 0.000000e+00 : f32
    %19 = vector.broadcast %cst_6 : f32 to vector<304x128xf32>
    %20 = arith.cmpf oge, %0, %19 : vector<304x128xf32>
    %21 = arith.mulf %5, %18 : vector<304x128xf32>
    %22 = arith.select %20, %18, %21 : vector<304x128xi1>, vector<304x128xf32>
    %23 = arith.mulf %1, %22 : vector<304x128xf32>
    %cst_7 = arith.constant 1.000000e+00 : f32
    %24 = vector.broadcast %cst_7 : f32 to vector<304x128xf32>
    %25 = arith.subf %24, %1 : vector<304x128xf32>
    %cst_8 = arith.constant 1.000000e+00 : f32
    %26 = vector.broadcast %cst_8 : f32 to vector<304x128xf32>
    %27 = arith.subf %26, %22 : vector<304x128xf32>
    %28 = arith.mulf %25, %27 : vector<304x128xf32>
    %29 = arith.addf %23, %28 : vector<304x128xf32>
    %cst_9 = arith.constant 1.000000e+00 : f32
    %30 = vector.broadcast %cst_9 : f32 to vector<304x128xf32>
    %31 = arith.subf %30, %29 : vector<304x128xf32>
    %32 = math.sqrt %31 : vector<304x128xf32>
    %33 = arith.mulf %31, %32 : vector<304x128xf32>
    %34 = arith.mulf %11, %33 : vector<304x128xf32>
    %cst_10 = arith.constant 2.500000e-01 : f32
    %35 = vector.broadcast %cst_10 : f32 to vector<304x128xf32>
    %36 = arith.mulf %1, %35 : vector<304x128xf32>
    %cst_11 = arith.constant 1.000000e+00 : f32
    %37 = vector.broadcast %cst_11 : f32 to vector<304x128xf32>
    %38 = arith.subf %37, %1 : vector<304x128xf32>
    %cst_12 = arith.constant 7.500000e-01 : f32
    %39 = vector.broadcast %cst_12 : f32 to vector<304x128xf32>
    %40 = arith.mulf %38, %39 : vector<304x128xf32>
    %41 = arith.addf %36, %40 : vector<304x128xf32>
    %42 = arith.mulf %34, %41 : vector<304x128xf32>
    %43 = tpu.iota {dimensions = array<i32: 0>} : vector<304x128xi32>
    %c304_i32 = arith.constant 304 : i32
    %44 = arith.muli %arg0, %c304_i32 : i32
    %45 = vector.broadcast %44 : i32 to vector<304x128xi32>
    %46 = arith.addi %43, %45 : vector<304x128xi32>
    %c300_i32 = arith.constant 300 : i32
    %47 = vector.broadcast %c300_i32 : i32 to vector<304x128xi32>
    %48 = arith.cmpi slt, %46, %47 : vector<304x128xi32>
    %cst_13 = arith.constant 0.000000e+00 : f32
    %49 = vector.broadcast %cst_13 : f32 to vector<304x128xf32>
    %50 = arith.select %48, %42, %49 : vector<304x128xi1>, vector<304x128xf32>
    %51 = tpu.iota {dimensions = array<i32: 1>} : vector<304x128xi32>
    %c80_i32 = arith.constant 80 : i32
    %52 = vector.broadcast %c80_i32 : i32 to vector<304x128xi32>
    %53 = arith.cmpi slt, %51, %52 : vector<304x128xi32>
    %cst_14 = arith.constant 0.000000e+00 : f32
    %54 = vector.broadcast %cst_14 : f32 to vector<304x128xf32>
    %55 = arith.select %53, %50, %54 : vector<304x128xi1>, vector<304x128xf32>
    %56 = vector.shape_cast %55 : vector<304x128xf32> to vector<38x8x128xf32>
    %cst_15 = arith.constant dense<0.000000e+00> : vector<8x128xf32>
    %57 = vector.multi_reduction <add>, %56, %cst_15 [0] : vector<38x8x128xf32> to vector<8x128xf32>
    %c0_16 = arith.constant 0 : index
    %c0_17 = arith.constant 0 : index
    %58 = vector.load %arg3[%c0_16, %c0_17] : memref<8x128xf32, #tpu.memory_space<vmem>>, vector<8x128xf32>
    tpu.vector_store %arg3[%c0_16, %c0_17], %57 {strides = array<i32>} : memref<8x128xf32, #tpu.memory_space<vmem>>, vector<8x128xf32>,
    return
  }
  func.func @transform_0(%arg0: i32) -> (i32, i32) {
    %c0_i32 = arith.constant 0 : i32
    %c0_i32_0 = arith.constant 0 : i32
    return %arg0, %c0_i32 : i32, i32
  }
  func.func @transform_1(%arg0: i32) -> (i32, i32) {
    %c0_i32 = arith.constant 0 : i32
    %c0_i32_0 = arith.constant 0 : i32
    return %arg0, %c0_i32 : i32, i32
  }
  func.func @transform_2(%arg0: i32) -> (i32, i32) {
    %c0_i32 = arith.constant 0 : i32
    %c0_i32_0 = arith.constant 0 : i32
    return %arg0, %c0_i32 : i32, i32
  }
}

</mosaic_0001>

<bundles_post_ra>
// kernel: tpu_custom_call.1
= control target key start
LH: loop header
LB: loop body
LE: loop exit
PB: predicated region body
PF: predicated region fallthrough
CT: control target
= control target key end

     0   :  { %7 = vsyncpa [#allocation3], 0  ;;  %s6223_s0 = inlined_call_operand.hbm [shape: f32[304,128], index: 0, kind: input, shape index: {}]   ;;  %s6224_s1 = inlined_call_operand.hbm [shape: f32[304,128], index: 1, kind: input, shape index: {}]   ;;  %s6225_s2 = inlined_call_operand.hbm [shape: f32[8,128], index: 2, kind: output, shape index: {}]  }
   0x1   :  { %8 = vsyncpa [#allocation6], 0 }
   0x2   :  { %9 = vsyncpa [#allocation4], 0  ;;  %s2532_s9 = smov [#allocation2]   ;;  %s2460_s13 = scalar_lea.hbm %s6223_s0, 4864 }
   0x3   :  { %s15_s10 = sshll.u32 %s2532_s9, 4  ;;  %p2461_p0 = scmp.ne.s32.totalorder %s6223_s0, %s2460_s13  ;;  %s16_s10 = int_to_ptr.vmem [resolvable:$true] %s15_s10 }
   0x4   :  { %p2464_p1 = scmp.lt.u32.totalorder %s2460_s13, %s6223_s0 }
   0x6   :  { %p2466_p2 = pnand %p2464_p1, %p2461_p0 }
   0x8   :  { %2469 = shalt.err (!%p2466_p2)
}
   0x9   :  { %s2470_s18 = scalar_lea.vmem %s16_s10, 4864  ;;  %p2475_p4 = scmp.lt.s32.totalorder %s16_s10, %s16_s10 }
   0xa   :  { %p2471_p3 = scmp.ne.s32.totalorder %s16_s10, %s2470_s18  ;;  %p2476_p5 = scmp.lt.s32.totalorder %s2470_s18, %s2470_s18 }
   0xc   :  { %p2477_p6 = por %p2476_p5, %p2475_p4 }
   0xe   :  { %p2478_p7 = pnand %p2477_p6, %p2471_p3 }
  0x10   :  { %2481 = shalt.err (!%p2478_p7)
}
  0x11   :  { %s2533_s19 = smov 128   ;;  %s2534_s20 = smov 8  }
  0x12   :  { %21 = dma.hbm_to_vmem [thread:$0]  %s6223_s0, 4864, %s16_s10, [#allocation3], %s2533_s19, %s2533_s19, %s2534_s20  }
  0x13   :  { %s2535_s23 = smov [#allocation5]   ;;  %s2482_s27 = scalar_lea.hbm %s6224_s1, 4864 }
  0x14   :  { %s27_s24 = sshll.u32 %s2535_s23, 4  ;;  %p2483_p8 = scmp.ne.s32.totalorder %s6224_s1, %s2482_s27  ;;  %s28_s24 = int_to_ptr.vmem [resolvable:$true] %s27_s24 }
  0x15   :  { %p2486_p9 = scmp.lt.u32.totalorder %s2482_s27, %s6224_s1 }
  0x17   :  { %p2488_p10 = pnand %p2486_p9, %p2483_p8 }
  0x19   :  { %2491 = shalt.err (!%p2488_p10)
}
  0x1a   :  { %s2492_s4 = scalar_lea.vmem %s28_s24, 4864  ;;  %p2497_p12 = scmp.lt.s32.totalorder %s28_s24, %s28_s24 }
  0x1b   :  { %p2493_p11 = scmp.ne.s32.totalorder %s28_s24, %s2492_s4  ;;  %p2498_p13 = scmp.lt.s32.totalorder %s2492_s4, %s2492_s4 }
  0x1d   :  { %p2499_p0 = por %p2498_p13, %p2497_p12 }
  0x1f   :  { %p2500_p1 = pnand %p2499_p0, %p2493_p11 }
  0x21   :  { %2503 = shalt.err (!%p2500_p1)
}
  0x22   :  { %33 = dma.hbm_to_vmem [thread:$0]  %s6224_s1, 4864, %s28_s24, [#allocation6], %s2533_s19, %s2533_s19, %s2534_s20  }
  0x23   :  { %2526 = dma.done.wait [#allocation3], 4864  }
  0x24   :  { %2527 = vsyncadd [#allocation3], 4294962432 }
  0x25   :  { %2528 = dma.done.wait [#allocation6], 4864  }
  0x26   :  { %2529 = vsyncadd [#allocation6], 4294962432  ;;  %v2576_v0 = vld [vmem:[#allocation2] sm:$0xff]  ;;  %v2578_v1 = vld [vmem:[#allocation2 + $0x8] sm:$0xff]  ;;  %s2536_s1 = smov [#allocation7]  }
  0x27   :  { %6642 = vst [vmem:[#allocation11_spill] sm:$0xff] %v2576_v0  ;;  %6643 = vst [vmem:[#allocation12_spill] sm:$0xff] %v2578_v1  ;;  %v116_v2 = vand.u32 2147483647, %v2576_v0  ;;  %v2581_v3 = vld [vmem:[#allocation2 + $0x10] sm:$0xff]  ;;  %v2583_v4 = vld [vmem:[#allocation2 + $0x18] sm:$0xff] }
  0x28   :  { %v2585_v5 = vld [vmem:[#allocation2 + $0x20] sm:$0xff]  ;;  %v2587_v6 = vld [vmem:[#allocation2 + $0x28] sm:$0xff]  ;;  %v2589_v7 = vld [vmem:[#allocation2 + $0x30] sm:$0xff]  ;;  %v117_v12 = vand.u32 2147483647, %v2578_v1  ;;  %s2028_s6 = sshll.u32 %s2536_s1, 4  ;;  %s2029_s6 = int_to_ptr.vmem [resolvable:$true] %s2028_s6 }
  0x29   :  { %v2592_v9 = vld [vmem:[#allocation2 + $0x38] sm:$0xff]  ;;  %v2594_v10 = vld [vmem:[#allocation2 + $0x40] sm:$0xff]  ;;  %v2596_v11 = vld [vmem:[#allocation2 + $0x48] sm:$0xff]  ;;  %v118_v17 = vand.u32 2147483647, %v2581_v3  ;;  %v2607_v18 = vsub.f32 0.0, %v116_v2  ;;  %p2509_p3 = scmp.lt.s32.totalorder %s2029_s6, %s2029_s6 }
  0x2a   :  { %6644 = vst [vmem:[#allocation13_spill] sm:$0xff] %v2594_v10  ;;  %6645 = vst [vmem:[#allocation14_spill] sm:$0xff] %v2596_v11  ;;  %v2600_v14 = vld [vmem:[#allocation2 + $0x50] sm:$0xff]  ;;  %v2602_v15 = vld [vmem:[#allocation2 + $0x58] sm:$0xff]  ;;  %v119_v19 = vand.u32 2147483647, %v2583_v4 }
  0x2b   :  { %6646 = vst [vmem:[#allocation15_spill] sm:$0xff] %v2600_v14  ;;  %6647 = vst [vmem:[#allocation16_spill] sm:$0xff] %v2602_v15  ;;  %v2604_v16 = vld [vmem:[#allocation2 + $0x60] sm:$0xff]  ;;  %v120_v20 = vand.u32 2147483647, %v2585_v5  ;;  %v2615_v25 = vld [vmem:[#allocation2 + $0x68] sm:$0xff] }
  0x2c   :  { %6648 = vst [vmem:[#allocation17_spill] sm:$0xff] %v2604_v16  ;;  %v121_v21 = vand.u32 2147483647, %v2587_v6  ;;  %v122_v22 = vand.u32 2147483647, %v2589_v7  ;;  %6649 = vst [vmem:[#allocation18_spill] sm:$0xff] %v2615_v25 }
  0x2d   :  { %v123_v23 = vand.u32 2147483647, %v2592_v9  ;;  %v124_v24 = vand.u32 2147483647, %v2594_v10  ;;  %v2617_v26 = vld [vmem:[#allocation2 + $0x70] sm:$0xff]  ;;  %v2621_v29 = vld [vmem:[#allocation2 + $0x78] sm:$0xff] }
  0x2e   :  { %6650 = vst [vmem:[#allocation19_spill] sm:$0xff] %v2617_v26  ;;  %v125_v27 = vand.u32 2147483647, %v2596_v11  ;;  %v126_v28 = vand.u32 2147483647, %v2600_v14  ;;  %6651 = vst [vmem:[#allocation20_spill] sm:$0xff] %v2621_v29 }
  0x2f   :  { %v2623_v30 = vld [vmem:[#allocation2 + $0x80] sm:$0xff]  ;;  %v127_v31 = vand.u32 2147483647, %v2602_v15  ;;  %v2626_v32 = vsub.f32 0.0, %v117_v12  ;;  %v2628_v33 = vsub.f32 0.0, %v118_v17  ;;  %v2630_v34 = vld [vmem:[#allocation2 + $0x88] sm:$0xff] }
  0x30   :  { %6652 = vst [vmem:[#allocation21_spill] sm:$0xff] %v2623_v30  ;;  %6653 = vst [vmem:[#allocation22_spill] sm:$0xff] %v2630_v34  ;;  %v128_v35 = vand.u32 2147483647, %v2604_v16  ;;  %v2633_v36 = vsub.f32 0.0, %v119_v19  ;;  %v2635_v37 = vsub.f32 0.0, %v120_v20 }
  0x31   :  { %v2637_v38 = vsub.f32 0.0, %v121_v21  ;;  %v2639_v39 = vld [vmem:[#allocation2 + $0x90] sm:$0xff]  ;;  %v129_v41 = vand.u32 2147483647, %v2615_v25  ;;  %v2642_v42 = vsub.f32 0.0, %v122_v22  ;;  %v2644_v43 = vsub.f32 0.0, %v123_v23 }
  0x32   :  { %6654 = vst [vmem:[#allocation23_spill] sm:$0xff] %v2639_v39  ;;  %v78_v40 = vld [vmem:[#allocation5] sm:$0xff]  ;;  %v2646_v44 = vsub.f32 0.0, %v124_v24  ;;  %v79_v45 = vld [vmem:[#allocation5 + $0x8] sm:$0xff]  ;;  %v80_v46 = vld [vmem:[#allocation5 + $0x10] sm:$0xff]  ;;  %v2649_v48 = vsub.f32 0.0, %v125_v27 }
  0x33   :  { %v130_v47 = vand.u32 2147483647, %v2617_v26  ;;  %v2651_v49 = vsub.f32 0.0, %v126_v28  ;;  %v2654_v50 = vmul.f32 %v78_v40, %v2576_v0  ;;  %v2656_v51 = vld [vmem:[#allocation2 + $0x98] sm:$0xff]  ;;  %v81_v52 = vld [vmem:[#allocation5 + $0x18] sm:$0xff]  ;;  %v82_v53 = vld [vmem:[#allocation5 + $0x20] sm:$0xff]  ;;  %v2662_v56 = vmul.f32 %v79_v45, %v2578_v1 }
  0x34   :  { %6656 = vst [vmem:[#allocation25_spill] sm:$0xff] %v2656_v51  ;;  %v131_v54 = vand.u32 2147483647, %v2621_v29  ;;  %v2659_v55 = vsub.f32 0.0, %v127_v31  ;;  %v2665_v57 = vmul.f32 %v80_v46, %v2581_v3  ;;  %v2667_v58 = vld [vmem:[#allocation2 + $0xa0] sm:$0xff]  ;;  %v83_v59 = vld [vmem:[#allocation5 + $0x28] sm:$0xff]  ;;  %v2673_v63 = vmul.f32 %v81_v52, %v2583_v4 }
  0x35   :  { %6655 = vst [vmem:[#allocation24_spill] sm:$0xff] %v2654_v50  ;;  %6657 = vst [vmem:[#allocation26_spill] sm:$0xff] %v2662_v56  ;;  %v84_v60 = vld [vmem:[#allocation5 + $0x30] sm:$0xff]  ;;  %v132_v61 = vand.u32 2147483647, %v2623_v30  ;;  %v2670_v62 = vsub.f32 0.0, %v128_v35  ;;  %v2676_v2 = vmul.f32 %v82_v53, %v2585_v5  ;;  %v2684_v22 = vmul.f32 %v83_v59, %v2587_v6 }
  0x36   :  { %6658 = vst [vmem:[#allocation27_spill] sm:$0xff] %v2665_v57  ;;  %6659 = vst [vmem:[#allocation28_spill] sm:$0xff] %v2667_v58  ;;  %v2678_v12 = vld [vmem:[#allocation2 + $0xa8] sm:$0xff]  ;;  %v86_v19 = vld [vmem:[#allocation5 + $0x40] sm:$0xff]  ;;  %v133_v20 = vand.u32 2147483647, %v2630_v34  ;;  %v2687_v23 = vmul.f32 %v84_v60, %v2589_v7 }
  0x37   :  { %6660 = vst [vmem:[#allocation29_spill] sm:$0xff] %v2673_v63  ;;  %6661 = vst [vmem:[#allocation30_spill] sm:$0xff] %v2676_v2  ;;  %v85_v17 = vld [vmem:[#allocation5 + $0x38] sm:$0xff]  ;;  %v2681_v21 = vsub.f32 0.0, %v129_v41  ;;  %v2689_v24 = vld [vmem:[#allocation2 + $0xb0] sm:$0xff]  ;;  %v2692_v35 = vsub.f32 0.0, %v130_v47  ;;  %v2698_v41 = vmul.f32 %v86_v19, %v2594_v10 }
  0x38   :  { %6662 = vst [vmem:[#allocation31_spill] sm:$0xff] %v2684_v22  ;;  %6663 = vst [vmem:[#allocation32_spill] sm:$0xff] %v2687_v23  ;;  %v87_v27 = vld [vmem:[#allocation5 + $0x48] sm:$0xff]  ;;  %v88_v28 = vld [vmem:[#allocation5 + $0x50] sm:$0xff]  ;;  %v134_v31 = vand.u32 2147483647, %v2639_v39  ;;  %v2695_v40 = vmul.f32 %v85_v17, %v2592_v9 }
  0x39   :  { %6664 = vst [vmem:[#allocation33_spill] sm:$0xff] %v2689_v24  ;;  %6666 = vst [vmem:[#allocation35_spill] sm:$0xff] %v2698_v41  ;;  %v2700_v45 = vld [vmem:[#allocation2 + $0xb8] sm:$0xff]  ;;  %v89_v46 = vld [vmem:[#allocation5 + $0x58] sm:$0xff]  ;;  %v135_v52 = vand.u32 2147483647, %v2656_v51  ;;  %v2707_v60 = vmul.f32 %v87_v27, %v2596_v11  ;;  %v2717_v23 = vmul.f32 %v88_v28, %v2600_v14 }
  0x3a   :  { %6665 = vst [vmem:[#allocation34_spill] sm:$0xff] %v2695_v40  ;;  %v136_v53 = vand.u32 2147483647, %v2667_v58  ;;  %v2704_v59 = vsub.f32 0.0, %v131_v54  ;;  %v2709_v47 = vld [vmem:[#allocation2 + $0xc0] sm:$0xff]  ;;  %v2711_v13 = vld [vmem:[#allocation2 + $0xc8] sm:$0xff]  ;;  %v2720_v54 = vmul.f32 %v89_v46, %v2602_v15 }
  0x3b   :  { %6667 = vst [vmem:[#allocation36_spill] sm:$0xff] %v2707_v60  ;;  %6668 = vst [vmem:[#allocation37_spill] sm:$0xff] %v2709_v47  ;;  %v90_v17 = vld [vmem:[#allocation5 + $0x60] sm:$0xff]  ;;  %v91_v8 = vld [vmem:[#allocation5 + $0x68] sm:$0xff]  ;;  %v137_v41 = vand.u32 2147483647, %v2678_v12 }
  0x3c   :  { %6669 = vst [vmem:[#allocation38_spill] sm:$0xff] %v2711_v13  ;;  %v92_v19 = vld [vmem:[#allocation5 + $0x70] sm:$0xff]  ;;  %v2714_v40 = vsub.f32 0.0, %v132_v61  ;;  %6670 = vst [vmem:[#allocation39_spill] sm:$0xff] %v2717_v23  ;;  %v2722_v22 = vld [vmem:[#allocation2 + $0xd0] sm:$0xff]  ;;  %v2726_v63 = vsub.f32 0.0, %v133_v20  ;;  %v2729_v57 = vmul.f32 %v90_v17, %v2604_v16  ;;  %v2732_v61 = vmul.f32 %v91_v8, %v2615_v25 }
  0x3d   :  { %6671 = vst [vmem:[#allocation40_spill] sm:$0xff] %v2720_v54  ;;  %6672 = vst [vmem:[#allocation41_spill] sm:$0xff] %v2722_v22  ;;  %v2724_v27 = vld [vmem:[#allocation2 + $0xd8] sm:$0xff]  ;;  %v93_v60 = vld [vmem:[#allocation5 + $0x78] sm:$0xff]  ;;  %v2735_v28 = vmul.f32 %v92_v19, %v2617_v26  ;;  %v138_v20 = vand.u32 2147483647, %v2689_v24 }
  0x3e   :  { %v94_v2 = vld [vmem:[#allocation5 + $0x80] sm:$0xff]  ;;  %6673 = vst [vmem:[#allocation42_spill] sm:$0xff] %v2729_v57  ;;  %6674 = vst [vmem:[#allocation43_spill] sm:$0xff] %v2732_v61  ;;  %v2737_v23 = vld [vmem:[#allocation2 + $0xe0] sm:$0xff]  ;;  %v2744_v0 = vsub.f32 0.0, %v134_v31  ;;  %v2747_v17 = vmul.f32 %v93_v60, %v2621_v29  ;;  %v2758_v26 = vsub.f32 0.0, %v135_v52 }
  0x3f   :  { %6675 = vst [vmem:[#allocation44_spill] sm:$0xff] %v2735_v28  ;;  %6676 = vst [vmem:[#allocation45_spill] sm:$0xff] %v2737_v23  ;;  %v2739_v46 = vld [vmem:[#allocation2 + $0xe8] sm:$0xff]  ;;  %v2741_v54 = vld [vmem:[#allocation2 + $0xf0] sm:$0xff]  ;;  %v2750_v8 = vmul.f32 %v94_v2, %v2623_v30  ;;  %v2760_v25 = vsub.f32 0.0, %v136_v53  ;;  %v2775_v15 = vsub.f32 0.0, %v137_v41 }
  0x40   :  { %6677 = vst [vmem:[#allocation46_spill] sm:$0xff] %v2739_v46  ;;  %6678 = vst [vmem:[#allocation47_spill] sm:$0xff] %v2741_v54  ;;  %v95_v1 = vld [vmem:[#allocation5 + $0x88] sm:$0xff]  ;;  %v96_v56 = vld [vmem:[#allocation5 + $0x90] sm:$0xff]  ;;  %v139_v52 = vand.u32 2147483647, %v2700_v45 }
  0x41   :  { %6679 = vst [vmem:[#allocation48_spill] sm:$0xff] %v2747_v17  ;;  %6680 = vst [vmem:[#allocation49_spill] sm:$0xff] %v2750_v8  ;;  %v2752_v19 = vld [vmem:[#allocation2 + $0xf8] sm:$0xff]  ;;  %v2754_v28 = vld [vmem:[#allocation2 + $0x100] sm:$0xff]  ;;  %v2763_v31 = vmul.f32 %v95_v1, %v2630_v34  ;;  %v2766_v60 = vmul.f32 %v96_v56, %v2639_v39  ;;  %v140_v39 = vand.u32 2147483647, %v2709_v47 }
  0x42   :  { %6681 = vst [vmem:[#allocation50_spill] sm:$0xff] %v2752_v19  ;;  %6682 = vst [vmem:[#allocation51_spill] sm:$0xff] %v2754_v28  ;;  %v2756_v61 = vld [vmem:[#allocation2 + $0x108] sm:$0xff]  ;;  %v98_v50 = vld [vmem:[#allocation5 + $0xa0] sm:$0xff]  ;;  %v141_v34 = vand.u32 2147483647, %v2711_v13 }
  0x43   :  { %6683 = vst [vmem:[#allocation52_spill] sm:$0xff] %v2756_v61  ;;  %v97_v57 = vld [vmem:[#allocation5 + $0x98] sm:$0xff]  ;;  %6684 = vst [vmem:[#allocation53_spill] sm:$0xff] %v2763_v31  ;;  %v2768_v2 = vld [vmem:[#allocation2 + $0x110] sm:$0xff]  ;;  %v2781_v1 = vmul.f32 %v98_v50, %v2667_v58  ;;  %v143_v50 = vand.u32 2147483647, %v2724_v27 }
  0x44   :  { %6685 = vst [vmem:[#allocation54_spill] sm:$0xff] %v2766_v60  ;;  %6686 = vst [vmem:[#allocation55_spill] sm:$0xff] %v2768_v2  ;;  %v2770_v8 = vld [vmem:[#allocation2 + $0x118] sm:$0xff]  ;;  %v2772_v17 = vld [vmem:[#allocation2 + $0x120] sm:$0xff]  ;;  %v2778_v53 = vmul.f32 %v97_v57, %v2656_v51  ;;  %v142_v57 = vand.u32 2147483647, %v2722_v22 }
  0x45   :  { %6687 = vst [vmem:[#allocation56_spill] sm:$0xff] %v2770_v8  ;;  %6688 = vst [vmem:[#allocation57_spill] sm:$0xff] %v2772_v17  ;;  %v99_v30 = vld [vmem:[#allocation5 + $0xa8] sm:$0xff]  ;;  %v100_v29 = vld [vmem:[#allocation5 + $0xb0] sm:$0xff]  ;;  %v144_v51 = vand.u32 2147483647, %v2737_v23 }
  0x46   :  { %v101_v16 = vld [vmem:[#allocation5 + $0xb8] sm:$0xff]  ;;  %6689 = vst [vmem:[#allocation58_spill] sm:$0xff] %v2778_v53  ;;  %6690 = vst [vmem:[#allocation59_spill] sm:$0xff] %v2781_v1  ;;  %v102_v60 = vld [vmem:[#allocation5 + $0xc0] sm:$0xff]  ;;  %v2788_v14 = vmul.f32 %v99_v30, %v2678_v12  ;;  %v2791_v41 = vmul.f32 %v100_v29, %v2689_v24  ;;  %v2795_v1 = vsub.f32 0.0, %v138_v20  ;;  %s2504_s7 = scalar_lea.vmem %s2029_s6, 128 }
  0x47   :  { %v2783_v56 = vld [vmem:[#allocation2 + $0x128] sm:$0xff]  ;;  %v103_v31 = vld [vmem:[#allocation5 + $0xc8] sm:$0xff]  ;;  %v104_v11 = vld [vmem:[#allocation5 + $0xd0] sm:$0xff]  ;;  %v2798_v53 = vmul.f32 %v101_v16, %v2700_v45  ;;  %v145_v10 = vand.u32 2147483647, %v2739_v46  ;;  %v2804_v29 = vmul.f32 %v102_v60, %v2709_v47  ;;  %p2505_p2 = scmp.ne.s32.totalorder %s2029_s6, %s2504_s7  ;;  %p2510_p4 = scmp.lt.s32.totalorder %s2504_s7, %s2504_s7 }
  0x48   :  { %6691 = vst [vmem:[#allocation60_spill] sm:$0xff] %v2783_v56  ;;  %6692 = vst [vmem:[#allocation61_spill] sm:$0xff] %v2788_v14  ;;  %v105_v58 = vld [vmem:[#allocation5 + $0xd8] sm:$0xff]  ;;  %v146_v30 = vand.u32 2147483647, %v2741_v54  ;;  %v2810_v24 = vmul.f32 %v103_v31, %v2711_v13  ;;  %v2816_v54 = vmul.f32 %v104_v11, %v2722_v22  ;;  %v179_v31 = vsub.f32 0.0, %v141_v34 }
  0x49   :  { %6693 = vst [vmem:[#allocation62_spill] sm:$0xff] %v2791_v41  ;;  %6694 = vst [vmem:[#allocation63_spill] sm:$0xff] %v2798_v53  ;;  %v147_v41 = vand.u32 2147483647, %v2752_v19  ;;  %v148_v14 = vand.u32 2147483647, %v2754_v28  ;;  %v2821_v28 = vmul.f32 %v105_v58, %v2724_v27  ;;  %p2511_p5 = por %p2510_p4, %p2509_p3 }
  0x4a   :  { %6695 = vst [vmem:[#allocation64_spill] sm:$0xff] %v2804_v29  ;;  %v149_v20 = vand.u32 2147483647, %v2756_v61  ;;  %6696 = vst [vmem:[#allocation65_spill] sm:$0xff] %v2810_v24  ;;  %v150_v16 = vand.u32 2147483647, %v2768_v2 }
  0x4b   :  { %v151_v53 = vand.u32 2147483647, %v2770_v8  ;;  %v152_v46 = vand.u32 2147483647, %v2772_v17  ;;  %6697 = vst [vmem:[#allocation66_spill] sm:$0xff] %v2816_v54  ;;  %v177_v29 = vsub.f32 0.0, %v139_v52  ;;  %p2512_p6 = pnand %p2511_p5, %p2505_p2 }
  0x4c   :  { %v153_v60 = vand.u32 2147483647, %v2783_v56  ;;  %v192_v19 = vmul.f32 1.442695, %v2607_v18  ;;  %v178_v61 = vsub.f32 0.0, %v140_v39  ;;  %v180_v24 = vsub.f32 0.0, %v142_v57 }
  0x4d   :  { %v194_v2 = vmul.f32 1.442695, %v2626_v32  ;;  %v181_v13 = vsub.f32 0.0, %v143_v50  ;;  %v182_v8 = vsub.f32 0.0, %v144_v51  ;;  %v183_v47 = vsub.f32 0.0, %v145_v10  ;;  %v106_v39 = vld [vmem:[#allocation5 + $0xe0] sm:$0xff] }
  0x4e   :  { %v196_v17 = vmul.f32 1.442695, %v2628_v33  ;;  %v184_v11 = vsub.f32 0.0, %v146_v30  ;;  %v185_v54 = vsub.f32 0.0, %v147_v41  ;;  %v186_v22 = vsub.f32 0.0, %v148_v14 }
  0x4f   :  { %v198_v52 = vmul.f32 1.442695, %v2633_v36  ;;  %v187_v56 = vsub.f32 0.0, %v149_v20  ;;  %v188_v18 = vsub.f32 0.0, %v150_v16  ;;  %2043 = vpow2.f32 %v192_v19  ;;  %v6722_v20 = vld [vmem:[#allocation28_spill] sm:$0xff] }
  0x50   :  { %v200_v58 = vmul.f32 1.442695, %v2635_v37  ;;  %v189_v34 = vsub.f32 0.0, %v151_v53  ;;  %v190_v57 = vsub.f32 0.0, %v152_v46  ;;  %2045 = vpow2.f32 %v194_v2 }
  0x51   :  { %v202_v32 = vmul.f32 1.442695, %v2637_v38  ;;  %v191_v51 = vsub.f32 0.0, %v153_v60  ;;  %2047 = vpow2.f32 %v196_v17  ;;  %v204_v10 = vmul.f32 1.442695, %v2642_v42  ;;  %v6719_v60 = vld [vmem:[#allocation23_spill] sm:$0xff] }
  0x52   :  { %v2830_v33 = vmul.f32 %v106_v39, %v2737_v23  ;;  %2049 = vpow2.f32 %v198_v52  ;;  %v206_v14 = vmul.f32 1.442695, %v2644_v43  ;;  %v208_v36 = vmul.f32 1.442695, %v2646_v44  ;;  %v6706_v52 = vld [vmem:[#allocation13_spill] sm:$0xff] }
  0x53   :  { %v210_v37 = vmul.f32 1.442695, %v2649_v48  ;;  %2051 = vpow2.f32 %v200_v58  ;;  %v212_v46 = vmul.f32 1.442695, %v2651_v49  ;;  %v214_v19 = vmul.f32 1.442695, %v2659_v55 }
  0x54   :  { %6698 = vst [vmem:[#allocation67_spill] sm:$0xff] %v2830_v33  ;;  %v216_v38 = vmul.f32 1.442695, %v2670_v62  ;;  %2053 = vpow2.f32 %v202_v32  ;;  %v218_v42 = vmul.f32 1.442695, %v2681_v21  ;;  %v6707_v58 = vld [vmem:[#allocation14_spill] sm:$0xff] }
  0x55   :  { %v220_v17 = vmul.f32 1.442695, %v2692_v35  ;;  %v222_v2 = vmul.f32 1.442695, %v2704_v59  ;;  %2055 = vpow2.f32 %v204_v10  ;;  %v224_v43 = vmul.f32 1.442695, %v2714_v40 }
  0x56   :  { %v226_v44 = vmul.f32 1.442695, %v2726_v63  ;;  %v228_v48 = vmul.f32 1.442695, %v2744_v0  ;;  %2057 = vpow2.f32 %v206_v14  ;;  %v230_v49 = vmul.f32 1.442695, %v2758_v26 }
  0x57   :  { %v232_v55 = vmul.f32 1.442695, %v2760_v25  ;;  %v2847_v62 = vmul.f32 1.442695, %v2775_v15  ;;  %2059 = vpow2.f32 %v208_v36  ;;  %v2850_v21 = vmul.f32 1.442695, %v2795_v1 }
  0x58   :  { %v2852_v35 = vmul.f32 1.442695, %v177_v29  ;;  %v2854_v59 = vmul.f32 1.442695, %v178_v61  ;;  %2061 = vpow2.f32 %v210_v37  ;;  %v2856_v63 = vmul.f32 1.442695, %v179_v31 }
  0x59   :  { %v2858_v0 = vmul.f32 1.442695, %v180_v24  ;;  %v2860_v40 = vmul.f32 1.442695, %v181_v13  ;;  %v2862_v26 = vpop.eup %2043  ;;  %2063 = vpow2.f32 %v212_v46  ;;  %v2864_v15 = vmul.f32 1.442695, %v182_v8 }
  0x5a   :  { %6699 = vst [vmem:[#allocation68_spill] sm:$0xff] %v2862_v26  ;;  %v2866_v25 = vmul.f32 1.442695, %v183_v47  ;;  %v2868_v53 = vmul.f32 1.442695, %v184_v11  ;;  %v2870_v1 = vpop.eup %2045  ;;  %2065 = vpow2.f32 %v214_v19  ;;  %v6711_v14 = vld [vmem:[#allocation17_spill] sm:$0xff] }
  0x5b   :  { %6700 = vst [vmem:[#allocation69_spill] sm:$0xff] %v2870_v1  ;;  %v2872_v61 = vmul.f32 1.442695, %v185_v54  ;;  %v2874_v41 = vmul.f32 1.442695, %v186_v22  ;;  %v2878_v13 = vpop.eup %2047  ;;  %2067 = vpow2.f32 %v216_v38  ;;  %v6713_v46 = vld [vmem:[#allocation18_spill] sm:$0xff] }
  0x5c   :  { %v2876_v24 = vmul.f32 1.442695, %v187_v56  ;;  %6701 = vst [vmem:[#allocation70_spill] sm:$0xff] %v2878_v13  ;;  %v2880_v50 = vmul.f32 1.442695, %v188_v18  ;;  %v2886_v30 = vpop.eup %2049  ;;  %2069 = vpow2.f32 %v218_v42  ;;  %v6714_v38 = vld [vmem:[#allocation19_spill] sm:$0xff] }
  0x5d   :  { %v2882_v8 = vmul.f32 1.442695, %v189_v34  ;;  %v2884_v47 = vmul.f32 1.442695, %v190_v57  ;;  %6702 = vst [vmem:[#allocation71_spill] sm:$0xff] %v2886_v30  ;;  %v2892_v56 = vpop.eup %2051  ;;  %2071 = vpow2.f32 %v220_v17  ;;  %v6709_v57 = vld [vmem:[#allocation15_spill] sm:$0xff] }
  0x5e   :  { %v2888_v29 = vmul.f32 1.442695, %v191_v51  ;;  %6704 = vst [vmem:[#allocation73_spill] sm:$0xff] %v2892_v56  ;;  %v2897_v31 = vpop.eup %2053  ;;  %2073 = vpow2.f32 %v222_v2  ;;  %v6710_v51 = vld [vmem:[#allocation16_spill] sm:$0xff]  ;;  %v6717_v39 = vld [vmem:[#allocation21_spill] sm:$0xff]  ;;  %v6718_v11 = vld [vmem:[#allocation22_spill] sm:$0xff] }
  0x5f   :  { %6705 = vst [vmem:[#allocation74_spill] sm:$0xff] %v2897_v31  ;;  %v2902_v34 = vpop.eup %2055  ;;  %2075 = vpow2.f32 %v224_v43  ;;  %v6715_v17 = vld [vmem:[#allocation20_spill] sm:$0xff]  ;;  %v6721_v36 = vld [vmem:[#allocation25_spill] sm:$0xff]  ;;  %v112_v32 = vld [vmem:[#allocation5 + $0x110] sm:$0xff] }
  0x60   :  { %6703 = vst [vmem:[#allocation72_spill] sm:$0xff] %v2888_v29  ;;  %6708 = vst [vmem:[#allocation13_spill] sm:$0xff] %v2902_v34  ;;  %v2907_v37 = vpop.eup %2057  ;;  %2077 = vpow2.f32 %v226_v44  ;;  %v6724_v2 = vld [vmem:[#allocation33_spill] sm:$0xff]  ;;  %v6735_v34 = vld [vmem:[#allocation52_spill] sm:$0xff] }
  0x61   :  { %6712 = vst [vmem:[#allocation14_spill] sm:$0xff] %v2907_v37  ;;  %v2912_v18 = vpop.eup %2059  ;;  %2079 = vpow2.f32 %v228_v48  ;;  %v6725_v54 = vld [vmem:[#allocation37_spill] sm:$0xff]  ;;  %v6730_v48 = vld [vmem:[#allocation46_spill] sm:$0xff]  ;;  %v6738_v56 = vld [vmem:[#allocation56_spill] sm:$0xff] }
  0x62   :  { %6716 = vst [vmem:[#allocation15_spill] sm:$0xff] %v2912_v18  ;;  %v2917_v16 = vpop.eup %2061  ;;  %2081 = vpow2.f32 %v230_v49  ;;  %v6727_v49 = vld [vmem:[#allocation38_spill] sm:$0xff]  ;;  %v6728_v44 = vld [vmem:[#allocation41_spill] sm:$0xff]  ;;  %v110_v10 = vld [vmem:[#allocation5 + $0x100] sm:$0xff] }
  0x63   :  { %6720 = vst [vmem:[#allocation16_spill] sm:$0xff] %v2917_v16  ;;  %v2922_v22 = vpop.eup %2063  ;;  %2083 = vpow2.f32 %v232_v55  ;;  %v6737_v55 = vld [vmem:[#allocation55_spill] sm:$0xff]  ;;  %v6739_v30 = vld [vmem:[#allocation57_spill] sm:$0xff]  ;;  %v6741_v19 = vld [vmem:[#allocation60_spill] sm:$0xff] }
  0x64   :  { %6723 = vst [vmem:[#allocation17_spill] sm:$0xff] %v2922_v22  ;;  %v2927_v18 = vpop.eup %2065  ;;  %2085 = vpow2.f32 %v2847_v62  ;;  %v6731_v22 = vld [vmem:[#allocation47_spill] sm:$0xff]  ;;  %v6733_v62 = vld [vmem:[#allocation50_spill] sm:$0xff]  ;;  %v111_v23 = vld [vmem:[#allocation5 + $0x108] sm:$0xff] }
  0x65   :  { %6726 = vst [vmem:[#allocation18_spill] sm:$0xff] %v2927_v18  ;;  %v2933_v42 = vpop.eup %2067  ;;  %2087 = vpow2.f32 %v2850_v21  ;;  %v6734_v18 = vld [vmem:[#allocation51_spill] sm:$0xff]  ;;  %v108_v21 = vld [vmem:[#allocation5 + $0xf0] sm:$0xff]  ;;  %v2971_v16 = vmul.f32 %v111_v23, %v6735_v34 }
  0x66   :  { %6729 = vst [vmem:[#allocation19_spill] sm:$0xff] %v2933_v42  ;;  %v2939_v37 = vpop.eup %2069  ;;  %2089 = vpow2.f32 %v2852_v35  ;;  %v107_v42 = vld [vmem:[#allocation5 + $0xe8] sm:$0xff]  ;;  %v109_v35 = vld [vmem:[#allocation5 + $0xf8] sm:$0xff] }
  0x67   :  { %6732 = vst [vmem:[#allocation20_spill] sm:$0xff] %v2939_v37  ;;  %v2945_v31 = vpop.eup %2071  ;;  %2091 = vpow2.f32 %v2854_v59  ;;  %v2959_v59 = vmul.f32 %v108_v21, %v6731_v22  ;;  %v113_v33 = vld [vmem:[#allocation5 + $0x118] sm:$0xff]  ;;  %v114_v37 = vld [vmem:[#allocation5 + $0x120] sm:$0xff]  ;;  %v115_v21 = vld [vmem:[#allocation5 + $0x128] sm:$0xff] }
  0x68   :  { %6736 = vst [vmem:[#allocation21_spill] sm:$0xff] %v2945_v31  ;;  %v2951_v29 = vpop.eup %2073  ;;  %2093 = vpow2.f32 %v2856_v63  ;;  %v2956_v31 = vmul.f32 %v107_v42, %v6730_v48  ;;  %v2968_v63 = vmul.f32 %v110_v10, %v6734_v18  ;;  %v2980_v22 = vmul.f32 %v113_v33, %v6738_v56  ;;  %v6746_v10 = vld [vmem:[#allocation24_spill] sm:$0xff] }
  0x69   :  { %6740 = vst [vmem:[#allocation22_spill] sm:$0xff] %v2951_v29  ;;  %v2961_v43 = vpop.eup %2075  ;;  %2095 = vpow2.f32 %v2858_v0  ;;  %v2965_v29 = vmul.f32 %v109_v35, %v6733_v62  ;;  %v2983_v0 = vmul.f32 %v114_v37, %v6739_v30  ;;  %v2989_v23 = vmul.f32 %v115_v21, %v6741_v19  ;;  %v6753_v37 = vld [vmem:[#allocation27_spill] sm:$0xff]  ;;  %v6756_v21 = vld [vmem:[#allocation29_spill] sm:$0xff] }
  0x6a   :  { %6742 = vst [vmem:[#allocation23_spill] sm:$0xff] %v2961_v43  ;;  %v2973_v42 = vpop.eup %2077  ;;  %2097 = vpow2.f32 %v2860_v40  ;;  %v2977_v43 = vmul.f32 %v112_v32, %v6737_v55  ;;  %v6749_v32 = vld [vmem:[#allocation26_spill] sm:$0xff]  ;;  %v6750_v55 = vld [vmem:[#allocation12_spill] sm:$0xff]  ;;  %v6757_v19 = vmax.f32 %v2583_v4, 0.0 }
  0x6b   :  { %6743 = vst [vmem:[#allocation25_spill] sm:$0xff] %v2973_v42  ;;  %v2985_v35 = vpop.eup %2079  ;;  %2099 = vpow2.f32 %v2864_v15  ;;  %v6747_v42 = vld [vmem:[#allocation11_spill] sm:$0xff]  ;;  %v6754_v15 = vmax.f32 %v2581_v3, 0.0 }
  0x6c   :  { %6744 = vst [vmem:[#allocation28_spill] sm:$0xff] %v2977_v43  ;;  %6745 = vst [vmem:[#allocation33_spill] sm:$0xff] %v2985_v35  ;;  %v6748_v34 = vmax.f32 %v6747_v42, 0.0  ;;  %v6751_v43 = vmax.f32 %v6750_v55, 0.0  ;;  %v3001_v56 = vpop.eup %2081  ;;  %2101 = vpow2.f32 %v2866_v25  ;;  %v3012_v42 = vsub.f32 %v6757_v19, %v6756_v21  ;;  %v6763_v25 = vld [vmem:[#allocation31_spill] sm:$0xff]  ;;  %v6769_v19 = vld [vmem:[#allocation34_spill] sm:$0xff] }
  0x6d   :  { %6752 = vst [vmem:[#allocation37_spill] sm:$0xff] %v3001_v56  ;;  %v3007_v35 = vsub.f32 %v6754_v15, %v6753_v37  ;;  %2103 = vpow2.f32 %v2868_v53  ;;  %v6766_v37 = vld [vmem:[#allocation32_spill] sm:$0xff]  ;;  %v6767_v15 = vmax.f32 %v2589_v7, 0.0  ;;  %v6770_v21 = vmax.f32 %v2592_v9, 0.0  ;;  %v6773_v53 = vld [vmem:[#allocation35_spill] sm:$0xff] }
  0x6e   :  { %v2994_v40 = vsub.f32 %v6748_v34, %v6746_v10  ;;  %v2999_v33 = vsub.f32 %v6751_v43, %v6749_v32  ;;  %6758 = vst [vmem:[#allocation41_spill] sm:$0xff] %v3012_v42  ;;  %v6759_v34 = vld [vmem:[#allocation30_spill] sm:$0xff]  ;;  %v6760_v10 = vmax.f32 %v2585_v5, 0.0  ;;  %v3019_v43 = vpop.eup %2083  ;;  %v6764_v32 = vmax.f32 %v2587_v6, 0.0 }
  0x6f   :  { %6755 = vst [vmem:[#allocation38_spill] sm:$0xff] %v3007_v35  ;;  %6762 = vst [vmem:[#allocation50_spill] sm:$0xff] %v3019_v43  ;;  %v3030_v4 = vsub.f32 %v6767_v15, %v6766_v37  ;;  %v3035_v5 = vsub.f32 %v6770_v21, %v6769_v19  ;;  %2105 = vpow2.f32 %v2872_v61  ;;  %v6779_v37 = vld [vmem:[#allocation39_spill] sm:$0xff]  ;;  %v6780_v15 = vmax.f32 %v6709_v57, 0.0  ;;  %v6783_v61 = vld [vmem:[#allocation40_spill] sm:$0xff] }
  0x70   :  { %v3017_v55 = vsub.f32 %v6760_v10, %v6759_v34  ;;  %v3025_v3 = vsub.f32 %v6764_v32, %v6763_v25  ;;  %v3037_v34 = vpop.eup %2085  ;;  %v6774_v10 = vmax.f32 %v6706_v52, 0.0  ;;  %v6776_v25 = vld [vmem:[#allocation36_spill] sm:$0xff]  ;;  %v6777_v32 = vmax.f32 %v6707_v58, 0.0  ;;  %v6935_v35 = vld [vmem:[#allocation19_spill] sm:$0xff] }
  0x71   :  { %6768 = vst [vmem:[#allocation57_spill] sm:$0xff] %v3030_v4  ;;  %6771 = vst [vmem:[#allocation24_spill] sm:$0xff] %v3035_v5  ;;  %v3053_v9 = vsub.f32 %v6780_v15, %v6779_v37  ;;  %v3055_v19 = vpop.eup %2087  ;;  %2107 = vpow2.f32 %v2874_v41  ;;  %v6784_v21 = vmax.f32 %v6710_v51, 0.0  ;;  %v6793_v41 = vld [vmem:[#allocation44_spill] sm:$0xff]  ;;  %v6794_v15 = vmax.f32 %v6714_v38, 0.0 }
  0x72   :  { %6761 = vst [vmem:[#allocation46_spill] sm:$0xff] %v3017_v55  ;;  %6765 = vst [vmem:[#allocation51_spill] sm:$0xff] %v3025_v3  ;;  %v3043_v6 = vsub.f32 %v6774_v10, %v6773_v53  ;;  %v3048_v7 = vsub.f32 %v6777_v32, %v6776_v25  ;;  %v6786_v53 = vld [vmem:[#allocation42_spill] sm:$0xff]  ;;  %v6787_v10 = vmax.f32 %v6711_v14, 0.0  ;;  %v6789_v25 = vld [vmem:[#allocation43_spill] sm:$0xff]  ;;  %v6790_v32 = vmax.f32 %v6713_v46, 0.0  ;;  %v3073_v37 = vpop.eup %2089 }
  0x73   :  { %6772 = vst [vmem:[#allocation11_spill] sm:$0xff] %v3037_v34  ;;  %6781 = vst [vmem:[#allocation27_spill] sm:$0xff] %v3053_v9  ;;  %v3061_v52 = vsub.f32 %v6784_v21, %v6783_v61  ;;  %2109 = vpow2.f32 %v2876_v24  ;;  %v3079_v51 = vsub.f32 %v6794_v15, %v6793_v41  ;;  %v6796_v61 = vld [vmem:[#allocation48_spill] sm:$0xff]  ;;  %v6797_v21 = vmax.f32 %v6715_v17, 0.0  ;;  %v6803_v24 = vld [vmem:[#allocation53_spill] sm:$0xff] }
  0x74   :  { %6775 = vst [vmem:[#allocation26_spill] sm:$0xff] %v3043_v6  ;;  %6778 = vst [vmem:[#allocation12_spill] sm:$0xff] %v3048_v7  ;;  %v3066_v58 = vsub.f32 %v6787_v10, %v6786_v53  ;;  %v3071_v57 = vsub.f32 %v6790_v32, %v6789_v25  ;;  %v6799_v53 = vld [vmem:[#allocation49_spill] sm:$0xff]  ;;  %v6800_v10 = vmax.f32 %v6717_v39, 0.0  ;;  %v3091_v25 = vpop.eup %2091  ;;  %2111 = vpow2.f32 %v2880_v50  ;;  %v6806_v41 = vld [vmem:[#allocation54_spill] sm:$0xff] }
  0x75   :  { %6782 = vst [vmem:[#allocation29_spill] sm:$0xff] %v3055_v19  ;;  %6785 = vst [vmem:[#allocation30_spill] sm:$0xff] %v3061_v52  ;;  %v3084_v14 = vsub.f32 %v6797_v21, %v6796_v61  ;;  %v6804_v32 = vmax.f32 %v6718_v11, 0.0  ;;  %v6807_v15 = vmax.f32 %v6719_v60, 0.0  ;;  %v6809_v61 = vld [vmem:[#allocation58_spill] sm:$0xff]  ;;  %v6810_v21 = vmax.f32 %v6721_v36, 0.0 }
  0x76   :  { %6788 = vst [vmem:[#allocation31_spill] sm:$0xff] %v3066_v58  ;;  %6791 = vst [vmem:[#allocation32_spill] sm:$0xff] %v3071_v57  ;;  %v3089_v46 = vsub.f32 %v6800_v10, %v6799_v53  ;;  %v3109_v53 = vpop.eup %2093  ;;  %2113 = vpow2.f32 %v2882_v8  ;;  %v6813_v50 = vld [vmem:[#allocation59_spill] sm:$0xff]  ;;  %v6814_v10 = vmax.f32 %v6722_v20, 0.0  ;;  %v6821_v8 = vmax.f32 %v6724_v2, 0.0 }
  0x77   :  { %6792 = vst [vmem:[#allocation34_spill] sm:$0xff] %v3073_v37  ;;  %6795 = vst [vmem:[#allocation35_spill] sm:$0xff] %v3079_v51  ;;  %v3097_v38 = vsub.f32 %v6804_v32, %v6803_v24  ;;  %v3102_v17 = vsub.f32 %v6807_v15, %v6806_v41  ;;  %v3107_v39 = vsub.f32 %v6810_v21, %v6809_v61  ;;  %v6816_v24 = vld [vmem:[#allocation61_spill] sm:$0xff]  ;;  %v6817_v32 = vmax.f32 %v2678_v12, 0.0  ;;  %v3125_v36 = vpop.eup %2095  ;;  %v6820_v15 = vld [vmem:[#allocation62_spill] sm:$0xff] }
  0x78   :  { %6798 = vst [vmem:[#allocation36_spill] sm:$0xff] %v3084_v14  ;;  %6801 = vst [vmem:[#allocation39_spill] sm:$0xff] %v3089_v46  ;;  %v3115_v11 = vsub.f32 %v6814_v10, %v6813_v50  ;;  %v3123_v41 = vadd.f32 1.0, %v2862_v26  ;;  %2115 = vpow2.f32 %v2884_v47  ;;  %v3131_v61 = vsub.f32 %v6821_v8, %v6820_v15  ;;  %v6823_v20 = vld [vmem:[#allocation63_spill] sm:$0xff]  ;;  %v3141_v10 = vpop.eup %2097  ;;  %v6833_v15 = vld [vmem:[#allocation65_spill] sm:$0xff] }
  0x79   :  { %6802 = vst [vmem:[#allocation40_spill] sm:$0xff] %v3091_v25  ;;  %6805 = vst [vmem:[#allocation42_spill] sm:$0xff] %v3097_v38  ;;  %v3120_v60 = vsub.f32 %v6817_v32, %v6816_v24  ;;  %v6824_v21 = vmax.f32 %v2700_v45, 0.0  ;;  %v3139_v12 = vadd.f32 1.0, %v2870_v1  ;;  %v6828_v24 = vld [vmem:[#allocation64_spill] sm:$0xff]  ;;  %v6829_v32 = vmax.f32 %v6725_v54, 0.0  ;;  %v3153_v45 = vpop.eup %2099 }
  0x7a   :  { %6808 = vst [vmem:[#allocation43_spill] sm:$0xff] %v3102_v17  ;;  %6811 = vst [vmem:[#allocation44_spill] sm:$0xff] %v3107_v39  ;;  %2117 = vlog2.f32 %v3123_v41  ;;  %v385_v47 = vmul.f32 -0.5, %v2862_v26  ;;  %v3151_v2 = vadd.f32 1.0, %v2878_v13  ;;  %v6834_v8 = vmax.f32 %v6727_v49, 0.0  ;;  %v6894_v46 = vld [vmem:[#allocation14_spill] sm:$0xff] }
  0x7b   :  { %6812 = vst [vmem:[#allocation48_spill] sm:$0xff] %v3109_v53  ;;  %6815 = vst [vmem:[#allocation49_spill] sm:$0xff] %v3115_v11  ;;  %v3136_v50 = vsub.f32 %v6824_v21, %v6823_v20  ;;  %v6836_v21 = vld [vmem:[#allocation66_spill] sm:$0xff]  ;;  %2119 = vlog2.f32 %v3139_v12  ;;  %v6843_v11 = vld [vmem:[#allocation45_spill] sm:$0xff]  ;;  %v3284_v14 = vadd.f32 1.0, %v6894_v46  ;;  %v448_v51 = vmul.f32 -0.5, %v6894_v46 }
  0x7c   :  { %6818 = vst [vmem:[#allocation53_spill] sm:$0xff] %v3120_v60  ;;  %6819 = vst [vmem:[#allocation54_spill] sm:$0xff] %v3125_v36  ;;  %v3146_v60 = vsub.f32 %v6829_v32, %v6828_v24  ;;  %v3158_v20 = vsub.f32 %v6834_v8, %v6833_v15  ;;  %v6839_v24 = vmax.f32 %v2724_v27, 0.0  ;;  %v6844_v39 = vmax.f32 %v6843_v11, 0.0  ;;  %v6850_v8 = vld [vmem:[#allocation47_spill] sm:$0xff] }
  0x7d   :  { %6822 = vst [vmem:[#allocation58_spill] sm:$0xff] %v3131_v61  ;;  %6825 = vst [vmem:[#allocation59_spill] sm:$0xff] %v3136_v50  ;;  %v6837_v50 = vmax.f32 %v6728_v44, 0.0  ;;  %v6842_v61 = vld [vmem:[#allocation67_spill] sm:$0xff]  ;;  %v6846_v15 = vmax.f32 %v6730_v48, 0.0  ;;  %2121 = vlog2.f32 %v3151_v2 }
  0x7e   :  { %6826 = vst [vmem:[#allocation61_spill] sm:$0xff] %v3139_v12  ;;  %6827 = vst [vmem:[#allocation62_spill] sm:$0xff] %v3141_v10  ;;  %v3168_v32 = vsub.f32 %v6839_v24, %v2821_v28  ;;  %v3176_v49 = vsub.f32 %v6844_v39, %v6842_v61  ;;  %v6849_v28 = vld [vmem:[#allocation72_spill] sm:$0xff]  ;;  %v6853_v39 = vmax.f32 %v6733_v62, 0.0  ;;  %v6856_v61 = vmax.f32 %v6734_v18, 0.0  ;;  %v6896_v58 = vld [vmem:[#allocation15_spill] sm:$0xff] }
  0x7f   :  { %6830 = vst [vmem:[#allocation63_spill] sm:$0xff] %v3146_v60  ;;  %6831 = vst [vmem:[#allocation64_spill] sm:$0xff] %v3151_v2  ;;  %v3163_v54 = vsub.f32 %v6837_v50, %v6836_v21  ;;  %v3171_v60 = vpop.eup %2101  ;;  %v3181_v44 = vsub.f32 %v6846_v15, %v2956_v31  ;;  %v394_v50 = vmul.f32 -0.5, %v2870_v1  ;;  %2123 = vpow2.f32 %v6849_v28  ;;  %v6859_v62 = vld [vmem:[#allocation52_spill] sm:$0xff] }
  0x80   :  { %6832 = vst [vmem:[#allocation75_spill] sm:$0xff] %v3153_v45  ;;  %6835 = vst [vmem:[#allocation65_spill] sm:$0xff] %v3158_v20  ;;  %v3185_v27 = vpop.eup %2103  ;;  %v6851_v21 = vmax.f32 %v6850_v8, 0.0  ;;  %v3196_v11 = vsub.f32 %v6853_v39, %v2965_v29  ;;  %v388_v31 = vand.u32 2147483647, %v2862_v26  ;;  %v3204_v15 = vsub.f32 %v6856_v61, %v2968_v63  ;;  %v6862_v39 = vld [vmem:[#allocation28_spill] sm:$0xff] }
  0x81   :  { %6838 = vst [vmem:[#allocation66_spill] sm:$0xff] %v3163_v54  ;;  %6840 = vst [vmem:[#allocation76_spill] sm:$0xff] %v3168_v32  ;;  %v3199_v48 = vpop.eup %2105  ;;  %v386_v28 = vadd.f32 1.0, %v385_v47  ;;  %v6860_v29 = vmax.f32 %v6859_v62, 0.0  ;;  %v6866_v18 = vld [vmem:[#allocation56_spill] sm:$0xff]  ;;  %v6869_v61 = vld [vmem:[#allocation71_spill] sm:$0xff] }
  0x82   :  { %6841 = vst [vmem:[#allocation77_spill] sm:$0xff] %v3171_v60  ;;  %6845 = vst [vmem:[#allocation67_spill] sm:$0xff] %v3176_v49  ;;  %v3191_v24 = vsub.f32 %v6851_v21, %v2959_v59  ;;  %v403_v59 = vmul.f32 -0.5, %v2878_v13  ;;  %v3208_v8 = vpop.eup %2107  ;;  %v6867_v63 = vmax.f32 %v6866_v18, 0.0  ;;  %v6872_v62 = vmax.f32 %v6739_v30, 0.0 }
  0x83   :  { %6847 = vst [vmem:[#allocation45_spill] sm:$0xff] %v3181_v44  ;;  %6848 = vst [vmem:[#allocation78_spill] sm:$0xff] %v3185_v27  ;;  %v397_v44 = vand.u32 2147483647, %v2870_v1  ;;  %v3213_v21 = vsub.f32 %v6860_v29, %v2971_v16  ;;  %v3228_v32 = vpop.eup %2109  ;;  %v6874_v29 = vld [vmem:[#allocation60_spill] sm:$0xff]  ;;  %v412_v30 = vmul.f32 -0.5, %v6869_v61 }
  0x84   :  { %6852 = vst [vmem:[#allocation72_spill] sm:$0xff] %v3191_v24  ;;  %6854 = vst [vmem:[#allocation47_spill] sm:$0xff] %v3196_v11  ;;  %v6863_v11 = vld [vmem:[#allocation55_spill] sm:$0xff]  ;;  %v3223_v47 = vsub.f32 %v6867_v63, %v2980_v22  ;;  %v3233_v16 = vsub.f32 %v6872_v62, %v2983_v0  ;;  %v406_v18 = vand.u32 2147483647, %v2878_v13  ;;  %v3241_v22 = vpop.eup %2111  ;;  %v6880_v0 = vld [vmem:[#allocation73_spill] sm:$0xff] }
  0x85   :  { %6855 = vst [vmem:[#allocation79_spill] sm:$0xff] %v3199_v48  ;;  %6857 = vst [vmem:[#allocation80_spill] sm:$0xff] %v3204_v15  ;;  %v6864_v24 = vmax.f32 %v6863_v11, 0.0  ;;  %v3226_v15 = vadd.f32 1.0, %v6869_v61  ;;  %v6875_v11 = vmax.f32 %v6874_v29, 0.0  ;;  %v3250_v62 = vadd.f32 1.0, %v6880_v0 }
  0x86   :  { %6858 = vst [vmem:[#allocation81_spill] sm:$0xff] %v3208_v8  ;;  %6861 = vst [vmem:[#allocation52_spill] sm:$0xff] %v3213_v21  ;;  %vm3243_vm0 = vcmp.lt.f32.partialorder %v388_v31, 0.0004427343  ;;  %vm3257_vm1 = vcmp.lt.f32.partialorder %v397_v44, 0.0004427343 }
  0x87   :  { %v3218_v49 = vsub.f32 %v6864_v24, %v6862_v39  ;;  %6868 = vst [vmem:[#allocation55_spill] sm:$0xff] %v3223_v47  ;;  %6870 = vst [vmem:[#allocation56_spill] sm:$0xff] %v3226_v15  ;;  %v3238_v24 = vsub.f32 %v6875_v11, %v2989_v23  ;;  %v395_v39 = vadd.f32 1.0, %v394_v50  ;;  %2125 = vlog2.f32 %v3226_v15  ;;  %v6885_v11 = vld [vmem:[#allocation74_spill] sm:$0xff]  ;;  %v6888_v21 = vld [vmem:[#allocation13_spill] sm:$0xff] }
  0x88   :  { %6871 = vst [vmem:[#allocation82_spill] sm:$0xff] %v3228_v32  ;;  %6873 = vst [vmem:[#allocation83_spill] sm:$0xff] %v3233_v16  ;;  %v3252_v16 = vpop.eup %2113  ;;  %v3255_v23 = vmul.f32 %v2862_v26, %v386_v28  ;;  %v404_v31 = vadd.f32 1.0, %v403_v59  ;;  %v421_v29 = vmul.f32 -0.5, %v6880_v0  ;;  %2127 = vlog2.f32 %v3250_v62 }
  0x89   :  { %6865 = vst [vmem:[#allocation28_spill] sm:$0xff] %v3218_v49  ;;  %6876 = vst [vmem:[#allocation60_spill] sm:$0xff] %v3238_v24  ;;  %v3263_v24 = vadd.f32 1.0, %v6885_v11  ;;  %v3265_v47 = vpop.eup %2115  ;;  %v430_v49 = vmul.f32 -0.5, %v6885_v11  ;;  %v3270_v54 = vadd.f32 1.0, %v6888_v21  ;;  %v439_v44 = vmul.f32 -0.5, %v6888_v21 }
  0x8a   :  { %6877 = vst [vmem:[#allocation84_spill] sm:$0xff] %v3241_v22  ;;  %6881 = vst [vmem:[#allocation85_spill] sm:$0xff] %v3250_v62  ;;  %v2118_v28 = vpop.eup %2117  ;;  %v3274_v26 = vmul.f32 %v2870_v1, %v395_v39  ;;  %vm3276_vm2 = vcmp.lt.f32.partialorder %v406_v18, 0.0004427343  ;;  %v6891_v59 = vmov 0  ;;  %v413_v38 = vadd.f32 1.0, %v412_v30 }
  0x8b   :  { %6882 = vst [vmem:[#allocation86_spill] sm:$0xff] %v3252_v16  ;;  %6886 = vst [vmem:[#allocation87_spill] sm:$0xff] %v3263_v24  ;;  %v6892_v59 = vsel %vm3276_vm2, 4294967295, %v6891_v59  ;;  %v415_v20 = vand.u32 2147483647, %v6869_v61  ;;  %2129 = vlog2.f32 %v3263_v24  ;;  %v2120_v17 = vpop.eup %2119  ;;  %v422_v39 = vadd.f32 1.0, %v421_v29 }
  0x8c   :  { %6887 = vst [vmem:[#allocation88_spill] sm:$0xff] %v3265_v47  ;;  %6889 = vst [vmem:[#allocation89_spill] sm:$0xff] %v3270_v54  ;;  %2131 = vlog2.f32 %v3270_v54  ;;  %v2122_v57 = vpop.eup %2121  ;;  %v424_v18 = vand.u32 2147483647, %v6880_v0  ;;  %v433_v1 = vand.u32 2147483647, %v6885_v11  ;;  %v3304_v42 = vmul.f32 %v2878_v13, %v404_v31 }
  0x8d   :  { %6890 = vst [vmem:[#allocation90_spill] sm:$0xff] %v3274_v26  ;;  %6893 = vst [vmem:[#allocation91_spill] sm:$0xff] %v6892_v59  ;;  %v3290_v52 = vadd.f32 1.0, %v6896_v58  ;;  %v3292_v9 = vpop.eup %2123  ;;  %v431_v7 = vadd.f32 1.0, %v430_v49  ;;  %v440_v30 = vadd.f32 1.0, %v439_v44  ;;  %2133 = vlog2.f32 %v3284_v14 }
  0x8e   :  { %6895 = vst [vmem:[#allocation92_spill] sm:$0xff] %v3284_v14  ;;  %6898 = vst [vmem:[#allocation94_spill] sm:$0xff] %v3292_v9  ;;  %v442_v6 = vand.u32 2147483647, %v6888_v21  ;;  %v384_v5 = vmul.f32 0.6931472, %v2118_v28  ;;  %v3307_v44 = vmul.f32 %v6869_v61, %v413_v38  ;;  %v3314_v28 = vmul.f32 %v6880_v0, %v422_v39 }
  0x8f   :  { %6897 = vst [vmem:[#allocation93_spill] sm:$0xff] %v3290_v52  ;;  %v451_v4 = vand.u32 2147483647, %v6894_v46  ;;  %2135 = vlog2.f32 %v3290_v52  ;;  %v457_v29 = vmul.f32 -0.5, %v6896_v58  ;;  %v3299_v3 = vmul.f32 0.6931472, %v2120_v17 }
  0x90   :  { %v3301_v55 = vmul.f32 0.6931472, %v2122_v57  ;;  %6901 = vst [vmem:[#allocation97_spill] sm:$0xff] %v3304_v42  ;;  %v449_v49 = vadd.f32 1.0, %v448_v51  ;;  %6902 = vst [vmem:[#allocation98_spill] sm:$0xff] %v3307_v44  ;;  %v6906_v52 = vmov 0  ;;  %v3321_v17 = vmul.f32 %v6885_v11, %v431_v7 }
  0x91   :  { %6899 = vst [vmem:[#allocation95_spill] sm:$0xff] %v3299_v3  ;;  %vm3309_vm3 = vcmp.lt.f32.partialorder %v415_v20, 0.0004427343  ;;  %6905 = vst [vmem:[#allocation99_spill] sm:$0xff] %v3314_v28  ;;  %vm3316_vm4 = vcmp.lt.f32.partialorder %v424_v18, 0.0004427343  ;;  %v2126_v57 = vpop.eup %2125  ;;  %v390_v31 = vsel %vm3243_vm0, %v3255_v23, %v384_v5  ;;  %v3336_v39 = vmul.f32 %v6888_v21, %v440_v30 }
  0x92   :  { %6900 = vst [vmem:[#allocation96_spill] sm:$0xff] %v3301_v55  ;;  %v6907_v52 = vsel %vm3316_vm4, 4294967295, %v6906_v52  ;;  %6909 = vst [vmem:[#allocation101_spill] sm:$0xff] %v3321_v17  ;;  %vm3323_vm5 = vcmp.lt.f32.partialorder %v433_v1, 0.0004427343  ;;  %v6910_v51 = vmov 0  ;;  %v2128_v1 = vpop.eup %2127  ;;  %v3350_v5 = vmul.f32 %v6894_v46, %v449_v49 }
  0x93   :  { %6908 = vst [vmem:[#allocation100_spill] sm:$0xff] %v6907_v52  ;;  %v6911_v51 = vsel %vm3323_vm5, 4294967295, %v6910_v51  ;;  %vm3327_vm6 = vcmp.lt.f32.partialorder %v442_v6, 0.0004427343  ;;  %v6913_v38 = vmov 0  ;;  %6916 = vst [vmem:[#allocation104_spill] sm:$0xff] %v3336_v39 }
  0x94   :  { %6912 = vst [vmem:[#allocation102_spill] sm:$0xff] %v6911_v51  ;;  %v6914_v38 = vsel %vm3327_vm6, 4294967295, %v6913_v38  ;;  %v460_v20 = vand.u32 2147483647, %v6896_v58  ;;  %v458_v18 = vadd.f32 1.0, %v457_v29  ;;  %v6917_v7 = vld [vmem:[#allocation16_spill] sm:$0xff] }
  0x95   :  { %6915 = vst [vmem:[#allocation103_spill] sm:$0xff] %v6914_v38  ;;  %v3339_v11 = vadd.f32 1.0, %v6917_v7  ;;  %6919 = vst [vmem:[#allocation106_spill] sm:$0xff] %v3350_v5  ;;  %vm3352_vm7 = vcmp.lt.f32.partialorder %v451_v4, 0.0004427343  ;;  %v6920_v63 = vmov 0  ;;  %v2130_v30 = vpop.eup %2129 }
  0x96   :  { %v6921_v63 = vsel %vm3352_vm7, 4294967295, %v6920_v63  ;;  %v466_v23 = vmul.f32 -0.5, %v6917_v7  ;;  %v3357_v29 = vmul.f32 0.6931472, %v2126_v57  ;;  %v6924_v6 = vld [vmem:[#allocation17_spill] sm:$0xff]  ;;  %v2132_v0 = vpop.eup %2131  ;;  %v6926_v49 = vmov 0 }
  0x97   :  { %6918 = vst [vmem:[#allocation105_spill] sm:$0xff] %v3339_v11  ;;  %6922 = vst [vmem:[#allocation107_spill] sm:$0xff] %v6921_v63  ;;  %2137 = vlog2.f32 %v3339_v11  ;;  %v3361_v21 = vadd.f32 1.0, %v6924_v6  ;;  %v475_v61 = vmul.f32 -0.5, %v6924_v6  ;;  %vm3364_vm8 = vcmp.lt.f32.partialorder %v460_v20, 0.0004427343  ;;  %v2134_v55 = vpop.eup %2133 }
  0x98   :  { %6923 = vst [vmem:[#allocation108_spill] sm:$0xff] %v3357_v29  ;;  %v6927_v49 = vsel %vm3364_vm8, 4294967295, %v6926_v49  ;;  %v469_v4 = vand.u32 2147483647, %v6917_v7  ;;  %v6929_v46 = vld [vmem:[#allocation18_spill] sm:$0xff]  ;;  %v3373_v57 = vadd.f32 %v390_v31, %v2994_v40  ;;  %v3378_v11 = vmul.f32 %v6896_v58, %v458_v18  ;;  %v6959_v38 = vld [vmem:[#allocation25_spill] sm:$0xff] }
  0x99   :  { %6925 = vst [vmem:[#allocation109_spill] sm:$0xff] %v3361_v21  ;;  %6928 = vst [vmem:[#allocation110_spill] sm:$0xff] %v6927_v49  ;;  %v3370_v13 = vadd.f32 1.0, %v6929_v46  ;;  %v3375_v54 = vmul.f32 0.6931472, %v2128_v1  ;;  %2139 = vlog2.f32 %v3361_v21  ;;  %v484_v20 = vmul.f32 -0.5, %v6929_v46  ;;  %v2136_v40 = vpop.eup %2135 }
  0x9a   :  { %6931 = vst [vmem:[#allocation112_spill] sm:$0xff] %v3373_v57  ;;  %6933 = vst [vmem:[#allocation114_spill] sm:$0xff] %v3378_v11  ;;  %v3382_v42 = vmul.f32 0.6931472, %v2130_v30  ;;  %v467_v59 = vadd.f32 1.0, %v466_v23  ;;  %v3386_v3 = vadd.f32 1.0, %v6935_v35 }
  0x9b   :  { %6930 = vst [vmem:[#allocation111_spill] sm:$0xff] %v3370_v13  ;;  %6932 = vst [vmem:[#allocation113_spill] sm:$0xff] %v3375_v54  ;;  %2141 = vlog2.f32 %v3370_v13  ;;  %v3388_v31 = vmul.f32 0.6931472, %v2132_v0  ;;  %v476_v1 = vadd.f32 1.0, %v475_v61  ;;  %v6938_v57 = vld [vmem:[#allocation20_spill] sm:$0xff] }
  0x9c   :  { %6934 = vst [vmem:[#allocation115_spill] sm:$0xff] %v3382_v42  ;;  %6936 = vst [vmem:[#allocation116_spill] sm:$0xff] %v3386_v3  ;;  %v478_v18 = vand.u32 2147483647, %v6924_v6  ;;  %v3392_v58 = vadd.f32 1.0, %v6938_v57  ;;  %2143 = vlog2.f32 %v3386_v3  ;;  %v493_v13 = vmul.f32 -0.5, %v6935_v35 }
  0x9d   :  { %6937 = vst [vmem:[#allocation117_spill] sm:$0xff] %v3388_v31  ;;  %v487_v23 = vand.u32 2147483647, %v6929_v46  ;;  %v3405_v0 = vmul.f32 0.6931472, %v2134_v55  ;;  %v485_v26 = vadd.f32 1.0, %v484_v20  ;;  %v3419_v29 = vmul.f32 %v6917_v7, %v467_v59 }
  0x9e   :  { %6939 = vst [vmem:[#allocation118_spill] sm:$0xff] %v3392_v58  ;;  %vm3407_vm9 = vcmp.lt.f32.partialorder %v469_v4, 0.0004427343  ;;  %2145 = vlog2.f32 %v3392_v58  ;;  %v3416_v3 = vmul.f32 0.6931472, %v2136_v40  ;;  %v3427_v20 = vmul.f32 %v6924_v6, %v476_v1  ;;  %v6949_v58 = vld [vmem:[#allocation21_spill] sm:$0xff] }
  0x9f   :  { %6940 = vst [vmem:[#allocation119_spill] sm:$0xff] %v3405_v0  ;;  %v496_v55 = vand.u32 2147483647, %v6935_v35  ;;  %vm3429_vm10 = vcmp.lt.f32.partialorder %v478_v18, 0.0004427343  ;;  %v6944_v61 = vmov 0  ;;  %v3447_v18 = vmul.f32 %v6929_v46, %v485_v26 }
  0xa0   :  { %6943 = vst [vmem:[#allocation120_spill] sm:$0xff] %v3416_v3  ;;  %v6945_v61 = vsel %vm3429_vm10, 4294967295, %v6944_v61  ;;  %v502_v40 = vmul.f32 -0.5, %v6938_v57  ;;  %vm3434_vm11 = vcmp.lt.f32.partialorder %v487_v23, 0.0004427343  ;;  %v6946_v30 = vmov 0 }
  0xa1   :  { %v6947_v30 = vsel %vm3434_vm11, 4294967295, %v6946_v30  ;;  %v494_v59 = vadd.f32 1.0, %v493_v13  ;;  %v505_v7 = vand.u32 2147483647, %v6938_v57  ;;  %v3440_v42 = vadd.f32 1.0, %v6949_v58  ;;  %v2138_v4 = vpop.eup %2137  ;;  %6951 = vst [vmem:[#allocation123_spill] sm:$0xff] %v3447_v18 }
  0xa2   :  { %6948 = vst [vmem:[#allocation121_spill] sm:$0xff] %v6947_v30  ;;  %v511_v23 = vmul.f32 -0.5, %v6949_v58  ;;  %v6952_v6 = vld [vmem:[#allocation22_spill] sm:$0xff]  ;;  %vm3457_vm12 = vcmp.lt.f32.partialorder %v496_v55, 0.0004427343  ;;  %v6954_v39 = vmov 0 }
  0xa3   :  { %6950 = vst [vmem:[#allocation122_spill] sm:$0xff] %v3440_v42  ;;  %v3451_v31 = vadd.f32 1.0, %v6952_v6  ;;  %v6955_v39 = vsel %vm3457_vm12, 4294967295, %v6954_v39  ;;  %2147 = vlog2.f32 %v3440_v42  ;;  %v520_v1 = vmul.f32 -0.5, %v6952_v6  ;;  %v6957_v26 = vld [vmem:[#allocation23_spill] sm:$0xff]  ;;  %v2140_v0 = vpop.eup %2139 }
  0xa4   :  { %6956 = vst [vmem:[#allocation125_spill] sm:$0xff] %v6955_v39  ;;  %v3464_v46 = vadd.f32 1.0, %v6957_v26  ;;  %v503_v5 = vadd.f32 1.0, %v502_v40  ;;  %v529_v63 = vmul.f32 -0.5, %v6957_v26  ;;  %v3469_v49 = vadd.f32 1.0, %v6959_v38 }
  0xa5   :  { %6953 = vst [vmem:[#allocation124_spill] sm:$0xff] %v3451_v31  ;;  %2149 = vlog2.f32 %v3451_v31  ;;  %v2142_v55 = vpop.eup %2141  ;;  %v3471_v13 = vmul.f32 0.6931472, %v2138_v4  ;;  %v3474_v3 = vmul.f32 %v6935_v35, %v494_v59  ;;  %vm3476_vm13 = vcmp.lt.f32.partialorder %v505_v7, 0.0004427343  ;;  %v6966_v35 = vld [vmem:[#allocation33_spill] sm:$0xff] }
  0xa6   :  { %6958 = vst [vmem:[#allocation126_spill] sm:$0xff] %v3464_v46  ;;  %6960 = vst [vmem:[#allocation127_spill] sm:$0xff] %v3469_v49  ;;  %v6962_v42 = vmov 0  ;;  %2151 = vlog2.f32 %v3464_v46  ;;  %v512_v40 = vadd.f32 1.0, %v511_v23  ;;  %v514_v31 = vand.u32 2147483647, %v6949_v58  ;;  %v2144_v17 = vpop.eup %2143 }
  0xa7   :  { %6961 = vst [vmem:[#allocation128_spill] sm:$0xff] %v3474_v3  ;;  %v6963_v42 = vsel %vm3476_vm13, 4294967295, %v6962_v42  ;;  %v523_v11 = vand.u32 2147483647, %v6952_v6  ;;  %2153 = vlog2.f32 %v3469_v49  ;;  %v3484_v51 = vmul.f32 0.6931472, %v2140_v0 }
  0xa8   :  { %6964 = vst [vmem:[#allocation129_spill] sm:$0xff] %v6963_v42  ;;  %v521_v4 = vadd.f32 1.0, %v520_v1  ;;  %v538_v59 = vmul.f32 -0.5, %v6959_v38  ;;  %v3488_v7 = vadd.f32 1.0, %v6966_v35  ;;  %v2146_v54 = vpop.eup %2145  ;;  %v3490_v28 = vmul.f32 0.6931472, %v2142_v55 }
  0xa9   :  { %6965 = vst [vmem:[#allocation130_spill] sm:$0xff] %v3484_v51  ;;  %v3493_v23 = vmul.f32 %v6938_v57, %v503_v5  ;;  %v530_v46 = vadd.f32 1.0, %v529_v63  ;;  %v532_v52 = vand.u32 2147483647, %v6957_v26  ;;  %v541_v1 = vand.u32 2147483647, %v6959_v38 }
  0xaa   :  { %6967 = vst [vmem:[#allocation131_spill] sm:$0xff] %v3488_v7  ;;  %6968 = vst [vmem:[#allocation132_spill] sm:$0xff] %v3490_v28  ;;  %2155 = vlog2.f32 %v3488_v7  ;;  %v547_v49 = vmul.f32 -0.5, %v6966_v35  ;;  %v3503_v44 = vmul.f32 0.6931472, %v2144_v17  ;;  %v3506_v55 = vmul.f32 %v6949_v58, %v512_v40 }
  0xab   :  { %6969 = vst [vmem:[#allocation133_spill] sm:$0xff] %v3493_v23  ;;  %vm3508_vm14 = vcmp.lt.f32.partialorder %v514_v31, 0.0004427343  ;;  %v6971_v5 = vmov 0  ;;  %vm3512_vm15 = vcmp.lt.f32.partialorder %v523_v11, 0.0004427343  ;;  %v3523_v17 = vmul.f32 %v6952_v6, %v521_v4 }
  0xac   :  { %6970 = vst [vmem:[#allocation134_spill] sm:$0xff] %v3503_v44  ;;  %v6972_v5 = vsel %vm3508_vm14, 4294967295, %v6971_v5  ;;  %v6973_v63 = vmov 0  ;;  %v3520_v57 = vmul.f32 0.6931472, %v2146_v54  ;;  %v539_v40 = vadd.f32 1.0, %v538_v59 }
  0xad   :  { %v6974_v63 = vsel %vm3512_vm15, 4294967295, %v6973_v63  ;;  %v3530_v11 = vmul.f32 %v6957_v26, %v530_v46  ;;  %vm3532_vm0 = vcmp.lt.f32.partialorder %v532_v52, 0.0004427343  ;;  %v6977_v58 = vmov 0  ;;  %v2148_v54 = vpop.eup %2147 }
  0xae   :  { %6975 = vst [vmem:[#allocation135_spill] sm:$0xff] %v3520_v57  ;;  %v6978_v58 = vsel %vm3532_vm0, 4294967295, %v6977_v58  ;;  %v3537_v0 = vadd.f32 1.0, %v3001_v56  ;;  %vm3539_vm10 = vcmp.lt.f32.partialorder %v541_v1, 0.0004427343  ;;  %v6980_v4 = vmov 0 }
  0xaf   :  { %6976 = vst [vmem:[#allocation136_spill] sm:$0xff] %v3530_v11  ;;  %v6981_v4 = vsel %vm3539_vm10, 4294967295, %v6980_v4  ;;  %v548_v59 = vadd.f32 1.0, %v547_v49  ;;  %v556_v6 = vmul.f32 -0.5, %v3001_v56  ;;  %v3545_v31 = vadd.f32 1.0, %v3019_v43  ;;  %v2150_v46 = vpop.eup %2149 }
  0xb0   :  { %6979 = vst [vmem:[#allocation137_spill] sm:$0xff] %v3537_v0  ;;  %6982 = vst [vmem:[#allocation138_spill] sm:$0xff] %v6981_v4  ;;  %v550_v26 = vand.u32 2147483647, %v6966_v35  ;;  %2157 = vlog2.f32 %v3537_v0  ;;  %v3554_v1 = vadd.f32 1.0, %v3037_v34  ;;  %v2152_v7 = vpop.eup %2151  ;;  %v3561_v28 = vmul.f32 %v6959_v38, %v539_v40 }
  0xb1   :  { %6983 = vst [vmem:[#allocation139_spill] sm:$0xff] %v3545_v31  ;;  %2159 = vlog2.f32 %v3545_v31  ;;  %v565_v52 = vmul.f32 -0.5, %v3019_v43  ;;  %v2154_v44 = vpop.eup %2153  ;;  %v3565_v3 = vmul.f32 0.6931472, %v2148_v54  ;;  %v574_v0 = vmul.f32 -0.5, %v3037_v34 }
  0xb2   :  { %6984 = vst [vmem:[#allocation140_spill] sm:$0xff] %v3554_v1  ;;  %6985 = vst [vmem:[#allocation141_spill] sm:$0xff] %v3561_v28  ;;  %2161 = vlog2.f32 %v3554_v1  ;;  %v3570_v39 = vadd.f32 1.0, %v3055_v19  ;;  %v3572_v18 = vmul.f32 0.6931472, %v2150_v46  ;;  %v557_v49 = vadd.f32 1.0, %v556_v6 }
  0xb3   :  { %v559_v40 = vand.u32 2147483647, %v3001_v56  ;;  %v583_v38 = vmul.f32 -0.5, %v3055_v19  ;;  %v3576_v31 = vmul.f32 0.6931472, %v2152_v7  ;;  %v6988_v57 = vmov 0 }
  0xb4   :  { %6986 = vst [vmem:[#allocation142_spill] sm:$0xff] %v3570_v39  ;;  %vm3578_vm13 = vcmp.lt.f32.partialorder %v550_v26, 0.0004427343  ;;  %v568_v54 = vand.u32 2147483647, %v3019_v43  ;;  %2163 = vlog2.f32 %v3570_v39  ;;  %v2156_v1 = vpop.eup %2155  ;;  %v3587_v46 = vmul.f32 %v6966_v35, %v548_v59 }
  0xb5   :  { %6987 = vst [vmem:[#allocation143_spill] sm:$0xff] %v3576_v31  ;;  %v6989_v57 = vsel %vm3578_vm13, 4294967295, %v6988_v57  ;;  %v3584_v23 = vmul.f32 0.6931472, %v2154_v44  ;;  %v566_v6 = vadd.f32 1.0, %v565_v52  ;;  %v575_v7 = vadd.f32 1.0, %v574_v0 }
  0xb6   :  { %6990 = vst [vmem:[#allocation144_spill] sm:$0xff] %v6989_v57  ;;  %6992 = vst [vmem:[#allocation146_spill] sm:$0xff] %v3587_v46  ;;  %v577_v42 = vand.u32 2147483647, %v3037_v34  ;;  %v586_v30 = vand.u32 2147483647, %v3055_v19  ;;  %v3603_v59 = vmul.f32 %v3001_v56, %v557_v49 }
  0xb7   :  { %6991 = vst [vmem:[#allocation145_spill] sm:$0xff] %v3584_v23  ;;  %v3596_v51 = vadd.f32 1.0, %v3073_v37  ;;  %vm3605_vm12 = vcmp.lt.f32.partialorder %v559_v40, 0.0004427343  ;;  %v6994_v52 = vmov 0  ;;  %v584_v35 = vadd.f32 1.0, %v583_v38 }
  0xb8   :  { %v6995_v52 = vsel %vm3605_vm12, 4294967295, %v6994_v52  ;;  %v3613_v26 = vmul.f32 0.6931472, %v2156_v1  ;;  %vm3615_vm14 = vcmp.lt.f32.partialorder %v568_v54, 0.0004427343  ;;  %v6998_v39 = vmov 0 }
  0xb9   :  { %6993 = vst [vmem:[#allocation147_spill] sm:$0xff] %v3596_v51  ;;  %6996 = vst [vmem:[#allocation148_spill] sm:$0xff] %v6995_v52  ;;  %v6999_v39 = vsel %vm3615_vm14, 4294967295, %v6998_v39  ;;  %2165 = vlog2.f32 %v3596_v51  ;;  %v592_v49 = vmul.f32 -0.5, %v3073_v37  ;;  %v3626_v40 = vmul.f32 %v3019_v43, %v566_v6 }
  0xba   :  { %6997 = vst [vmem:[#allocation149_spill] sm:$0xff] %v3613_v26  ;;  %7000 = vst [vmem:[#allocation150_spill] sm:$0xff] %v6999_v39  ;;  %vm3628_vm15 = vcmp.lt.f32.partialorder %v577_v42, 0.0004427343  ;;  %v7002_v0 = vmov 0  ;;  %v3633_v1 = vadd.f32 1.0, %v3091_v25  ;;  %v2158_v54 = vpop.eup %2157  ;;  %v3636_v44 = vmul.f32 %v3037_v34, %v575_v7 }
  0xbb   :  { %7001 = vst [vmem:[#allocation151_spill] sm:$0xff] %v3626_v40  ;;  %v7003_v0 = vsel %vm3628_vm15, 4294967295, %v7002_v0  ;;  %vm3638_vm0 = vcmp.lt.f32.partialorder %v586_v30, 0.0004427343  ;;  %v7007_v56 = vmov 0  ;;  %v601_v6 = vmul.f32 -0.5, %v3091_v25  ;;  %v2160_v43 = vpop.eup %2159 }
  0xbc   :  { %7004 = vst [vmem:[#allocation152_spill] sm:$0xff] %v7003_v0  ;;  %7005 = vst [vmem:[#allocation153_spill] sm:$0xff] %v3633_v1  ;;  %v7008_v56 = vsel %vm3638_vm0, 4294967295, %v7007_v56  ;;  %v595_v38 = vand.u32 2147483647, %v3073_v37  ;;  %v3645_v42 = vadd.f32 1.0, %v3109_v53  ;;  %v3648_v51 = vmul.f32 %v3055_v19, %v584_v35  ;;  %v2162_v34 = vpop.eup %2161 }
  0xbd   :  { %7006 = vst [vmem:[#allocation154_spill] sm:$0xff] %v3636_v44  ;;  %7009 = vst [vmem:[#allocation155_spill] sm:$0xff] %v7008_v56  ;;  %2167 = vlog2.f32 %v3633_v1  ;;  %v610_v7 = vmul.f32 -0.5, %v3109_v53  ;;  %v3653_v30 = vadd.f32 1.0, %v3125_v36  ;;  %v593_v28 = vadd.f32 1.0, %v592_v49 }
  0xbe   :  { %7010 = vst [vmem:[#allocation156_spill] sm:$0xff] %v3645_v42  ;;  %7011 = vst [vmem:[#allocation157_spill] sm:$0xff] %v3648_v51  ;;  %v604_v4 = vand.u32 2147483647, %v3091_v25  ;;  %2169 = vlog2.f32 %v3645_v42  ;;  %v3661_v35 = vmul.f32 0.6931472, %v2158_v54  ;;  %v2164_v31 = vpop.eup %2163 }
  0xbf   :  { %7012 = vst [vmem:[#allocation158_spill] sm:$0xff] %v3653_v30  ;;  %2171 = vlog2.f32 %v3653_v30  ;;  %v619_v19 = vmul.f32 -0.5, %v3125_v36  ;;  %v3666_v1 = vadd.f32 1.0, %v3141_v10  ;;  %vm3668_vm10 = vcmp.lt.f32.partialorder %v595_v38, 0.0004427343 }
  0xc0   :  { %v7014_v11 = vmov 0  ;;  %v602_v23 = vadd.f32 1.0, %v601_v6  ;;  %v613_v49 = vand.u32 2147483647, %v3109_v53  ;;  %v3674_v26 = vadd.f32 1.0, %v3153_v45 }
  0xc1   :  { %7013 = vst [vmem:[#allocation159_spill] sm:$0xff] %v3666_v1  ;;  %v7015_v11 = vsel %vm3668_vm10, 4294967295, %v7014_v11  ;;  %v3676_v54 = vmul.f32 0.6931472, %v2160_v43  ;;  %v3678_v42 = vmul.f32 0.6931472, %v2162_v34  ;;  %2173 = vlog2.f32 %v3666_v1 }
  0xc2   :  { %7016 = vst [vmem:[#allocation160_spill] sm:$0xff] %v7015_v11  ;;  %7017 = vst [vmem:[#allocation161_spill] sm:$0xff] %v3674_v26  ;;  %v611_v30 = vadd.f32 1.0, %v610_v7  ;;  %v3682_v46 = vmul.f32 %v3073_v37, %v593_v28  ;;  %v622_v38 = vand.u32 2147483647, %v3125_v36  ;;  %v628_v57 = vmul.f32 -0.5, %v3141_v10 }
  0xc3   :  { %7018 = vst [vmem:[#allocation162_spill] sm:$0xff] %v3676_v54  ;;  %7019 = vst [vmem:[#allocation163_spill] sm:$0xff] %v3678_v42  ;;  %2175 = vlog2.f32 %v3674_v26  ;;  %v3691_v6 = vmul.f32 0.6931472, %v2164_v31  ;;  %vm3693_vm13 = vcmp.lt.f32.partialorder %v604_v4, 0.0004427343  ;;  %v2166_v28 = vpop.eup %2165  ;;  %v3698_v37 = vmul.f32 %v3091_v25, %v602_v23 }
  0xc4   :  { %v7021_v34 = vmov 0  ;;  %v620_v7 = vadd.f32 1.0, %v619_v19  ;;  %vm3700_vm11 = vcmp.lt.f32.partialorder %v613_v49, 0.0004427343  ;;  %v7023_v1 = vmov 0 }
  0xc5   :  { %7020 = vst [vmem:[#allocation164_spill] sm:$0xff] %v3691_v6  ;;  %v7022_v34 = vsel %vm3693_vm13, 4294967295, %v7021_v34  ;;  %v7024_v1 = vsel %vm3700_vm11, 4294967295, %v7023_v1  ;;  %v631_v26 = vand.u32 2147483647, %v3141_v10  ;;  %v637_v52 = vmul.f32 -0.5, %v3153_v45 }
  0xc6   :  { %v3715_v23 = vmul.f32 %v3109_v53, %v611_v30  ;;  %v640_v4 = vand.u32 2147483647, %v3153_v45  ;;  %vm3718_vm12 = vcmp.lt.f32.partialorder %v622_v38, 0.0004427343  ;;  %v7025_v49 = vmov 0 }
  0xc7   :  { %v7026_v49 = vsel %vm3718_vm12, 4294967295, %v7025_v49  ;;  %v629_v43 = vadd.f32 1.0, %v628_v57  ;;  %v3723_v25 = vadd.f32 1.0, %v3171_v60  ;;  %v646_v31 = vmul.f32 -0.5, %v3171_v60  ;;  %v2168_v54 = vpop.eup %2167 }
  0xc8   :  { %v3730_v30 = vmul.f32 0.6931472, %v2166_v28  ;;  %v3733_v53 = vmul.f32 %v3125_v36, %v620_v7  ;;  %v3736_v38 = vadd.f32 1.0, %v3185_v27  ;;  %v2170_v57 = vpop.eup %2169  ;;  %vm3738_vm15 = vcmp.lt.f32.partialorder %v631_v26, 0.0004427343 }
  0xc9   :  { %7027 = vst [vmem:[#allocation165_spill] sm:$0xff] %v3723_v25  ;;  %v7030_v42 = vmov 0  ;;  %v638_v44 = vadd.f32 1.0, %v637_v52  ;;  %2177 = vlog2.f32 %v3723_v25  ;;  %v655_v0 = vmul.f32 -0.5, %v3185_v27  ;;  %v2172_v56 = vpop.eup %2171 }
  0xca   :  { %7028 = vst [vmem:[#allocation166_spill] sm:$0xff] %v3733_v53  ;;  %7029 = vst [vmem:[#allocation167_spill] sm:$0xff] %v3736_v38  ;;  %v7031_v42 = vsel %vm3738_vm15, 4294967295, %v7030_v42  ;;  %vm3744_vm0 = vcmp.lt.f32.partialorder %v640_v4, 0.0004427343  ;;  %v7033_v28 = vmov 0  ;;  %2179 = vlog2.f32 %v3736_v38 }
  0xcb   :  { %7032 = vst [vmem:[#allocation168_spill] sm:$0xff] %v7031_v42  ;;  %v7034_v28 = vsel %vm3744_vm0, 4294967295, %v7033_v28  ;;  %v3750_v7 = vadd.f32 1.0, %v3199_v48  ;;  %v664_v26 = vmul.f32 -0.5, %v3199_v48  ;;  %v3753_v19 = vmul.f32 0.6931472, %v2168_v54  ;;  %v2174_v6 = vpop.eup %2173 }
  0xcc   :  { %7035 = vst [vmem:[#allocation169_spill] sm:$0xff] %v7034_v28  ;;  %v3756_v52 = vmul.f32 %v3141_v10, %v629_v43  ;;  %v647_v36 = vadd.f32 1.0, %v646_v31  ;;  %v649_v25 = vand.u32 2147483647, %v3171_v60  ;;  %v3763_v38 = vmul.f32 0.6931472, %v2170_v57 }
  0xcd   :  { %7036 = vst [vmem:[#allocation170_spill] sm:$0xff] %v3750_v7  ;;  %2181 = vlog2.f32 %v3750_v7  ;;  %v3767_v51 = vadd.f32 1.0, %v3208_v8  ;;  %v2176_v54 = vpop.eup %2175  ;;  %v3769_v40 = vmul.f32 0.6931472, %v2172_v56  ;;  %v3772_v43 = vmul.f32 %v3153_v45, %v638_v44 }
  0xce   :  { %7037 = vst [vmem:[#allocation171_spill] sm:$0xff] %v3756_v52  ;;  %v656_v31 = vadd.f32 1.0, %v655_v0  ;;  %v658_v10 = vand.u32 2147483647, %v3185_v27  ;;  %v665_v39 = vadd.f32 1.0, %v664_v26  ;;  %v3778_v57 = vadd.f32 1.0, %v3228_v32 }
  0xcf   :  { %7038 = vst [vmem:[#allocation172_spill] sm:$0xff] %v3767_v51  ;;  %7039 = vst [vmem:[#allocation173_spill] sm:$0xff] %v3769_v40  ;;  %v667_v11 = vand.u32 2147483647, %v3199_v48  ;;  %2183 = vlog2.f32 %v3767_v51  ;;  %v3784_v4 = vmul.f32 0.6931472, %v2174_v6  ;;  %v3787_v44 = vmul.f32 %v3171_v60, %v647_v36 }
  0xd0   :  { %7040 = vst [vmem:[#allocation174_spill] sm:$0xff] %v3772_v43  ;;  %7041 = vst [vmem:[#allocation175_spill] sm:$0xff] %v3778_v57  ;;  %vm3789_vm10 = vcmp.lt.f32.partialorder %v649_v25, 0.0004427343  ;;  %v673_v26 = vmul.f32 -0.5, %v3208_v8  ;;  %2185 = vlog2.f32 %v3778_v57  ;;  %v3803_v36 = vmul.f32 %v3185_v27, %v656_v31  ;;  %v7252_v25 = vld [vmem:[#allocation80_spill] sm:$0xff] }
  0xd1   :  { %7042 = vst [vmem:[#allocation176_spill] sm:$0xff] %v3784_v4  ;;  %v3798_v51 = vmul.f32 0.6931472, %v2176_v54  ;;  %v676_v56 = vand.u32 2147483647, %v3208_v8  ;;  %v682_v6 = vmul.f32 -0.5, %v3228_v32  ;;  %v3818_v45 = vmul.f32 %v3199_v48, %v665_v39 }
  0xd2   :  { %vm3805_vm13 = vcmp.lt.f32.partialorder %v658_v10, 0.0004427343  ;;  %v3811_v60 = vadd.f32 1.0, %v3241_v22  ;;  %vm3820_vm11 = vcmp.lt.f32.partialorder %v667_v11, 0.0004427343  ;;  %v691_v10 = vmul.f32 -0.5, %v3241_v22 }
  0xd3   :  { %7045 = vst [vmem:[#allocation177_spill] sm:$0xff] %v3798_v51  ;;  %v2178_v27 = vpop.eup %2177  ;;  %v674_v7 = vadd.f32 1.0, %v673_v26  ;;  %v3831_v54 = vadd.f32 1.0, %v3252_v16  ;;  %vm3837_vm12 = vcmp.lt.f32.partialorder %v676_v56, 0.0004427343  ;;  %v700_v57 = vmul.f32 -0.5, %v3252_v16 }
  0xd4   :  { %7048 = vst [vmem:[#allocation178_spill] sm:$0xff] %v3811_v60  ;;  %2187 = vlog2.f32 %v3811_v60  ;;  %v2180_v39 = vpop.eup %2179  ;;  %v685_v40 = vand.u32 2147483647, %v3228_v32  ;;  %v3844_v26 = vadd.f32 1.0, %v3265_v47  ;;  %v683_v60 = vadd.f32 1.0, %v682_v6  ;;  %v7257_v31 = vld [vmem:[#allocation52_spill] sm:$0xff] }
  0xd5   :  { %7051 = vst [vmem:[#allocation179_spill] sm:$0xff] %v3831_v54  ;;  %v694_v4 = vand.u32 2147483647, %v3241_v22  ;;  %2189 = vlog2.f32 %v3831_v54  ;;  %v3849_v52 = vadd.f32 1.0, %v3292_v9  ;;  %v3851_v56 = vmul.f32 0.6931472, %v2178_v27 }
  0xd6   :  { %7054 = vst [vmem:[#allocation180_spill] sm:$0xff] %v3844_v26  ;;  %v692_v51 = vadd.f32 1.0, %v691_v10  ;;  %2191 = vlog2.f32 %v3844_v26  ;;  %v709_v43 = vmul.f32 -0.5, %v3265_v47  ;;  %v3855_v28 = vmul.f32 0.6931472, %v2180_v39  ;;  %v7262_v48 = vld [vmem:[#allocation64_spill] sm:$0xff] }
  0xd7   :  { %7055 = vst [vmem:[#allocation181_spill] sm:$0xff] %v3849_v52  ;;  %v2182_v11 = vpop.eup %2181  ;;  %v3858_v42 = vmul.f32 %v3208_v8, %v674_v7  ;;  %v703_v6 = vand.u32 2147483647, %v3252_v16  ;;  %2193 = vlog2.f32 %v3849_v52  ;;  %vm3862_vm0 = vcmp.lt.f32.partialorder %v685_v40, 0.0004427343 }
  0xd8   :  { %v701_v27 = vadd.f32 1.0, %v700_v57  ;;  %v718_v10 = vmul.f32 -0.5, %v3292_v9  ;;  %2195 = vrcp.f32 %v3123_v41  ;;  %v3868_v26 = vmul.f32 0.6931472, %v2182_v11 }
  0xd9   :  { %v2184_v54 = vpop.eup %2183  ;;  %v3871_v39 = vmul.f32 %v3228_v32, %v683_v60  ;;  %vm3873_vm15 = vcmp.lt.f32.partialorder %v694_v4, 0.0004427343  ;;  %2197 = vrcp.f32 %v3139_v12  ;;  %v3883_v8 = vmul.f32 %v3241_v22, %v692_v51 }
  0xda   :  { %7058 = vst [vmem:[#allocation182_spill] sm:$0xff] %v3868_v26  ;;  %v2186_v40 = vpop.eup %2185  ;;  %v710_v11 = vadd.f32 1.0, %v709_v43  ;;  %2199 = vrcp.f32 %v3151_v2  ;;  %v3890_v4 = vmul.f32 0.6931472, %v2184_v54  ;;  %vm3892_vm14 = vcmp.lt.f32.partialorder %v703_v6, 0.0004427343 }
  0xdb   :  { %2201 = vrcp.f32 %v3226_v15  ;;  %v3898_v57 = vmul.f32 %v3252_v16, %v701_v27  ;;  %v712_v51 = vand.u32 2147483647, %v3265_v47  ;;  %v719_v43 = vadd.f32 1.0, %v718_v10  ;;  %v7063_v10 = vld [vmem:[#allocation90_spill] sm:$0xff]  ;;  %v7064_v16 = vld [vmem:[#allocation95_spill] sm:$0xff]  ;;  %v7070_v54 = vld [vmem:[#allocation96_spill] sm:$0xff] }
  0xdc   :  { %2203 = vrcp.f32 %v3250_v62  ;;  %v3906_v6 = vmul.f32 0.6931472, %v2186_v40  ;;  %v721_v60 = vand.u32 2147483647, %v3292_v9  ;;  %v3911_v27 = vmul.f32 %v3265_v47, %v710_v11  ;;  %v7067_v15 = vld [vmem:[#allocation38_spill] sm:$0xff]  ;;  %v7069_v40 = vld [vmem:[#allocation97_spill] sm:$0xff] }
  0xdd   :  { %2205 = vrcp.f32 %v3263_v24  ;;  %v7065_v52 = vsel %vm3257_vm1, %v7063_v10, %v7064_v16  ;;  %v7071_v12 = vsel %vm3276_vm2, %v7069_v40, %v7070_v54  ;;  %v7073_v24 = vld [vmem:[#allocation89_spill] sm:$0xff]  ;;  %v7076_v16 = vld [vmem:[#allocation108_spill] sm:$0xff]  ;;  %v7079_v10 = vld [vmem:[#allocation46_spill] sm:$0xff]  ;;  %vm3953_vm1 = vcmp.lt.f32.partialorder %v712_v51, 0.0004427343 }
  0xde   :  { %v2188_v22 = vpop.eup %2187  ;;  %v3919_v62 = vadd.f32 %v7065_v52, %v2999_v33  ;;  %v3927_v26 = vadd.f32 %v7071_v12, %v7067_v15  ;;  %2207 = vrcp.f32 %v7073_v24  ;;  %v7074_v47 = vld [vmem:[#allocation41_spill] sm:$0xff]  ;;  %v7075_v33 = vld [vmem:[#allocation98_spill] sm:$0xff]  ;;  %v7081_v12 = vld [vmem:[#allocation99_spill] sm:$0xff]  ;;  %vm4013_vm2 = vcmp.lt.f32.partialorder %v721_v60, 0.0004427343 }
  0xdf   :  { %v2190_v11 = vpop.eup %2189  ;;  %v7077_v52 = vsel %vm3309_vm3, %v7075_v33, %v7076_v16  ;;  %v7082_v15 = vld [vmem:[#allocation113_spill] sm:$0xff]  ;;  %v3951_v50 = vmul.f32 0.6931472, %v2188_v22  ;;  %v7088_v33 = vld [vmem:[#allocation51_spill] sm:$0xff]  ;;  %v687_v22 = vsel %vm3862_vm0, %v3871_v39, %v3906_v6  ;;  %vm7121_vm3 = vnez %v6945_v61 }
  0xe0   :  { %7066 = vst [vmem:[#allocation90_spill] sm:$0xff] %v3919_v62  ;;  %7072 = vst [vmem:[#allocation95_spill] sm:$0xff] %v3927_v26  ;;  %v3940_v2 = vadd.f32 %v7077_v52, %v7074_v47  ;;  %v7083_v40 = vsel %vm3316_vm4, %v7081_v12, %v7082_v15  ;;  %v7085_v62 = vld [vmem:[#allocation92_spill] sm:$0xff]  ;;  %v2192_v24 = vpop.eup %2191  ;;  %v3958_v47 = vmul.f32 %v3292_v9, %v719_v43  ;;  %v7090_v52 = vld [vmem:[#allocation101_spill] sm:$0xff]  ;;  %v3992_v39 = vmul.f32 0.6931472, %v2190_v11 }
  0xe1   :  { %v3948_v26 = vadd.f32 %v7083_v40, %v7079_v10  ;;  %2209 = vrcp.f32 %v7085_v62  ;;  %v7091_v54 = vld [vmem:[#allocation115_spill] sm:$0xff]  ;;  %v7094_v15 = vld [vmem:[#allocation93_spill] sm:$0xff]  ;;  %v2194_v40 = vpop.eup %2193  ;;  %v7097_v43 = vld [vmem:[#allocation104_spill] sm:$0xff] }
  0xe2   :  { %7078 = vst [vmem:[#allocation38_spill] sm:$0xff] %v3940_v2  ;;  %v7092_v12 = vsel %vm3323_vm5, %v7090_v52, %v7091_v54  ;;  %2211 = vrcp.f32 %v7094_v15  ;;  %v7095_v51 = vld [vmem:[#allocation57_spill] sm:$0xff]  ;;  %v7101_v62 = vld [vmem:[#allocation24_spill] sm:$0xff]  ;;  %v7104_v54 = vld [vmem:[#allocation119_spill] sm:$0xff]  ;;  %v3990_v53 = vpop.eup %2195 }
  0xe3   :  { %7084 = vst [vmem:[#allocation91_spill] sm:$0xff] %v3948_v26  ;;  %v3966_v10 = vadd.f32 %v7092_v12, %v7088_v33  ;;  %v7098_v2 = vld [vmem:[#allocation117_spill] sm:$0xff]  ;;  %v7103_v33 = vld [vmem:[#allocation106_spill] sm:$0xff]  ;;  %v7114_v52 = vld [vmem:[#allocation12_spill] sm:$0xff]  ;;  %v4011_v11 = vpop.eup %2197 }
  0xe4   :  { %v7099_v9 = vsel %vm3327_vm6, %v7097_v43, %v7098_v2  ;;  %v7105_v12 = vsel %vm3352_vm7, %v7103_v33, %v7104_v54  ;;  %v7107_v15 = vld [vmem:[#allocation105_spill] sm:$0xff]  ;;  %v7108_v26 = vld [vmem:[#allocation26_spill] sm:$0xff]  ;;  %v7120_v6 = vld [vmem:[#allocation27_spill] sm:$0xff]  ;;  %vm7148_vm7 = vnez %v6972_v5 }
  0xe5   :  { %7093 = vst [vmem:[#allocation97_spill] sm:$0xff] %v3966_v10  ;;  %v3979_v16 = vadd.f32 %v7099_v9, %v7095_v51  ;;  %v3987_v10 = vadd.f32 %v7105_v12, %v7101_v62  ;;  %2213 = vrcp.f32 %v7107_v15  ;;  %v7110_v2 = vld [vmem:[#allocation114_spill] sm:$0xff]  ;;  %v7111_v9 = vld [vmem:[#allocation120_spill] sm:$0xff]  ;;  %v7115_v62 = vsel %vm3407_vm9, %v3419_v29, %v3471_v13  ;;  %v7117_v54 = vld [vmem:[#allocation109_spill] sm:$0xff] }
  0xe6   :  { %v7112_v51 = vsel %vm3364_vm8, %v7110_v2, %v7111_v9  ;;  %v4008_v33 = vadd.f32 %v7115_v62, %v7114_v52  ;;  %2215 = vrcp.f32 %v7117_v54  ;;  %v7125_v9 = vld [vmem:[#allocation30_spill] sm:$0xff]  ;;  %v7126_v29 = vld [vmem:[#allocation121_spill] sm:$0xff]  ;;  %v7128_v13 = vld [vmem:[#allocation123_spill] sm:$0xff]  ;;  %vm7153_vm8 = vnez %v6974_v63 }
  0xe7   :  { %7100 = vst [vmem:[#allocation96_spill] sm:$0xff] %v3979_v16  ;;  %7106 = vst [vmem:[#allocation41_spill] sm:$0xff] %v3987_v10  ;;  %v4000_v43 = vadd.f32 %v7112_v51, %v7108_v26  ;;  %v7122_v26 = vld [vmem:[#allocation130_spill] sm:$0xff]  ;;  %vm7127_vm4 = vnez %v7126_v29  ;;  %v7129_v51 = vld [vmem:[#allocation132_spill] sm:$0xff]  ;;  %vm7157_vm9 = vnez %v6978_v58  ;;  %v705_v58 = vsel %vm3892_vm14, %v3898_v57, %v3992_v39 }
  0xe8   :  { %7116 = vst [vmem:[#allocation108_spill] sm:$0xff] %v4008_v33  ;;  %v7123_v2 = vsel %vm7121_vm3, %v3427_v20, %v7122_v26  ;;  %v7130_v52 = vsel %vm7127_vm4, %v7128_v13, %v7129_v51  ;;  %v7132_v60 = vld [vmem:[#allocation31_spill] sm:$0xff]  ;;  %v7133_v33 = vld [vmem:[#allocation125_spill] sm:$0xff]  ;;  %v7136_v10 = vld [vmem:[#allocation134_spill] sm:$0xff]  ;;  %v4042_v20 = vpop.eup %2199  ;;  %v708_v57 = vmul.f32 0.6931472, %v2192_v24 }
  0xe9   :  { %7113 = vst [vmem:[#allocation98_spill] sm:$0xff] %v4000_v43  ;;  %v4023_v21 = vadd.f32 %v7123_v2, %v7120_v6  ;;  %v4031_v62 = vadd.f32 %v7130_v52, %v7125_v9  ;;  %vm7134_vm5 = vnez %v7133_v33  ;;  %v7135_v43 = vld [vmem:[#allocation128_spill] sm:$0xff]  ;;  %v7139_v54 = vld [vmem:[#allocation111_spill] sm:$0xff]  ;;  %v696_v6 = vsel %vm3873_vm15, %v3883_v8, %v3951_v50  ;;  %v7141_v2 = vld [vmem:[#allocation129_spill] sm:$0xff]  ;;  %v4065_v7 = vpop.eup %2201 }
  0xea   :  { %v7137_v16 = vsel %vm7134_vm5, %v7135_v43, %v7136_v10  ;;  %2217 = vrcp.f32 %v7139_v54  ;;  %v7140_v26 = vld [vmem:[#allocation32_spill] sm:$0xff]  ;;  %vm7142_vm6 = vnez %v7141_v2  ;;  %v7143_v9 = vld [vmem:[#allocation133_spill] sm:$0xff]  ;;  %v7144_v29 = vld [vmem:[#allocation135_spill] sm:$0xff]  ;;  %v7154_v50 = vsel %vm7153_vm8, %v3523_v17, %v3572_v18  ;;  %v4092_v18 = vpop.eup %2203 }
  0xeb   :  { %7124 = vst [vmem:[#allocation46_spill] sm:$0xff] %v4023_v21  ;;  %7131 = vst [vmem:[#allocation100_spill] sm:$0xff] %v4031_v62  ;;  %v4039_v61 = vadd.f32 %v7137_v16, %v7132_v60  ;;  %v7145_v33 = vsel %vm7142_vm6, %v7143_v9, %v7144_v29  ;;  %v7147_v10 = vld [vmem:[#allocation35_spill] sm:$0xff]  ;;  %v7149_v16 = vsel %vm7148_vm7, %v3506_v55, %v3565_v3  ;;  %v7151_v51 = vld [vmem:[#allocation116_spill] sm:$0xff]  ;;  %v4115_v32 = vpop.eup %2205  ;;  %vm7211_vm7 = vnez %v7022_v34 }
  0xec   :  { %v4054_v13 = vadd.f32 %v7145_v33, %v7140_v26  ;;  %v4062_v43 = vadd.f32 %v7149_v16, %v7147_v10  ;;  %2219 = vrcp.f32 %v7151_v51  ;;  %v7152_v8 = vld [vmem:[#allocation36_spill] sm:$0xff]  ;;  %v7156_v60 = vld [vmem:[#allocation39_spill] sm:$0xff]  ;;  %v7162_v2 = vld [vmem:[#allocation42_spill] sm:$0xff]  ;;  %vm7216_vm8 = vnez %v7024_v1 }
  0xed   :  { %7138 = vst [vmem:[#allocation99_spill] sm:$0xff] %v4039_v61  ;;  %v4073_v52 = vadd.f32 %v7154_v50, %v7152_v8  ;;  %v7158_v5 = vld [vmem:[#allocation136_spill] sm:$0xff]  ;;  %v7159_v26 = vld [vmem:[#allocation143_spill] sm:$0xff]  ;;  %v7163_v9 = vld [vmem:[#allocation138_spill] sm:$0xff] }
  0xee   :  { %7146 = vst [vmem:[#allocation113_spill] sm:$0xff] %v4054_v13  ;;  %7150 = vst [vmem:[#allocation51_spill] sm:$0xff] %v4062_v43  ;;  %v7160_v3 = vsel %vm7157_vm9, %v7158_v5, %v7159_v26  ;;  %vm7164_vm15 = vnez %v7163_v9  ;;  %v7165_v29 = vld [vmem:[#allocation141_spill] sm:$0xff]  ;;  %v7169_v16 = vld [vmem:[#allocation118_spill] sm:$0xff]  ;;  %vm7220_vm9 = vnez %v7026_v49 }
  0xef   :  { %7155 = vst [vmem:[#allocation102_spill] sm:$0xff] %v4073_v52  ;;  %v4081_v55 = vadd.f32 %v7160_v3, %v7156_v60  ;;  %v7166_v33 = vld [vmem:[#allocation145_spill] sm:$0xff]  ;;  %2221 = vrcp.f32 %v7169_v16  ;;  %v7170_v17 = vld [vmem:[#allocation43_spill] sm:$0xff]  ;;  %v7171_v8 = vld [vmem:[#allocation144_spill] sm:$0xff] }
  0xf0   :  { %v7167_v10 = vsel %vm7164_vm15, %v7165_v29, %v7166_v33  ;;  %vm7172_vm0 = vnez %v7171_v8  ;;  %v7173_v50 = vld [vmem:[#allocation146_spill] sm:$0xff]  ;;  %v7174_v60 = vld [vmem:[#allocation149_spill] sm:$0xff]  ;;  %v7177_v3 = vld [vmem:[#allocation44_spill] sm:$0xff] }
  0xf1   :  { %7161 = vst [vmem:[#allocation101_spill] sm:$0xff] %v4081_v55  ;;  %v4089_v63 = vadd.f32 %v7167_v10, %v7162_v2  ;;  %v7175_v5 = vsel %vm7172_vm0, %v7173_v50, %v7174_v60  ;;  %v7178_v2 = vld [vmem:[#allocation148_spill] sm:$0xff]  ;;  %v7182_v33 = vld [vmem:[#allocation122_spill] sm:$0xff]  ;;  %v7183_v39 = vld [vmem:[#allocation49_spill] sm:$0xff] }
  0xf2   :  { %v4104_v26 = vadd.f32 %v7175_v5, %v7170_v17  ;;  %vm7179_vm3 = vnez %v7178_v2  ;;  %2223 = vrcp.f32 %v7182_v33  ;;  %v7184_v10 = vld [vmem:[#allocation150_spill] sm:$0xff]  ;;  %v7186_v8 = vld [vmem:[#allocation151_spill] sm:$0xff]  ;;  %v7190_v5 = vld [vmem:[#allocation53_spill] sm:$0xff] }
  0xf3   :  { %7168 = vst [vmem:[#allocation115_spill] sm:$0xff] %v4089_v63  ;;  %v7180_v9 = vsel %vm7179_vm3, %v3603_v59, %v3661_v35  ;;  %vm7185_vm14 = vnez %v7184_v10  ;;  %v7187_v50 = vld [vmem:[#allocation162_spill] sm:$0xff]  ;;  %v7191_v2 = vld [vmem:[#allocation152_spill] sm:$0xff]  ;;  %v7194_v59 = vld [vmem:[#allocation163_spill] sm:$0xff] }
  0xf4   :  { %7176 = vst [vmem:[#allocation57_spill] sm:$0xff] %v4104_v26  ;;  %v4112_v29 = vadd.f32 %v7180_v9, %v7177_v3  ;;  %v7188_v17 = vsel %vm7185_vm14, %v7186_v8, %v7187_v50  ;;  %vm7192_vm4 = vnez %v7191_v2  ;;  %v7193_v26 = vld [vmem:[#allocation154_spill] sm:$0xff]  ;;  %v7197_v9 = vld [vmem:[#allocation124_spill] sm:$0xff]  ;;  %v7199_v63 = vld [vmem:[#allocation155_spill] sm:$0xff] }
  0xf5   :  { %v4123_v60 = vadd.f32 %v7188_v17, %v7183_v39  ;;  %v7195_v35 = vsel %vm7192_vm4, %v7193_v26, %v7194_v59  ;;  %2225 = vrcp.f32 %v7197_v9  ;;  %v7198_v24 = vld [vmem:[#allocation58_spill] sm:$0xff]  ;;  %vm7200_vm5 = vnez %v7199_v63  ;;  %v7201_v10 = vld [vmem:[#allocation157_spill] sm:$0xff]  ;;  %v7202_v55 = vld [vmem:[#allocation164_spill] sm:$0xff] }
  0xf6   :  { %7181 = vst [vmem:[#allocation103_spill] sm:$0xff] %v4112_v29  ;;  %v4131_v3 = vadd.f32 %v7195_v35, %v7190_v5  ;;  %v4134_v29 = vpop.eup %2207  ;;  %v7203_v8 = vsel %vm7200_vm5, %v7201_v10, %v7202_v55  ;;  %v7205_v50 = vld [vmem:[#allocation59_spill] sm:$0xff]  ;;  %v7206_v17 = vld [vmem:[#allocation160_spill] sm:$0xff]  ;;  %v7212_v59 = vsel %vm7211_vm7, %v3698_v37, %v3753_v19  ;;  %v7214_v35 = vld [vmem:[#allocation126_spill] sm:$0xff] }
  0xf7   :  { %7189 = vst [vmem:[#allocation104_spill] sm:$0xff] %v4123_v60  ;;  %v4142_v39 = vadd.f32 %v7203_v8, %v7198_v24  ;;  %vm7207_vm6 = vnez %v7206_v17  ;;  %v7210_v2 = vld [vmem:[#allocation63_spill] sm:$0xff]  ;;  %2227 = vrcp.f32 %v7214_v35  ;;  %v4161_v55 = vpop.eup %2209  ;;  %v7215_v24 = vld [vmem:[#allocation65_spill] sm:$0xff]  ;;  %v7219_v10 = vld [vmem:[#allocation66_spill] sm:$0xff] }
  0xf8   :  { %7196 = vst [vmem:[#allocation117_spill] sm:$0xff] %v4131_v3  ;;  %v7208_v26 = vsel %vm7207_vm6, %v3682_v46, %v3730_v30  ;;  %v4158_v63 = vadd.f32 %v7212_v59, %v7210_v2  ;;  %v7217_v46 = vsel %vm7216_vm8, %v3715_v23, %v3763_v38  ;;  %v7221_v34 = vld [vmem:[#allocation166_spill] sm:$0xff]  ;;  %v7222_v8 = vld [vmem:[#allocation173_spill] sm:$0xff]  ;;  %v7226_v17 = vld [vmem:[#allocation168_spill] sm:$0xff]  ;;  %v4188_v23 = vpop.eup %2211  ;;  %v717_v38 = vmul.f32 0.6931472, %v2194_v40 }
  0xf9   :  { %7204 = vst [vmem:[#allocation24_spill] sm:$0xff] %v4142_v39  ;;  %v4150_v5 = vadd.f32 %v7208_v26, %v7205_v50  ;;  %v4169_v30 = vadd.f32 %v7217_v46, %v7215_v24  ;;  %v7223_v37 = vsel %vm7220_vm9, %v7221_v34, %v7222_v8  ;;  %v7225_v50 = vld [vmem:[#allocation76_spill] sm:$0xff]  ;;  %vm7227_vm15 = vnez %v7226_v17  ;;  %v7228_v26 = vld [vmem:[#allocation171_spill] sm:$0xff]  ;;  %v7234_v49 = vld [vmem:[#allocation169_spill] sm:$0xff] }
  0xfa   :  { %7213 = vst [vmem:[#allocation106_spill] sm:$0xff] %v4158_v63  ;;  %v4177_v19 = vadd.f32 %v7223_v37, %v7219_v10  ;;  %v7229_v2 = vld [vmem:[#allocation176_spill] sm:$0xff]  ;;  %v7232_v63 = vld [vmem:[#allocation127_spill] sm:$0xff]  ;;  %vm7235_vm0 = vnez %v7234_v49  ;;  %v7236_v46 = vld [vmem:[#allocation174_spill] sm:$0xff]  ;;  %v714_v40 = vsel %vm3953_vm1, %v3911_v27, %v708_v57 }
  0xfb   :  { %7209 = vst [vmem:[#allocation107_spill] sm:$0xff] %v4150_v5  ;;  %7218 = vst [vmem:[#allocation119_spill] sm:$0xff] %v4169_v30  ;;  %v7230_v59 = vsel %vm7227_vm15, %v7228_v26, %v7229_v2  ;;  %2229 = vrcp.f32 %v7232_v63  ;;  %v7233_v24 = vld [vmem:[#allocation67_spill] sm:$0xff]  ;;  %v7237_v34 = vld [vmem:[#allocation177_spill] sm:$0xff]  ;;  %v4207_v2 = vpop.eup %2213 }
  0xfc   :  { %7224 = vst [vmem:[#allocation105_spill] sm:$0xff] %v4177_v19  ;;  %v4185_v1 = vadd.f32 %v7230_v59, %v7225_v50  ;;  %v7238_v10 = vsel %vm7235_vm0, %v7236_v46, %v7237_v34  ;;  %v7240_v37 = vld [vmem:[#allocation45_spill] sm:$0xff]  ;;  %v7241_v50 = vsel %vm3789_vm10, %v3787_v44, %v3851_v56  ;;  %v7243_v26 = vld [vmem:[#allocation131_spill] sm:$0xff]  ;;  %v7244_v59 = vld [vmem:[#allocation72_spill] sm:$0xff]  ;;  %v838_v44 = vmul.f32 %v3990_v53, %v3123_v41  ;;  %v4223_v56 = vpop.eup %2215 }
  0xfd   :  { %v4196_v8 = vadd.f32 %v7238_v10, %v7233_v24  ;;  %v4204_v17 = vadd.f32 %v7241_v50, %v7240_v37  ;;  %2231 = vrcp.f32 %v7243_v26  ;;  %v7245_v24 = vsel %vm3805_vm13, %v3803_v36, %v3855_v28  ;;  %v7247_v49 = vld [vmem:[#allocation137_spill] sm:$0xff]  ;;  %v7248_v46 = vld [vmem:[#allocation47_spill] sm:$0xff]  ;;  %v7249_v27 = vld [vmem:[#allocation182_spill] sm:$0xff]  ;;  %v4244_v37 = vpop.eup %2217 }
  0xfe   :  { %7231 = vst [vmem:[#allocation26_spill] sm:$0xff] %v4185_v1  ;;  %v4218_v0 = vadd.f32 %v7245_v24, %v7244_v59  ;;  %2233 = vrcp.f32 %v7247_v49  ;;  %v7250_v14 = vsel %vm3820_vm11, %v3818_v45, %v7249_v27  ;;  %v7253_v28 = vsel %vm3837_vm12, %v3858_v42, %v3890_v4  ;;  %v7255_v34 = vld [vmem:[#allocation139_spill] sm:$0xff]  ;;  %v7256_v41 = vld [vmem:[#allocation61_spill] sm:$0xff]  ;;  %v7259_v45 = vld [vmem:[#allocation28_spill] sm:$0xff]  ;;  %v4255_v4 = vpop.eup %2219 }
  0xff   :  { %7239 = vst [vmem:[#allocation110_spill] sm:$0xff] %v4196_v8  ;;  %7242 = vst [vmem:[#allocation114_spill] sm:$0xff] %v4204_v17  ;;  %v4231_v57 = vadd.f32 %v7250_v14, %v7248_v46  ;;  %v4239_v36 = vadd.f32 %v7253_v28, %v7252_v25  ;;  %2235 = vrcp.f32 %v7255_v34  ;;  %v839_v10 = vmul.f32 %v4011_v11, %v7256_v41  ;;  %v7261_v24 = vld [vmem:[#allocation140_spill] sm:$0xff]  ;;  %v7263_v27 = vld [vmem:[#allocation55_spill] sm:$0xff]  ;;  %v4266_v28 = vpop.eup %2221 }
 0x100   :  { %7246 = vst [vmem:[#allocation120_spill] sm:$0xff] %v4218_v0  ;;  %v4247_v50 = vadd.f32 %v687_v22, %v7257_v31  ;;  %v4250_v59 = vadd.f32 %v696_v6, %v7259_v45  ;;  %2237 = vrcp.f32 %v7261_v24  ;;  %v840_v42 = vmul.f32 %v4042_v20, %v7262_v48  ;;  %v7265_v25 = vld [vmem:[#allocation142_spill] sm:$0xff]  ;;  %v7266_v22 = vld [vmem:[#allocation56_spill] sm:$0xff]  ;;  %v7267_v41 = vld [vmem:[#allocation147_spill] sm:$0xff] }
 0x101   :  { %7251 = vst [vmem:[#allocation12_spill] sm:$0xff] %v4231_v57  ;;  %7254 = vst [vmem:[#allocation27_spill] sm:$0xff] %v4239_v36  ;;  %v723_v46 = vsel %vm4013_vm2, %v3958_v47, %v717_v38  ;;  %v4261_v14 = vadd.f32 %v705_v58, %v7263_v27  ;;  %2239 = vrcp.f32 %v7265_v25  ;;  %v841_v6 = vmul.f32 %v4065_v7, %v7266_v22  ;;  %v7268_v31 = vld [vmem:[#allocation85_spill] sm:$0xff]  ;;  %v7269_v48 = vld [vmem:[#allocation87_spill] sm:$0xff]  ;;  %v4273_v47 = vpop.eup %2223 }
 0x102   :  { %7258 = vst [vmem:[#allocation130_spill] sm:$0xff] %v4247_v50  ;;  %7260 = vst [vmem:[#allocation30_spill] sm:$0xff] %v4250_v59  ;;  %2241 = vrcp.f32 %v7267_v41  ;;  %v842_v45 = vmul.f32 %v4092_v18, %v7268_v31  ;;  %v843_v59 = vmul.f32 %v4115_v32, %v7269_v48  ;;  %v876_v12 = vsub.f32 2.0, %v838_v44  ;;  %v7270_v58 = vld [vmem:[#allocation153_spill] sm:$0xff]  ;;  %v4280_v36 = vpop.eup %2225  ;;  %v7273_v57 = vld [vmem:[#allocation83_spill] sm:$0xff] }
 0x103   :  { %7264 = vst [vmem:[#allocation121_spill] sm:$0xff] %v4261_v14  ;;  %2243 = vrcp.f32 %v7270_v58  ;;  %v7271_v38 = vld [vmem:[#allocation89_spill] sm:$0xff]  ;;  %v7272_v14 = vld [vmem:[#allocation92_spill] sm:$0xff]  ;;  %v877_v50 = vsub.f32 2.0, %v839_v10  ;;  %v4283_v0 = vadd.f32 %v714_v40, %v7273_v57  ;;  %v878_v17 = vsub.f32 2.0, %v840_v42  ;;  %v4288_v8 = vpop.eup %2227  ;;  %v7280_v40 = vld [vmem:[#allocation159_spill] sm:$0xff] }
 0x104   :  { %v844_v27 = vmul.f32 %v4134_v29, %v7271_v38  ;;  %v845_v22 = vmul.f32 %v4161_v55, %v7272_v14  ;;  %v7275_v31 = vld [vmem:[#allocation156_spill] sm:$0xff]  ;;  %v7276_v48 = vld [vmem:[#allocation93_spill] sm:$0xff]  ;;  %v7279_v38 = vld [vmem:[#allocation158_spill] sm:$0xff]  ;;  %v847_v10 = vmul.f32 %v4207_v2, %v7107_v15  ;;  %v879_v14 = vsub.f32 2.0, %v841_v6 }
 0x105   :  { %7274 = vst [vmem:[#allocation123_spill] sm:$0xff] %v4283_v0  ;;  %2245 = vrcp.f32 %v7275_v31  ;;  %v846_v44 = vmul.f32 %v4188_v23, %v7276_v48  ;;  %v7277_v1 = vld [vmem:[#allocation60_spill] sm:$0xff]  ;;  %v4296_v30 = vpop.eup %2229  ;;  %v880_v57 = vsub.f32 2.0, %v842_v45  ;;  %v881_v0 = vsub.f32 2.0, %v843_v59  ;;  %v7281_v5 = vld [vmem:[#allocation161_spill] sm:$0xff]  ;;  %v7284_v60 = vld [vmem:[#allocation167_spill] sm:$0xff] }
 0x106   :  { %v4291_v19 = vadd.f32 %v723_v46, %v7277_v1  ;;  %2247 = vrcp.f32 %v7279_v38  ;;  %v4300_v48 = vmul.f32 %v3990_v53, %v876_v12  ;;  %v882_v1 = vsub.f32 2.0, %v844_v27  ;;  %v7282_v6 = vld [vmem:[#allocation165_spill] sm:$0xff]  ;;  %v7285_v52 = vld [vmem:[#allocation170_spill] sm:$0xff]  ;;  %v7293_v13 = vld [vmem:[#allocation179_spill] sm:$0xff] }
 0x107   :  { %2249 = vrcp.f32 %v7280_v40  ;;  %v4302_v42 = vpop.eup %2231  ;;  %v883_v46 = vsub.f32 2.0, %v845_v22  ;;  %v4306_v39 = vmul.f32 %v4011_v11, %v877_v50  ;;  %v7283_v3 = vld [vmem:[#allocation109_spill] sm:$0xff]  ;;  %v884_v59 = vsub.f32 2.0, %v846_v44  ;;  %v7294_v61 = vld [vmem:[#allocation180_spill] sm:$0xff] }
 0x108   :  { %7278 = vst [vmem:[#allocation132_spill] sm:$0xff] %v4291_v19  ;;  %2251 = vrcp.f32 %v7281_v5  ;;  %v4308_v15 = vpop.eup %2233  ;;  %v848_v45 = vmul.f32 %v4223_v56, %v7283_v3  ;;  %v4314_v53 = vmul.f32 %v4042_v20, %v878_v17  ;;  %v849_v27 = vmul.f32 %v4244_v37, %v7139_v54  ;;  %v7286_v54 = vld [vmem:[#allocation172_spill] sm:$0xff]  ;;  %v7295_v62 = vld [vmem:[#allocation181_spill] sm:$0xff] }
 0x109   :  { %2253 = vrcp.f32 %v7282_v6  ;;  %v4316_v12 = vpop.eup %2235  ;;  %v885_v11 = vsub.f32 2.0, %v847_v10  ;;  %v4322_v50 = vmul.f32 %v4065_v7, %v879_v14  ;;  %v850_v3 = vmul.f32 %v4255_v4, %v7151_v51 }
 0x10a   :  { %2255 = vrcp.f32 %v7284_v60  ;;  %v4324_v22 = vpop.eup %2237  ;;  %v4330_v20 = vmul.f32 %v4092_v18, %v880_v57  ;;  %v4333_v17 = vmul.f32 %v4115_v32, %v881_v0  ;;  %v851_v7 = vmul.f32 %v4266_v28, %v7169_v16  ;;  %v7289_v18 = vld [vmem:[#allocation175_spill] sm:$0xff]  ;;  %v7291_v16 = vld [vmem:[#allocation178_spill] sm:$0xff] }
 0x10b   :  { %2257 = vrcp.f32 %v7285_v52  ;;  %v4335_v44 = vpop.eup %2239  ;;  %v4341_v10 = vmul.f32 %v4134_v29, %v882_v1  ;;  %v4344_v14 = vmul.f32 %v4161_v55, %v883_v46  ;;  %v852_v32 = vmul.f32 %v4273_v47, %v7182_v33 }
 0x10c   :  { %2259 = vrcp.f32 %v7286_v54  ;;  %v4346_v51 = vpop.eup %2241  ;;  %v886_v0 = vsub.f32 2.0, %v848_v45  ;;  %v4352_v57 = vmul.f32 %v4188_v23, %v884_v59  ;;  %v853_v29 = vmul.f32 %v4280_v36, %v7197_v9 }
 0x10d   :  { %7287 = vst [vmem:[#allocation31_spill] sm:$0xff] %v4341_v10  ;;  %7288 = vst [vmem:[#allocation125_spill] sm:$0xff] %v4344_v14  ;;  %2261 = vrcp.f32 %v7289_v18  ;;  %v4354_v43 = vpop.eup %2243  ;;  %v887_v55 = vsub.f32 2.0, %v849_v27  ;;  %v4360_v1 = vmul.f32 %v4207_v2, %v885_v11  ;;  %v854_v33 = vmul.f32 %v4288_v8, %v7214_v35 }
 0x10e   :  { %7290 = vst [vmem:[#allocation128_spill] sm:$0xff] %v4352_v57  ;;  %2263 = vrcp.f32 %v7291_v16  ;;  %v855_v23 = vmul.f32 %v4296_v30, %v7232_v63  ;;  %v888_v45 = vsub.f32 2.0, %v850_v3  ;;  %v856_v9 = vmul.f32 %v4302_v42, %v7243_v26 }
 0x10f   :  { %7292 = vst [vmem:[#allocation134_spill] sm:$0xff] %v4360_v1  ;;  %v4362_v46 = vpop.eup %2245  ;;  %2265 = vrcp.f32 %v7293_v13  ;;  %v857_v2 = vmul.f32 %v4308_v15, %v7247_v49  ;;  %v889_v27 = vsub.f32 2.0, %v851_v7  ;;  %v858_v35 = vmul.f32 %v4316_v12, %v7255_v34 }
 0x110   :  { %v4369_v59 = vpop.eup %2247  ;;  %2267 = vrcp.f32 %v7294_v61  ;;  %v859_v63 = vmul.f32 %v4324_v22, %v7261_v24  ;;  %v890_v3 = vsub.f32 2.0, %v852_v32  ;;  %v860_v26 = vmul.f32 %v4335_v44, %v7265_v25 }
 0x111   :  { %v4376_v11 = vpop.eup %2249  ;;  %2269 = vrcp.f32 %v7295_v62  ;;  %v861_v49 = vmul.f32 %v4346_v51, %v7267_v41  ;;  %v891_v7 = vsub.f32 2.0, %v853_v29  ;;  %v4390_v19 = vmul.f32 %v4223_v56, %v886_v0 }
 0x112   :  { %v4383_v21 = vpop.eup %2251  ;;  %v862_v34 = vmul.f32 %v4354_v43, %v7270_v58  ;;  %v892_v57 = vsub.f32 2.0, %v854_v33  ;;  %v893_v24 = vsub.f32 2.0, %v855_v23  ;;  %v4397_v32 = vmul.f32 %v4244_v37, %v887_v55 }
 0x113   :  { %7296 = vst [vmem:[#allocation111_spill] sm:$0xff] %v4390_v19  ;;  %v4392_v1 = vpop.eup %2253  ;;  %v863_v25 = vmul.f32 %v4362_v46, %v7275_v31  ;;  %v894_v10 = vsub.f32 2.0, %v856_v9  ;;  %v895_v41 = vsub.f32 2.0, %v857_v2  ;;  %v4402_v29 = vmul.f32 %v4255_v4, %v888_v45 }
 0x114   :  { %7297 = vst [vmem:[#allocation32_spill] sm:$0xff] %v4397_v32  ;;  %v2256_v14 = vpop.eup %2255  ;;  %v896_v0 = vsub.f32 2.0, %v858_v35  ;;  %v897_v19 = vsub.f32 2.0, %v859_v63  ;;  %v4407_v58 = vmul.f32 %v4266_v28, %v889_v27  ;;  %v4410_v33 = vmul.f32 %v4273_v47, %v890_v3 }
 0x115   :  { %7298 = vst [vmem:[#allocation129_spill] sm:$0xff] %v4402_v29  ;;  %v4404_v56 = vpop.eup %2257  ;;  %v864_v31 = vmul.f32 %v4369_v59, %v7279_v38  ;;  %v898_v55 = vsub.f32 2.0, %v860_v26  ;;  %v899_v23 = vsub.f32 2.0, %v861_v49  ;;  %v4417_v4 = vmul.f32 %v4280_v36, %v891_v7 }
 0x116   :  { %7299 = vst [vmem:[#allocation133_spill] sm:$0xff] %v4407_v58  ;;  %7300 = vst [vmem:[#allocation135_spill] sm:$0xff] %v4410_v33  ;;  %v4412_v37 = vpop.eup %2259  ;;  %v865_v9 = vmul.f32 %v4376_v11, %v7280_v40  ;;  %v900_v28 = vsub.f32 2.0, %v862_v34  ;;  %v4424_v2 = vmul.f32 %v4288_v8, %v892_v57  ;;  %v4427_v47 = vmul.f32 %v4296_v30, %v893_v24  ;;  %v7312_v34 = vld [vmem:[#allocation68_spill] sm:$0xff] }
 0x117   :  { %7301 = vst [vmem:[#allocation35_spill] sm:$0xff] %v4417_v4  ;;  %v4419_v45 = vpop.eup %2261  ;;  %v866_v38 = vmul.f32 %v4383_v21, %v7281_v5  ;;  %v901_v35 = vsub.f32 2.0, %v863_v25  ;;  %v4434_v36 = vmul.f32 %v4302_v42, %v894_v10  ;;  %v4437_v63 = vmul.f32 %v4308_v15, %v895_v41 }
 0x118   :  { %7302 = vst [vmem:[#allocation116_spill] sm:$0xff] %v4424_v2  ;;  %7303 = vst [vmem:[#allocation36_spill] sm:$0xff] %v4427_v47  ;;  %v4429_v27 = vpop.eup %2263  ;;  %v867_v8 = vmul.f32 %v4392_v1, %v7282_v6  ;;  %v868_v30 = vmul.f32 %v2256_v14, %v7284_v60  ;;  %v4445_v57 = vmul.f32 %v4316_v12, %v896_v0  ;;  %v902_v15 = vsub.f32 2.0, %v864_v31  ;;  %v7316_v31 = vld [vmem:[#allocation70_spill] sm:$0xff] }
 0x119   :  { %7304 = vst [vmem:[#allocation39_spill] sm:$0xff] %v4434_v36  ;;  %7305 = vst [vmem:[#allocation136_spill] sm:$0xff] %v4437_v63  ;;  %v4439_v40 = vpop.eup %2265  ;;  %v4448_v3 = vmul.f32 %v4324_v22, %v897_v19  ;;  %v869_v42 = vmul.f32 %v4404_v56, %v7285_v52  ;;  %v4455_v10 = vmul.f32 %v4335_v44, %v898_v55  ;;  %v903_v12 = vsub.f32 2.0, %v865_v9 }
 0x11a   :  { %7306 = vst [vmem:[#allocation143_spill] sm:$0xff] %v4445_v57  ;;  %v4450_v5 = vpop.eup %2267  ;;  %v4458_v26 = vmul.f32 %v4346_v51, %v899_v23  ;;  %v870_v60 = vmul.f32 %v4412_v37, %v7286_v54  ;;  %v871_v19 = vmul.f32 %v4419_v45, %v7289_v18  ;;  %v4467_v22 = vmul.f32 %v4354_v43, %v900_v28 }
 0x11b   :  { %7307 = vst [vmem:[#allocation42_spill] sm:$0xff] %v4448_v3  ;;  %7308 = vst [vmem:[#allocation138_spill] sm:$0xff] %v4455_v10  ;;  %v4460_v6 = vpop.eup %2269  ;;  %v872_v52 = vmul.f32 %v4429_v27, %v7291_v16  ;;  %v873_v44 = vmul.f32 %v4439_v40, %v7293_v13  ;;  %v904_v51 = vsub.f32 2.0, %v866_v38  ;;  %v4474_v49 = vmul.f32 %v4362_v46, %v901_v35  ;;  %v7314_v46 = vld [vmem:[#allocation69_spill] sm:$0xff] }
 0x11c   :  { %7309 = vst [vmem:[#allocation141_spill] sm:$0xff] %v4458_v26  ;;  %7310 = vst [vmem:[#allocation145_spill] sm:$0xff] %v4467_v22  ;;  %v4478_v54 = vmul.f32 %v4450_v5, %v7294_v61  ;;  %v905_v7 = vsub.f32 2.0, %v867_v8  ;;  %v906_v18 = vsub.f32 2.0, %v868_v30  ;;  %v4482_v43 = vmul.f32 %v7312_v34, %v4300_v48  ;;  %v4515_v8 = vld [vmem:[#allocation2] sm:$0xff]  ;;  %v4518_v30 = vld [vmem:[#allocation2 + $0x8] sm:$0xff] }
 0x11d   :  { %7311 = vst [vmem:[#allocation118_spill] sm:$0xff] %v4474_v49  ;;  %v4486_v16 = vmul.f32 %v4460_v6, %v7295_v62  ;;  %v907_v24 = vsub.f32 2.0, %v869_v42  ;;  %v4489_v13 = vmul.f32 %v4369_v59, %v902_v15  ;;  %v4493_v25 = vmul.f32 %v7314_v46, %v4306_v39  ;;  %v7318_v59 = vld [vmem:[#allocation71_spill] sm:$0xff]  ;;  %v7321_v42 = vld [vmem:[#allocation73_spill] sm:$0xff] }
 0x11e   :  { %v908_v61 = vsub.f32 2.0, %v870_v60  ;;  %v909_v41 = vsub.f32 2.0, %v871_v19  ;;  %v4496_v0 = vmul.f32 %v4376_v11, %v903_v12  ;;  %v4500_v55 = vmul.f32 %v7316_v31, %v4314_v53  ;;  %v4532_v60 = vld [vmem:[#allocation2 + $0x18] sm:$0xff]  ;;  %v4535_v19 = vld [vmem:[#allocation2 + $0x20] sm:$0xff]  ;;  %v4538_v12 = vld [vmem:[#allocation2 + $0x28] sm:$0xff] }
 0x11f   :  { %7313 = vst [vmem:[#allocation43_spill] sm:$0xff] %v4489_v13  ;;  %v910_v23 = vsub.f32 2.0, %v872_v52  ;;  %v911_v62 = vsub.f32 2.0, %v873_v44  ;;  %v4503_v9 = vmul.f32 %v4383_v21, %v904_v51  ;;  %v4507_v28 = vmul.f32 %v7318_v59, %v4322_v50  ;;  %v4521_v21 = vld [vmem:[#allocation2 + $0x10] sm:$0xff]  ;;  %v7322_v44 = vld [vmem:[#allocation74_spill] sm:$0xff]  ;;  %v7323_v51 = vld [vmem:[#allocation31_spill] sm:$0xff] }
 0x120   :  { %7315 = vst [vmem:[#allocation144_spill] sm:$0xff] %v4496_v0  ;;  %v912_v38 = vsub.f32 2.0, %v4478_v54  ;;  %v4511_v35 = vmul.f32 %v4392_v1, %v905_v7  ;;  %v4513_v11 = vmul.f32 %v2256_v14, %v906_v18  ;;  %vm952_vm10 = vcmp.ge.f32.partialorder %v4515_v8, 0.0  ;;  %v4541_v52 = vld [vmem:[#allocation2 + $0x30] sm:$0xff]  ;;  %v7324_v54 = vld [vmem:[#allocation13_spill] sm:$0xff]  ;;  %v4564_v46 = vld [vmem:[#allocation2 + $0x48] sm:$0xff] }
 0x121   :  { %7317 = vst [vmem:[#allocation146_spill] sm:$0xff] %v4503_v9  ;;  %vm953_vm11 = vcmp.ge.f32.partialorder %v4518_v30, 0.0  ;;  %vm954_vm12 = vcmp.ge.f32.partialorder %v4521_v21, 0.0  ;;  %v4526_v15 = vmul.f32 %v7321_v42, %v4330_v20  ;;  %v913_v1 = vsub.f32 2.0, %v4486_v16  ;;  %v4558_v16 = vld [vmem:[#allocation2 + $0x38] sm:$0xff]  ;;  %7327 = vst [vmem:[#allocation49_spill] sm:$0xff] %v4564_v46 }
 0x122   :  { %7319 = vst [vmem:[#allocation149_spill] sm:$0xff] %v4511_v35  ;;  %7320 = vst [vmem:[#allocation44_spill] sm:$0xff] %v4513_v11  ;;  %v4530_v14 = vmul.f32 %v4404_v56, %v907_v24  ;;  %vm955_vm13 = vcmp.ge.f32.partialorder %v4532_v60, 0.0  ;;  %vm956_vm1 = vcmp.ge.f32.partialorder %v4535_v19, 0.0  ;;  %vm957_vm2 = vcmp.ge.f32.partialorder %v4538_v12, 0.0  ;;  %v4561_v24 = vld [vmem:[#allocation2 + $0x40] sm:$0xff] }
 0x123   :  { %vm958_vm3 = vcmp.ge.f32.partialorder %v4541_v52, 0.0  ;;  %v4546_v56 = vmul.f32 %v7322_v44, %v4333_v17  ;;  %v4550_v7 = vmul.f32 %v7324_v54, %v7323_v51  ;;  %v4553_v18 = vmul.f32 %v4412_v37, %v908_v61  ;;  %7325 = vst [vmem:[#allocation148_spill] sm:$0xff] %v4558_v16  ;;  %7326 = vst [vmem:[#allocation122_spill] sm:$0xff] %v4561_v24  ;;  %v4567_v31 = vld [vmem:[#allocation2 + $0x50] sm:$0xff]  ;;  %v7329_v37 = vld [vmem:[#allocation125_spill] sm:$0xff] }
 0x124   :  { %v4556_v34 = vmul.f32 %v4419_v45, %v909_v41  ;;  %vm959_vm14 = vcmp.ge.f32.partialorder %v4558_v16, 0.0  ;;  %vm960_vm4 = vcmp.ge.f32.partialorder %v4561_v24, 0.0  ;;  %vm961_vm5 = vcmp.ge.f32.partialorder %v4564_v46, 0.0  ;;  %7328 = vst [vmem:[#allocation150_spill] sm:$0xff] %v4567_v31  ;;  %v7330_v61 = vld [vmem:[#allocation14_spill] sm:$0xff]  ;;  %v7331_v41 = vld [vmem:[#allocation128_spill] sm:$0xff] }
 0x125   :  { %vm962_vm6 = vcmp.ge.f32.partialorder %v4567_v31, 0.0  ;;  %v4572_v45 = vmul.f32 %v7330_v61, %v7329_v37  ;;  %v7332_v59 = vld [vmem:[#allocation15_spill] sm:$0xff]  ;;  %v4579_v44 = vmul.f32 %v4429_v27, %v910_v23  ;;  %v4582_v54 = vmul.f32 %v4439_v40, %v911_v62  ;;  %v4584_v24 = vld [vmem:[#allocation2 + $0x58] sm:$0xff]  ;;  %v4587_v46 = vld [vmem:[#allocation2 + $0x60] sm:$0xff] }
 0x126   :  { %v4576_v42 = vmul.f32 %v7332_v59, %v7331_v41  ;;  %7334 = vst [vmem:[#allocation162_spill] sm:$0xff] %v4584_v24  ;;  %vm963_vm7 = vcmp.ge.f32.partialorder %v4584_v24, 0.0  ;;  %7335 = vst [vmem:[#allocation53_spill] sm:$0xff] %v4587_v46  ;;  %v4590_v61 = vld [vmem:[#allocation2 + $0x68] sm:$0xff]  ;;  %v4593_v59 = vld [vmem:[#allocation2 + $0x70] sm:$0xff]  ;;  %v4605_v24 = vmul.f32 %v4450_v5, %v912_v38 }
 0x127   :  { %7336 = vst [vmem:[#allocation152_spill] sm:$0xff] %v4590_v61  ;;  %7337 = vst [vmem:[#allocation154_spill] sm:$0xff] %v4593_v59  ;;  %v7338_v27 = vld [vmem:[#allocation134_spill] sm:$0xff]  ;;  %v7339_v23 = vld [vmem:[#allocation16_spill] sm:$0xff] }
 0x128   :  { %7333 = vst [vmem:[#allocation151_spill] sm:$0xff] %v4576_v42  ;;  %v4598_v40 = vmul.f32 %v7339_v23, %v7338_v27  ;;  %v7341_v62 = vld [vmem:[#allocation111_spill] sm:$0xff]  ;;  %v7342_v31 = vld [vmem:[#allocation17_spill] sm:$0xff]  ;;  %v4610_v61 = vld [vmem:[#allocation2 + $0x80] sm:$0xff] }
 0x129   :  { %v4602_v41 = vmul.f32 %v7342_v31, %v7341_v62  ;;  %v4607_v46 = vld [vmem:[#allocation2 + $0x78] sm:$0xff]  ;;  %7345 = vst [vmem:[#allocation155_spill] sm:$0xff] %v4610_v61  ;;  %v4613_v59 = vld [vmem:[#allocation2 + $0x88] sm:$0xff]  ;;  %v4616_v23 = vld [vmem:[#allocation2 + $0x90] sm:$0xff]  ;;  %v4632_v61 = vmul.f32 %v4460_v6, %v913_v1 }
 0x12a   :  { %7340 = vst [vmem:[#allocation163_spill] sm:$0xff] %v4598_v40  ;;  %7344 = vst [vmem:[#allocation58_spill] sm:$0xff] %v4607_v46  ;;  %v7348_v31 = vld [vmem:[#allocation18_spill] sm:$0xff]  ;;  %v7350_v38 = vld [vmem:[#allocation19_spill] sm:$0xff] }
 0x12b   :  { %7343 = vst [vmem:[#allocation124_spill] sm:$0xff] %v4602_v41  ;;  %7346 = vst [vmem:[#allocation157_spill] sm:$0xff] %v4613_v59  ;;  %v4621_v5 = vmul.f32 %v7348_v31, %v4397_v32  ;;  %v4625_v62 = vmul.f32 %v7350_v38, %v4402_v29  ;;  %v7352_v46 = vld [vmem:[#allocation20_spill] sm:$0xff]  ;;  %v4634_v59 = vld [vmem:[#allocation2 + $0x98] sm:$0xff] }
 0x12c   :  { %7347 = vst [vmem:[#allocation164_spill] sm:$0xff] %v4616_v23  ;;  %v4629_v41 = vmul.f32 %v7352_v46, %v4407_v58  ;;  %7354 = vst [vmem:[#allocation126_spill] sm:$0xff] %v4634_v59  ;;  %v4637_v23 = vld [vmem:[#allocation2 + $0xa0] sm:$0xff]  ;;  %v4640_v31 = vld [vmem:[#allocation2 + $0xa8] sm:$0xff] }
 0x12d   :  { %7349 = vst [vmem:[#allocation59_spill] sm:$0xff] %v4621_v5  ;;  %7351 = vst [vmem:[#allocation160_spill] sm:$0xff] %v4625_v62  ;;  %v4643_v38 = vld [vmem:[#allocation2 + $0xb0] sm:$0xff]  ;;  %v7358_v46 = vld [vmem:[#allocation21_spill] sm:$0xff] }
 0x12e   :  { %7353 = vst [vmem:[#allocation63_spill] sm:$0xff] %v4629_v41  ;;  %7355 = vst [vmem:[#allocation65_spill] sm:$0xff] %v4637_v23  ;;  %v4648_v6 = vmul.f32 %v7358_v46, %v4410_v33  ;;  %v7360_v1 = vld [vmem:[#allocation22_spill] sm:$0xff]  ;;  %v7362_v59 = vld [vmem:[#allocation23_spill] sm:$0xff] }
 0x12f   :  { %7356 = vst [vmem:[#allocation66_spill] sm:$0xff] %v4640_v31  ;;  %7357 = vst [vmem:[#allocation166_spill] sm:$0xff] %v4643_v38  ;;  %v4652_v58 = vmul.f32 %v7360_v1, %v4417_v4  ;;  %v4656_v41 = vmul.f32 %v7362_v59, %v4424_v2  ;;  %v4658_v23 = vld [vmem:[#allocation2 + $0xb8] sm:$0xff]  ;;  %v4661_v31 = vld [vmem:[#allocation2 + $0xc0] sm:$0xff] }
 0x130   :  { %7359 = vst [vmem:[#allocation173_spill] sm:$0xff] %v4648_v6  ;;  %7364 = vst [vmem:[#allocation171_spill] sm:$0xff] %v4658_v23  ;;  %v4664_v38 = vld [vmem:[#allocation2 + $0xc8] sm:$0xff]  ;;  %v4667_v46 = vld [vmem:[#allocation2 + $0xd0] sm:$0xff] }
 0x131   :  { %7361 = vst [vmem:[#allocation76_spill] sm:$0xff] %v4652_v58  ;;  %7363 = vst [vmem:[#allocation168_spill] sm:$0xff] %v4656_v41  ;;  %v7368_v1 = vld [vmem:[#allocation25_spill] sm:$0xff]  ;;  %v7371_v58 = vld [vmem:[#allocation50_spill] sm:$0xff] }
 0x132   :  { %7365 = vst [vmem:[#allocation176_spill] sm:$0xff] %v4661_v31  ;;  %7366 = vst [vmem:[#allocation127_spill] sm:$0xff] %v4664_v38  ;;  %v1007_v59 = vmul.f32 %v7368_v1, %v4427_v47  ;;  %v7369_v2 = vld [vmem:[#allocation33_spill] sm:$0xff]  ;;  %v1010_v31 = vmul.f32 %v7371_v58, %v4445_v57  ;;  %v4681_v38 = vld [vmem:[#allocation2 + $0xe0] sm:$0xff] }
 0x133   :  { %7367 = vst [vmem:[#allocation67_spill] sm:$0xff] %v4667_v46  ;;  %v1008_v41 = vmul.f32 %v7369_v2, %v4434_v36  ;;  %v7370_v23 = vld [vmem:[#allocation37_spill] sm:$0xff]  ;;  %7373 = vst [vmem:[#allocation174_spill] sm:$0xff] %v4681_v38  ;;  %v4684_v46 = vld [vmem:[#allocation2 + $0xe8] sm:$0xff] }
 0x134   :  { %v1009_v4 = vmul.f32 %v7370_v23, %v4437_v63  ;;  %v4678_v33 = vld [vmem:[#allocation2 + $0xd8] sm:$0xff]  ;;  %7374 = vst [vmem:[#allocation177_spill] sm:$0xff] %v4684_v46  ;;  %v4687_v1 = vld [vmem:[#allocation2 + $0xf0] sm:$0xff]  ;;  %v7376_v2 = vld [vmem:[#allocation11_spill] sm:$0xff] }
 0x135   :  { %7372 = vst [vmem:[#allocation169_spill] sm:$0xff] %v4678_v33  ;;  %7375 = vst [vmem:[#allocation45_spill] sm:$0xff] %v4687_v1  ;;  %v1011_v23 = vmul.f32 %v7376_v2, %v4448_v3  ;;  %v7377_v58 = vld [vmem:[#allocation29_spill] sm:$0xff]  ;;  %v7378_v33 = vld [vmem:[#allocation34_spill] sm:$0xff] }
 0x136   :  { %v1012_v57 = vmul.f32 %v7377_v58, %v4455_v10  ;;  %v1013_v63 = vmul.f32 %v7378_v33, %v4458_v26  ;;  %v7379_v36 = vld [vmem:[#allocation40_spill] sm:$0xff]  ;;  %v2378_v47 = vld [vmem:[#allocation2 + $0xf8] sm:$0xff]  ;;  %v2379_v6 = vld [vmem:[#allocation2 + $0x100] sm:$0xff] }
 0x137   :  { %v1014_v38 = vmul.f32 %v7379_v36, %v4467_v22  ;;  %v2380_v46 = vld [vmem:[#allocation2 + $0x108] sm:$0xff]  ;;  %v2381_v29 = vld [vmem:[#allocation2 + $0x110] sm:$0xff]  ;;  %v7381_v3 = vld [vmem:[#allocation54_spill] sm:$0xff] }
 0x138   :  { %vm986_vm9 = vcmp.ge.f32.partialorder %v2381_v29, 0.0  ;;  %v7380_v1 = vld [vmem:[#allocation48_spill] sm:$0xff]  ;;  %v1016_v58 = vmul.f32 %v7381_v3, %v4489_v13  ;;  %v7382_v10 = vld [vmem:[#allocation62_spill] sm:$0xff]  ;;  %v7383_v26 = vld [vmem:[#allocation75_spill] sm:$0xff] }
 0x139   :  { %v1015_v2 = vmul.f32 %v7380_v1, %v4474_v49  ;;  %v1017_v33 = vmul.f32 %v7382_v10, %v4496_v0  ;;  %v1018_v36 = vmul.f32 %v7383_v26, %v4503_v9  ;;  %v2382_v22 = vld [vmem:[#allocation2 + $0x118] sm:$0xff]  ;;  %v2383_v62 = vld [vmem:[#allocation2 + $0x120] sm:$0xff]  ;;  %v2384_v32 = vld [vmem:[#allocation2 + $0x128] sm:$0xff] }
 0x13a   :  { %vm987_vm15 = vcmp.ge.f32.partialorder %v2382_v22, 0.0  ;;  %vm988_vm0 = vcmp.ge.f32.partialorder %v2383_v62, 0.0  ;;  %vm989_vm8 = vcmp.ge.f32.partialorder %v2384_v32, 0.0  ;;  %v7384_v5 = vld [vmem:[#allocation77_spill] sm:$0xff]  ;;  %v7385_v1 = vld [vmem:[#allocation78_spill] sm:$0xff]  ;;  %v7386_v3 = vld [vmem:[#allocation79_spill] sm:$0xff] }
 0x13b   :  { %v1019_v27 = vmul.f32 %v7384_v5, %v4511_v35  ;;  %v1020_v49 = vmul.f32 %v7385_v1, %v4513_v11  ;;  %v1021_v13 = vmul.f32 %v7386_v3, %v4530_v14  ;;  %v7387_v10 = vld [vmem:[#allocation81_spill] sm:$0xff]  ;;  %v7388_v26 = vld [vmem:[#allocation82_spill] sm:$0xff]  ;;  %v7389_v40 = vld [vmem:[#allocation84_spill] sm:$0xff]  ;;  %v4728_v3 = vsel %vm952_vm10, %v4300_v48, %v4482_v43 }
 0x13c   :  { %v1022_v0 = vmul.f32 %v7387_v10, %v4553_v18  ;;  %v1023_v9 = vmul.f32 %v7388_v26, %v4556_v34  ;;  %v1024_v42 = vmul.f32 %v7389_v40, %v4579_v44  ;;  %v7390_v16 = vld [vmem:[#allocation86_spill] sm:$0xff]  ;;  %v7391_v5 = vld [vmem:[#allocation88_spill] sm:$0xff]  ;;  %v4734_v40 = vsel %vm953_vm11, %v4306_v39, %v4493_v25  ;;  %v7402_v19 = vld [vmem:[#allocation111_spill] sm:$0xff] }
 0x13d   :  { %v1025_v37 = vmul.f32 %v7390_v16, %v4582_v54  ;;  %v1026_v35 = vmul.f32 %v7391_v5, %v4605_v24  ;;  %v7392_v1 = vld [vmem:[#allocation94_spill] sm:$0xff]  ;;  %v4740_v16 = vsel %vm954_vm12, %v4314_v53, %v4500_v55  ;;  %v4746_v10 = vsel %vm955_vm13, %v4322_v50, %v4507_v28  ;;  %v7393_v50 = vld [vmem:[#allocation125_spill] sm:$0xff]  ;;  %v7396_v55 = vld [vmem:[#allocation128_spill] sm:$0xff] }
 0x13e   :  { %v1027_v11 = vmul.f32 %v7392_v1, %v4632_v61  ;;  %v4752_v48 = vsel %vm956_vm1, %v4330_v20, %v4526_v15  ;;  %v4758_v39 = vsel %vm957_vm2, %v4333_v17, %v4546_v56  ;;  %v4764_v53 = vsel %vm958_vm3, %v7323_v51, %v4550_v7  ;;  %v7395_v20 = vld [vmem:[#allocation151_spill] sm:$0xff]  ;;  %v7399_v30 = vld [vmem:[#allocation134_spill] sm:$0xff]  ;;  %v7401_v60 = vld [vmem:[#allocation124_spill] sm:$0xff] }
 0x13f   :  { %v4770_v25 = vsel %vm959_vm14, %v7393_v50, %v4572_v45  ;;  %v4776_v8 = vsel %vm960_vm4, %v7396_v55, %v7395_v20  ;;  %v7398_v17 = vld [vmem:[#allocation163_spill] sm:$0xff]  ;;  %v4788_v52 = vsel %vm962_vm6, %v7402_v19, %v7401_v60  ;;  %v7405_v51 = vld [vmem:[#allocation32_spill] sm:$0xff]  ;;  %v7408_v5 = vld [vmem:[#allocation129_spill] sm:$0xff] }
 0x140   :  { %v4782_v15 = vsel %vm961_vm5, %v7399_v30, %v7398_v17  ;;  %v7404_v56 = vld [vmem:[#allocation59_spill] sm:$0xff]  ;;  %v7407_v26 = vld [vmem:[#allocation160_spill] sm:$0xff]  ;;  %v7409_v1 = vld [vmem:[#allocation53_spill] sm:$0xff] }
 0x141   :  { %v4794_v45 = vsel %vm963_vm7, %v7405_v51, %v7404_v56  ;;  %vm7410_vm10 = vcmp.ge.f32.partialorder %v7409_v1, 0.0  ;;  %v7411_v43 = vld [vmem:[#allocation63_spill] sm:$0xff]  ;;  %v7412_v20 = vld [vmem:[#allocation133_spill] sm:$0xff]  ;;  %v7413_v55 = vld [vmem:[#allocation152_spill] sm:$0xff] }
 0x142   :  { %v4800_v50 = vsel %vm7410_vm10, %v7408_v5, %v7407_v26  ;;  %vm7414_vm11 = vcmp.ge.f32.partialorder %v7413_v55, 0.0  ;;  %v7415_v17 = vld [vmem:[#allocation173_spill] sm:$0xff]  ;;  %v7416_v30 = vld [vmem:[#allocation135_spill] sm:$0xff]  ;;  %v7417_v21 = vld [vmem:[#allocation154_spill] sm:$0xff] }
 0x143   :  { %v4806_v28 = vsel %vm7414_vm11, %v7412_v20, %v7411_v43  ;;  %vm7418_vm12 = vcmp.ge.f32.partialorder %v7417_v21, 0.0  ;;  %v7420_v19 = vld [vmem:[#allocation76_spill] sm:$0xff]  ;;  %v7421_v12 = vld [vmem:[#allocation35_spill] sm:$0xff]  ;;  %v7422_v56 = vld [vmem:[#allocation58_spill] sm:$0xff] }
 0x144   :  { %v4812_v60 = vsel %vm7418_vm12, %v7416_v30, %v7415_v17  ;;  %vm7423_vm13 = vcmp.ge.f32.partialorder %v7422_v56, 0.0  ;;  %v7425_v7 = vld [vmem:[#allocation168_spill] sm:$0xff]  ;;  %v7427_v5 = vld [vmem:[#allocation155_spill] sm:$0xff]  ;;  %v7431_v20 = vld [vmem:[#allocation157_spill] sm:$0xff] }
 0x145   :  { %7419 = vst [vmem:[#allocation131_spill] sm:$0xff] %v4812_v60  ;;  %v4818_v51 = vsel %vm7423_vm13, %v7421_v12, %v7420_v19  ;;  %v7426_v26 = vld [vmem:[#allocation116_spill] sm:$0xff]  ;;  %vm7428_vm1 = vcmp.ge.f32.partialorder %v7427_v5, 0.0  ;;  %vm7432_vm2 = vcmp.ge.f32.partialorder %v7431_v20, 0.0  ;;  %v7434_v21 = vld [vmem:[#allocation39_spill] sm:$0xff]  ;;  %v7439_v56 = vld [vmem:[#allocation126_spill] sm:$0xff] }
 0x146   :  { %7424 = vst [vmem:[#allocation72_spill] sm:$0xff] %v4818_v51  ;;  %v4824_v1 = vsel %vm7428_vm1, %v7426_v26, %v7425_v7  ;;  %v7430_v43 = vld [vmem:[#allocation36_spill] sm:$0xff]  ;;  %vm7440_vm14 = vcmp.ge.f32.partialorder %v7439_v56, 0.0  ;;  %v7442_v12 = vld [vmem:[#allocation143_spill] sm:$0xff]  ;;  %v7443_v51 = vld [vmem:[#allocation65_spill] sm:$0xff] }
 0x147   :  { %7429 = vst [vmem:[#allocation137_spill] sm:$0xff] %v4824_v1  ;;  %v4829_v55 = vsel %vm7432_vm2, %v7430_v43, %v1007_v59  ;;  %v7435_v17 = vld [vmem:[#allocation164_spill] sm:$0xff]  ;;  %vm7444_vm4 = vcmp.ge.f32.partialorder %v7443_v51, 0.0  ;;  %v7446_v26 = vld [vmem:[#allocation42_spill] sm:$0xff]  ;;  %v4930_v29 = vld [vmem:[#allocation5 + $0x8] sm:$0xff] }
 0x148   :  { %7433 = vst [vmem:[#allocation47_spill] sm:$0xff] %v4829_v55  ;;  %vm7436_vm3 = vcmp.ge.f32.partialorder %v7435_v17, 0.0  ;;  %v7438_v60 = vld [vmem:[#allocation136_spill] sm:$0xff]  ;;  %v4844_v7 = vsel %vm7444_vm4, %v7442_v12, %v1010_v31  ;;  %v7447_v5 = vld [vmem:[#allocation66_spill] sm:$0xff]  ;;  %v7455_v17 = vld [vmem:[#allocation171_spill] sm:$0xff]  ;;  %vm7488_vm4 = vcmp.ge.f32.partialorder %v2379_v6, 0.0  ;;  %v4934_v22 = vmul.f32 %v4930_v29, %v4734_v40 }
 0x149   :  { %v4834_v30 = vsel %vm7436_vm3, %v7434_v21, %v1008_v41  ;;  %v4839_v19 = vsel %vm7440_vm14, %v7438_v60, %v1009_v4  ;;  %7445 = vst [vmem:[#allocation139_spill] sm:$0xff] %v4844_v7  ;;  %vm7448_vm5 = vcmp.ge.f32.partialorder %v7447_v5, 0.0  ;;  %v7450_v43 = vld [vmem:[#allocation138_spill] sm:$0xff]  ;;  %v7454_v21 = vld [vmem:[#allocation141_spill] sm:$0xff]  ;;  %vm7456_vm7 = vcmp.ge.f32.partialorder %v7455_v17, 0.0  ;;  %v7459_v56 = vld [vmem:[#allocation176_spill] sm:$0xff] }
 0x14a   :  { %7437 = vst [vmem:[#allocation182_spill] sm:$0xff] %v4834_v30  ;;  %7441 = vst [vmem:[#allocation80_spill] sm:$0xff] %v4839_v19  ;;  %v4849_v59 = vsel %vm7448_vm5, %v7446_v26, %v1011_v23  ;;  %v7451_v20 = vld [vmem:[#allocation166_spill] sm:$0xff]  ;;  %v4859_v4 = vsel %vm7456_vm7, %v7454_v21, %v1013_v63  ;;  %v7458_v60 = vld [vmem:[#allocation145_spill] sm:$0xff]  ;;  %vm7460_vm10 = vcmp.ge.f32.partialorder %v7459_v56, 0.0  ;;  %vm7486_vm14 = vcmp.ge.f32.partialorder %v2378_v47, 0.0 }
 0x14b   :  { %7449 = vst [vmem:[#allocation61_spill] sm:$0xff] %v4849_v59  ;;  %vm7452_vm6 = vcmp.ge.f32.partialorder %v7451_v20, 0.0  ;;  %7457 = vst [vmem:[#allocation28_spill] sm:$0xff] %v4859_v4  ;;  %v4864_v31 = vsel %vm7460_vm10, %v7458_v60, %v1014_v38  ;;  %v7462_v51 = vld [vmem:[#allocation118_spill] sm:$0xff]  ;;  %v7463_v12 = vld [vmem:[#allocation127_spill] sm:$0xff]  ;;  %vm7490_vm5 = vcmp.ge.f32.partialorder %v2380_v46, 0.0  ;;  %v4918_v47 = vsel %vm988_vm0, %v4605_v24, %v1026_v35 }
 0x14c   :  { %v4854_v41 = vsel %vm7452_vm6, %v7450_v43, %v1012_v57  ;;  %7461 = vst [vmem:[#allocation140_spill] sm:$0xff] %v4864_v31  ;;  %vm7464_vm11 = vcmp.ge.f32.partialorder %v7463_v12, 0.0  ;;  %v7466_v26 = vld [vmem:[#allocation43_spill] sm:$0xff]  ;;  %v7470_v43 = vld [vmem:[#allocation144_spill] sm:$0xff]  ;;  %v7471_v20 = vld [vmem:[#allocation169_spill] sm:$0xff] }
 0x14d   :  { %7453 = vst [vmem:[#allocation52_spill] sm:$0xff] %v4854_v41  ;;  %v4869_v23 = vsel %vm7464_vm11, %v7462_v51, %v1015_v2  ;;  %v7467_v5 = vld [vmem:[#allocation67_spill] sm:$0xff]  ;;  %vm7472_vm13 = vcmp.ge.f32.partialorder %v7471_v20, 0.0  ;;  %v7474_v21 = vld [vmem:[#allocation146_spill] sm:$0xff]  ;;  %v7478_v60 = vld [vmem:[#allocation149_spill] sm:$0xff] }
 0x14e   :  { %7465 = vst [vmem:[#allocation64_spill] sm:$0xff] %v4869_v23  ;;  %vm7468_vm12 = vcmp.ge.f32.partialorder %v7467_v5, 0.0  ;;  %v4879_v63 = vsel %vm7472_vm13, %v7470_v43, %v1017_v33  ;;  %v7475_v17 = vld [vmem:[#allocation174_spill] sm:$0xff]  ;;  %v7479_v56 = vld [vmem:[#allocation177_spill] sm:$0xff]  ;;  %v7482_v51 = vld [vmem:[#allocation44_spill] sm:$0xff]  ;;  %v4902_v33 = vsel %vm7488_vm4, %v4553_v18, %v1022_v0 }
 0x14f   :  { %v4874_v57 = vsel %vm7468_vm12, %v7466_v26, %v1016_v58  ;;  %7473 = vst [vmem:[#allocation142_spill] sm:$0xff] %v4879_v63  ;;  %vm7476_vm1 = vcmp.ge.f32.partialorder %v7475_v17, 0.0  ;;  %vm7480_vm2 = vcmp.ge.f32.partialorder %v7479_v56, 0.0  ;;  %v7483_v12 = vld [vmem:[#allocation45_spill] sm:$0xff]  ;;  %v4898_v26 = vsel %vm7486_vm14, %v4530_v14, %v1021_v13  ;;  %7489 = vst [vmem:[#allocation153_spill] sm:$0xff] %v4902_v33  ;;  %v4924_v0 = vld [vmem:[#allocation5] sm:$0xff] }
 0x150   :  { %7469 = vst [vmem:[#allocation55_spill] sm:$0xff] %v4874_v57  ;;  %v4884_v38 = vsel %vm7476_vm1, %v7474_v21, %v1018_v36  ;;  %v4889_v2 = vsel %vm7480_vm2, %v7478_v60, %v1019_v27  ;;  %vm7484_vm3 = vcmp.ge.f32.partialorder %v7483_v12, 0.0  ;;  %7487 = vst [vmem:[#allocation87_spill] sm:$0xff] %v4898_v26  ;;  %v4906_v36 = vsel %vm7490_vm5, %v4556_v34, %v1023_v9  ;;  %v4936_v14 = vld [vmem:[#allocation5 + $0x10] sm:$0xff]  ;;  %v4942_v32 = vld [vmem:[#allocation5 + $0x18] sm:$0xff] }
 0x151   :  { %7477 = vst [vmem:[#allocation56_spill] sm:$0xff] %v4884_v38  ;;  %7481 = vst [vmem:[#allocation147_spill] sm:$0xff] %v4889_v2  ;;  %v4894_v58 = vsel %vm7484_vm3, %v7482_v51, %v1020_v49  ;;  %v4910_v27 = vsel %vm986_vm9, %v4579_v44, %v1024_v42  ;;  %v4914_v49 = vsel %vm987_vm15, %v4582_v54, %v1025_v37  ;;  %v4948_v18 = vld [vmem:[#allocation5 + $0x20] sm:$0xff]  ;;  %v4954_v24 = vld [vmem:[#allocation5 + $0x28] sm:$0xff] }
 0x152   :  { %7485 = vst [vmem:[#allocation85_spill] sm:$0xff] %v4894_v58  ;;  %7491 = vst [vmem:[#allocation89_spill] sm:$0xff] %v4906_v36  ;;  %v4922_v13 = vsel %vm989_vm8, %v4632_v61, %v1027_v11  ;;  %v4928_v9 = vmul.f32 %v4924_v0, %v4728_v3  ;;  %v4940_v35 = vmul.f32 %v4936_v14, %v4740_v16  ;;  %v4960_v42 = vld [vmem:[#allocation5 + $0x30] sm:$0xff]  ;;  %v4966_v54 = vld [vmem:[#allocation5 + $0x38] sm:$0xff] }
 0x153   :  { %7492 = vst [vmem:[#allocation92_spill] sm:$0xff] %v4910_v27  ;;  %7493 = vst [vmem:[#allocation83_spill] sm:$0xff] %v4914_v49  ;;  %v4946_v11 = vmul.f32 %v4942_v32, %v4746_v10  ;;  %v4952_v34 = vmul.f32 %v4948_v18, %v4752_v48  ;;  %v4958_v37 = vmul.f32 %v4954_v24, %v4758_v39  ;;  %v4972_v62 = vld [vmem:[#allocation5 + $0x40] sm:$0xff]  ;;  %v4978_v46 = vld [vmem:[#allocation5 + $0x48] sm:$0xff] }
 0x154   :  { %7494 = vst [vmem:[#allocation156_spill] sm:$0xff] %v4918_v47  ;;  %7495 = vst [vmem:[#allocation93_spill] sm:$0xff] %v4924_v0  ;;  %v4964_v44 = vmul.f32 %v4960_v42, %v4764_v53  ;;  %v4970_v61 = vmul.f32 %v4966_v54, %v4770_v25  ;;  %v4976_v6 = vmul.f32 %v4972_v62, %v4776_v8  ;;  %v4984_v43 = vld [vmem:[#allocation5 + $0x50] sm:$0xff]  ;;  %v4990_v21 = vld [vmem:[#allocation5 + $0x58] sm:$0xff] }
 0x155   :  { %7496 = vst [vmem:[#allocation60_spill] sm:$0xff] %v4928_v9  ;;  %7497 = vst [vmem:[#allocation158_spill] sm:$0xff] %v4930_v29  ;;  %v4982_v5 = vmul.f32 %v4978_v46, %v4782_v15  ;;  %v4988_v20 = vmul.f32 %v4984_v43, %v4788_v52  ;;  %v4994_v17 = vmul.f32 %v4990_v21, %v4794_v45  ;;  %v4996_v60 = vld [vmem:[#allocation5 + $0x60] sm:$0xff]  ;;  %v5002_v51 = vld [vmem:[#allocation5 + $0x68] sm:$0xff] }
 0x156   :  { %7498 = vst [vmem:[#allocation159_spill] sm:$0xff] %v4934_v22  ;;  %7499 = vst [vmem:[#allocation161_spill] sm:$0xff] %v4936_v14  ;;  %v5000_v56 = vmul.f32 %v4996_v60, %v4800_v50  ;;  %v5006_v12 = vmul.f32 %v5002_v51, %v4806_v28  ;;  %v5044_v22 = vld [vmem:[#allocation5 + $0xa0] sm:$0xff]  ;;  %v5050_v9 = vld [vmem:[#allocation5 + $0xa8] sm:$0xff] }
 0x157   :  { %7500 = vst [vmem:[#allocation165_spill] sm:$0xff] %v4940_v35  ;;  %7501 = vst [vmem:[#allocation109_spill] sm:$0xff] %v4942_v32  ;;  %v5038_v35 = vld [vmem:[#allocation5 + $0x98] sm:$0xff] }
 0x158   :  { %7502 = vst [vmem:[#allocation167_spill] sm:$0xff] %v4946_v11  ;;  %7503 = vst [vmem:[#allocation170_spill] sm:$0xff] %v4948_v18  ;;  %v5032_v11 = vld [vmem:[#allocation5 + $0x90] sm:$0xff] }
 0x159   :  { %7504 = vst [vmem:[#allocation172_spill] sm:$0xff] %v4952_v34  ;;  %7505 = vst [vmem:[#allocation175_spill] sm:$0xff] %v4954_v24  ;;  %v5026_v34 = vld [vmem:[#allocation5 + $0x88] sm:$0xff] }
 0x15a   :  { %7506 = vst [vmem:[#allocation178_spill] sm:$0xff] %v4958_v37  ;;  %7507 = vst [vmem:[#allocation179_spill] sm:$0xff] %v4960_v42  ;;  %v5020_v37 = vld [vmem:[#allocation5 + $0x80] sm:$0xff] }
 0x15b   :  { %7508 = vst [vmem:[#allocation180_spill] sm:$0xff] %v4964_v44  ;;  %7509 = vst [vmem:[#allocation181_spill] sm:$0xff] %v4966_v54 }
 0x15c   :  { %7510 = vst [vmem:[#allocation68_spill] sm:$0xff] %v4970_v61  ;;  %7511 = vst [vmem:[#allocation69_spill] sm:$0xff] %v4972_v62  ;;  %v5014_v61 = vld [vmem:[#allocation5 + $0x78] sm:$0xff] }
 0x15d   :  { %7512 = vst [vmem:[#allocation70_spill] sm:$0xff] %v4976_v6  ;;  %7513 = vst [vmem:[#allocation71_spill] sm:$0xff] %v4978_v46 }
 0x15e   :  { %7514 = vst [vmem:[#allocation73_spill] sm:$0xff] %v4982_v5  ;;  %7515 = vst [vmem:[#allocation74_spill] sm:$0xff] %v4984_v43  ;;  %v5008_v5 = vld [vmem:[#allocation5 + $0x70] sm:$0xff] }
 0x15f   :  { %7516 = vst [vmem:[#allocation31_spill] sm:$0xff] %v4988_v20  ;;  %7517 = vst [vmem:[#allocation13_spill] sm:$0xff] %v4990_v21  ;;  %v7524_v20 = vld [vmem:[#allocation131_spill] sm:$0xff] }
 0x160   :  { %7518 = vst [vmem:[#allocation14_spill] sm:$0xff] %v4994_v17  ;;  %7519 = vst [vmem:[#allocation15_spill] sm:$0xff] %v4996_v60  ;;  %v5012_v6 = vmul.f32 %v5008_v5, %v7524_v20  ;;  %v7527_v17 = vld [vmem:[#allocation72_spill] sm:$0xff] }
 0x161   :  { %7520 = vst [vmem:[#allocation16_spill] sm:$0xff] %v5000_v56  ;;  %7521 = vst [vmem:[#allocation17_spill] sm:$0xff] %v5002_v51  ;;  %v5018_v44 = vmul.f32 %v5014_v61, %v7527_v17  ;;  %v5024_v56 = vmul.f32 %v5020_v37, %v4824_v1  ;;  %v1142_v17 = vsub.f32 1.0, %v4728_v3  ;;  %v1149_v1 = vsub.f32 1.0, %v4770_v25 }
 0x162   :  { %7522 = vst [vmem:[#allocation18_spill] sm:$0xff] %v5006_v12  ;;  %7523 = vst [vmem:[#allocation19_spill] sm:$0xff] %v5008_v5  ;;  %v5030_v12 = vmul.f32 %v5026_v34, %v4829_v55  ;;  %v1146_v55 = vsub.f32 1.0, %v4752_v48  ;;  %v1152_v3 = vsub.f32 1.0, %v4788_v52  ;;  %v1156_v48 = vsub.f32 1.0, %v7524_v20 }
 0x163   :  { %7525 = vst [vmem:[#allocation20_spill] sm:$0xff] %v5012_v6  ;;  %7526 = vst [vmem:[#allocation21_spill] sm:$0xff] %v5014_v61  ;;  %v5036_v6 = vmul.f32 %v5032_v11, %v4834_v30  ;;  %v5056_v30 = vld [vmem:[#allocation5 + $0xb0] sm:$0xff] }
 0x164   :  { %7528 = vst [vmem:[#allocation22_spill] sm:$0xff] %v5018_v44  ;;  %7529 = vst [vmem:[#allocation23_spill] sm:$0xff] %v5020_v37  ;;  %v5042_v44 = vmul.f32 %v5038_v35, %v4839_v19  ;;  %v5062_v19 = vld [vmem:[#allocation5 + $0xb8] sm:$0xff]  ;;  %v7594_v37 = vld [vmem:[#allocation156_spill] sm:$0xff] }
 0x165   :  { %7530 = vst [vmem:[#allocation25_spill] sm:$0xff] %v5024_v56  ;;  %7531 = vst [vmem:[#allocation33_spill] sm:$0xff] %v5026_v34  ;;  %v5048_v56 = vmul.f32 %v5044_v22, %v4844_v7  ;;  %v5068_v7 = vld [vmem:[#allocation5 + $0xc0] sm:$0xff]  ;;  %v7593_v34 = vld [vmem:[#allocation83_spill] sm:$0xff] }
 0x166   :  { %7532 = vst [vmem:[#allocation37_spill] sm:$0xff] %v5030_v12  ;;  %7533 = vst [vmem:[#allocation50_spill] sm:$0xff] %v5032_v11  ;;  %v5054_v12 = vmul.f32 %v5050_v9, %v4849_v59  ;;  %v5074_v59 = vld [vmem:[#allocation5 + $0xc8] sm:$0xff]  ;;  %v7592_v11 = vld [vmem:[#allocation92_spill] sm:$0xff] }
 0x167   :  { %7534 = vst [vmem:[#allocation11_spill] sm:$0xff] %v5036_v6  ;;  %7535 = vst [vmem:[#allocation29_spill] sm:$0xff] %v5038_v35  ;;  %v5060_v6 = vmul.f32 %v5056_v30, %v4854_v41  ;;  %v5080_v41 = vld [vmem:[#allocation5 + $0xd0] sm:$0xff]  ;;  %v7591_v35 = vld [vmem:[#allocation89_spill] sm:$0xff] }
 0x168   :  { %7536 = vst [vmem:[#allocation34_spill] sm:$0xff] %v5042_v44  ;;  %7537 = vst [vmem:[#allocation40_spill] sm:$0xff] %v5044_v22  ;;  %v5066_v44 = vmul.f32 %v5062_v19, %v4859_v4  ;;  %v5086_v4 = vld [vmem:[#allocation5 + $0xd8] sm:$0xff]  ;;  %v7590_v22 = vld [vmem:[#allocation153_spill] sm:$0xff] }
 0x169   :  { %7538 = vst [vmem:[#allocation48_spill] sm:$0xff] %v5048_v56  ;;  %7539 = vst [vmem:[#allocation54_spill] sm:$0xff] %v5050_v9  ;;  %v5072_v56 = vmul.f32 %v5068_v7, %v4864_v31  ;;  %v5092_v31 = vld [vmem:[#allocation5 + $0xe0] sm:$0xff]  ;;  %v7589_v9 = vld [vmem:[#allocation87_spill] sm:$0xff] }
 0x16a   :  { %7540 = vst [vmem:[#allocation62_spill] sm:$0xff] %v5054_v12  ;;  %7541 = vst [vmem:[#allocation75_spill] sm:$0xff] %v5056_v30  ;;  %v5078_v12 = vmul.f32 %v5074_v59, %v4869_v23  ;;  %v5098_v23 = vld [vmem:[#allocation5 + $0xe8] sm:$0xff] }
 0x16b   :  { %7542 = vst [vmem:[#allocation77_spill] sm:$0xff] %v5060_v6  ;;  %7543 = vst [vmem:[#allocation78_spill] sm:$0xff] %v5062_v19  ;;  %v5084_v6 = vmul.f32 %v5080_v41, %v4874_v57  ;;  %v5104_v57 = vld [vmem:[#allocation5 + $0xf0] sm:$0xff]  ;;  %v7587_v19 = vld [vmem:[#allocation147_spill] sm:$0xff] }
 0x16c   :  { %7544 = vst [vmem:[#allocation79_spill] sm:$0xff] %v5066_v44  ;;  %7545 = vst [vmem:[#allocation81_spill] sm:$0xff] %v5068_v7  ;;  %v5090_v44 = vmul.f32 %v5086_v4, %v4879_v63  ;;  %v5110_v63 = vld [vmem:[#allocation5 + $0xf8] sm:$0xff]  ;;  %v7586_v7 = vld [vmem:[#allocation56_spill] sm:$0xff] }
 0x16d   :  { %7546 = vst [vmem:[#allocation82_spill] sm:$0xff] %v5072_v56  ;;  %7547 = vst [vmem:[#allocation84_spill] sm:$0xff] %v5074_v59  ;;  %v5096_v56 = vmul.f32 %v5092_v31, %v4884_v38  ;;  %v5116_v38 = vld [vmem:[#allocation5 + $0x100] sm:$0xff]  ;;  %v7585_v59 = vld [vmem:[#allocation142_spill] sm:$0xff] }
 0x16e   :  { %7548 = vst [vmem:[#allocation86_spill] sm:$0xff] %v5078_v12  ;;  %7549 = vst [vmem:[#allocation88_spill] sm:$0xff] %v5080_v41  ;;  %v5102_v12 = vmul.f32 %v5098_v23, %v4889_v2  ;;  %v5122_v2 = vld [vmem:[#allocation5 + $0x108] sm:$0xff]  ;;  %v7584_v41 = vld [vmem:[#allocation55_spill] sm:$0xff] }
 0x16f   :  { %7550 = vst [vmem:[#allocation94_spill] sm:$0xff] %v5084_v6  ;;  %7551 = vst [vmem:[#allocation125_spill] sm:$0xff] %v5086_v4  ;;  %v5108_v6 = vmul.f32 %v5104_v57, %v4894_v58  ;;  %v5128_v58 = vld [vmem:[#allocation5 + $0x110] sm:$0xff]  ;;  %v7583_v4 = vld [vmem:[#allocation64_spill] sm:$0xff] }
 0x170   :  { %7552 = vst [vmem:[#allocation148_spill] sm:$0xff] %v5090_v44  ;;  %7553 = vst [vmem:[#allocation151_spill] sm:$0xff] %v5092_v31  ;;  %v5114_v44 = vmul.f32 %v5110_v63, %v4898_v26  ;;  %v5134_v26 = vld [vmem:[#allocation5 + $0x118] sm:$0xff]  ;;  %v7582_v31 = vld [vmem:[#allocation140_spill] sm:$0xff] }
 0x171   :  { %7554 = vst [vmem:[#allocation128_spill] sm:$0xff] %v5096_v56  ;;  %7555 = vst [vmem:[#allocation122_spill] sm:$0xff] %v5098_v23  ;;  %v5120_v56 = vmul.f32 %v5116_v38, %v4902_v33  ;;  %v5140_v33 = vld [vmem:[#allocation5 + $0x120] sm:$0xff]  ;;  %v1166_v20 = vsub.f32 1.0, %v7582_v31  ;;  %v7588_v30 = vld [vmem:[#allocation85_spill] sm:$0xff]  ;;  %v1176_v31 = vsub.f32 1.0, %v7592_v11 }
 0x172   :  { %7556 = vst [vmem:[#allocation163_spill] sm:$0xff] %v5102_v12  ;;  %7557 = vst [vmem:[#allocation134_spill] sm:$0xff] %v5104_v57  ;;  %v5126_v12 = vmul.f32 %v5122_v2, %v4906_v36  ;;  %v5146_v36 = vld [vmem:[#allocation5 + $0x128] sm:$0xff]  ;;  %v7580_v57 = vld [vmem:[#allocation52_spill] sm:$0xff]  ;;  %v7599_v11 = vsub.f32 1.0, %v4948_v18 }
 0x173   :  { %7558 = vst [vmem:[#allocation49_spill] sm:$0xff] %v5108_v6  ;;  %7559 = vst [vmem:[#allocation124_spill] sm:$0xff] %v5110_v63  ;;  %v5132_v6 = vmul.f32 %v5128_v58, %v4910_v27  ;;  %v1145_v27 = vsub.f32 1.0, %v4746_v10  ;;  %v1155_v10 = vsub.f32 1.0, %v4806_v28  ;;  %v7579_v63 = vld [vmem:[#allocation61_spill] sm:$0xff]  ;;  %v7581_v23 = vld [vmem:[#allocation28_spill] sm:$0xff] }
 0x174   :  { %7560 = vst [vmem:[#allocation111_spill] sm:$0xff] %v5114_v44  ;;  %7561 = vst [vmem:[#allocation150_spill] sm:$0xff] %v5116_v38  ;;  %v5138_v44 = vmul.f32 %v5134_v26, %v4914_v49  ;;  %v1148_v49 = vsub.f32 1.0, %v4764_v53  ;;  %v7578_v38 = vld [vmem:[#allocation139_spill] sm:$0xff]  ;;  %v1165_v28 = vsub.f32 1.0, %v7581_v23  ;;  %v1175_v23 = vsub.f32 1.0, %v7591_v35 }
 0x175   :  { %7562 = vst [vmem:[#allocation59_spill] sm:$0xff] %v5120_v56  ;;  %7563 = vst [vmem:[#allocation32_spill] sm:$0xff] %v5122_v2  ;;  %v5144_v56 = vmul.f32 %v5140_v33, %v4918_v47  ;;  %v1151_v47 = vsub.f32 1.0, %v4782_v15  ;;  %v7577_v2 = vld [vmem:[#allocation80_spill] sm:$0xff]  ;;  %v1162_v52 = vsub.f32 1.0, %v7578_v38  ;;  %v1172_v38 = vsub.f32 1.0, %v7588_v30 }
 0x176   :  { %7564 = vst [vmem:[#allocation162_spill] sm:$0xff] %v5126_v12  ;;  %7565 = vst [vmem:[#allocation160_spill] sm:$0xff] %v5128_v58  ;;  %v5150_v12 = vmul.f32 %v5146_v36, %v4922_v13  ;;  %v7576_v58 = vld [vmem:[#allocation182_spill] sm:$0xff]  ;;  %v1161_v15 = vsub.f32 1.0, %v7577_v2  ;;  %v1171_v2 = vsub.f32 1.0, %v7587_v19  ;;  %v7596_v19 = vsub.f32 1.0, %v4930_v29 }
 0x177   :  { %7566 = vst [vmem:[#allocation129_spill] sm:$0xff] %v5132_v6  ;;  %7567 = vst [vmem:[#allocation53_spill] sm:$0xff] %v5134_v26  ;;  %v1144_v6 = vsub.f32 1.0, %v4740_v16  ;;  %v1154_v16 = vsub.f32 1.0, %v4800_v50  ;;  %v7575_v26 = vld [vmem:[#allocation47_spill] sm:$0xff]  ;;  %v1164_v50 = vsub.f32 1.0, %v7580_v57  ;;  %v1184_v51 = vmul.f32 %v1146_v55, %v7599_v11 }
 0x178   :  { %7568 = vst [vmem:[#allocation63_spill] sm:$0xff] %v5138_v44  ;;  %7569 = vst [vmem:[#allocation133_spill] sm:$0xff] %v5140_v33  ;;  %v1147_v44 = vsub.f32 1.0, %v4758_v39  ;;  %v7574_v33 = vld [vmem:[#allocation137_spill] sm:$0xff]  ;;  %v1159_v25 = vsub.f32 1.0, %v7575_v26  ;;  %v1169_v26 = vsub.f32 1.0, %v7585_v59 }
 0x179   :  { %7570 = vst [vmem:[#allocation152_spill] sm:$0xff] %v5144_v56  ;;  %7571 = vst [vmem:[#allocation173_spill] sm:$0xff] %v5146_v36  ;;  %v1150_v56 = vsub.f32 1.0, %v4776_v8  ;;  %v7573_v36 = vld [vmem:[#allocation72_spill] sm:$0xff]  ;;  %v1158_v53 = vsub.f32 1.0, %v7574_v33  ;;  %v1160_v8 = vsub.f32 1.0, %v7576_v58 }
 0x17a   :  { %7572 = vst [vmem:[#allocation135_spill] sm:$0xff] %v5150_v12  ;;  %v1143_v12 = vsub.f32 1.0, %v4734_v40  ;;  %v1153_v40 = vsub.f32 1.0, %v4794_v45  ;;  %v1157_v39 = vsub.f32 1.0, %v7573_v36  ;;  %v1163_v45 = vsub.f32 1.0, %v7579_v63  ;;  %v7668_v18 = vld [vmem:[#allocation73_spill] sm:$0xff] }
 0x17b   :  { %v1167_v36 = vsub.f32 1.0, %v7583_v4  ;;  %v1168_v33 = vsub.f32 1.0, %v7584_v41  ;;  %v1170_v58 = vsub.f32 1.0, %v7586_v7  ;;  %v1173_v63 = vsub.f32 1.0, %v7589_v9 }
 0x17c   :  { %v1174_v57 = vsub.f32 1.0, %v7590_v22  ;;  %v1177_v4 = vsub.f32 1.0, %v7593_v34  ;;  %v1178_v41 = vsub.f32 1.0, %v7594_v37  ;;  %v1179_v59 = vsub.f32 1.0, %v4922_v13 }
 0x17d   :  { %v7595_v7 = vsub.f32 1.0, %v4924_v0  ;;  %v1181_v30 = vmul.f32 %v1143_v12, %v7596_v19  ;;  %v7597_v9 = vsub.f32 1.0, %v4936_v14  ;;  %v7598_v22 = vsub.f32 1.0, %v4942_v32 }
 0x17e   :  { %v7600_v34 = vsub.f32 1.0, %v4954_v24  ;;  %v7601_v13 = vsub.f32 1.0, %v4960_v42  ;;  %v7603_v12 = vsub.f32 1.0, %v4972_v62  ;;  %v7606_v55 = vsub.f32 1.0, %v4990_v21  ;;  %v7607_v24 = vld [vmem:[#allocation15_spill] sm:$0xff]  ;;  %v7609_v42 = vld [vmem:[#allocation17_spill] sm:$0xff] }
 0x17f   :  { %v1180_v61 = vmul.f32 %v1142_v17, %v7595_v7  ;;  %v1182_v5 = vmul.f32 %v1144_v6, %v7597_v9  ;;  %v1183_v35 = vmul.f32 %v1145_v27, %v7598_v22  ;;  %v7602_v17 = vsub.f32 1.0, %v4966_v54  ;;  %v7611_v54 = vld [vmem:[#allocation19_spill] sm:$0xff]  ;;  %v7613_v62 = vld [vmem:[#allocation21_spill] sm:$0xff]  ;;  %v7619_v21 = vld [vmem:[#allocation50_spill] sm:$0xff] }
 0x180   :  { %v1185_v37 = vmul.f32 %v1147_v44, %v7600_v34  ;;  %v1186_v60 = vmul.f32 %v1148_v49, %v7601_v13  ;;  %v1188_v19 = vmul.f32 %v1150_v56, %v7603_v12  ;;  %v7604_v6 = vsub.f32 1.0, %v4978_v46  ;;  %v7615_v46 = vld [vmem:[#allocation23_spill] sm:$0xff] }
 0x181   :  { %v1187_v7 = vmul.f32 %v1149_v1, %v7602_v17  ;;  %v7605_v27 = vsub.f32 1.0, %v4984_v43  ;;  %v1191_v11 = vmul.f32 %v1153_v40, %v7606_v55  ;;  %v7608_v44 = vsub.f32 1.0, %v7607_v24  ;;  %v7617_v43 = vld [vmem:[#allocation33_spill] sm:$0xff] }
 0x182   :  { %v1189_v9 = vmul.f32 %v1151_v47, %v7604_v6  ;;  %v7610_v49 = vsub.f32 1.0, %v7609_v42  ;;  %v7612_v1 = vsub.f32 1.0, %v7611_v54  ;;  %v7614_v56 = vsub.f32 1.0, %v7613_v62  ;;  %v7621_v24 = vld [vmem:[#allocation29_spill] sm:$0xff]  ;;  %v7623_v42 = vld [vmem:[#allocation40_spill] sm:$0xff]  ;;  %v7625_v54 = vld [vmem:[#allocation54_spill] sm:$0xff] }
 0x183   :  { %v1190_v22 = vmul.f32 %v1152_v3, %v7605_v27  ;;  %v1192_v34 = vmul.f32 %v1154_v16, %v7608_v44  ;;  %v7616_v47 = vsub.f32 1.0, %v7615_v46  ;;  %v7618_v3 = vsub.f32 1.0, %v7617_v43  ;;  %v7627_v62 = vld [vmem:[#allocation75_spill] sm:$0xff]  ;;  %v7629_v46 = vld [vmem:[#allocation78_spill] sm:$0xff]  ;;  %v7631_v43 = vld [vmem:[#allocation81_spill] sm:$0xff] }
 0x184   :  { %v1193_v13 = vmul.f32 %v1155_v10, %v7610_v49  ;;  %v1194_v17 = vmul.f32 %v1156_v48, %v7612_v1  ;;  %v1195_v12 = vmul.f32 %v1157_v39, %v7614_v56  ;;  %v7620_v40 = vsub.f32 1.0, %v7619_v21  ;;  %v7633_v21 = vld [vmem:[#allocation84_spill] sm:$0xff] }
 0x185   :  { %v1196_v6 = vmul.f32 %v1158_v53, %v7616_v47  ;;  %v1197_v27 = vmul.f32 %v1159_v25, %v7618_v3  ;;  %v7622_v16 = vsub.f32 1.0, %v7621_v24  ;;  %v7624_v10 = vsub.f32 1.0, %v7623_v42  ;;  %v7635_v24 = vld [vmem:[#allocation88_spill] sm:$0xff]  ;;  %v7637_v42 = vld [vmem:[#allocation125_spill] sm:$0xff] }
 0x186   :  { %v1198_v55 = vmul.f32 %v1160_v8, %v7620_v40  ;;  %v7626_v48 = vsub.f32 1.0, %v7625_v54  ;;  %v7628_v39 = vsub.f32 1.0, %v7627_v62  ;;  %v7630_v53 = vsub.f32 1.0, %v7629_v46  ;;  %v7639_v54 = vld [vmem:[#allocation151_spill] sm:$0xff]  ;;  %v7641_v62 = vld [vmem:[#allocation122_spill] sm:$0xff] }
 0x187   :  { %v1199_v44 = vmul.f32 %v1161_v15, %v7622_v16  ;;  %v1200_v49 = vmul.f32 %v1162_v52, %v7624_v10  ;;  %v7632_v25 = vsub.f32 1.0, %v7631_v43  ;;  %v7634_v8 = vsub.f32 1.0, %v7633_v21  ;;  %v7643_v46 = vld [vmem:[#allocation134_spill] sm:$0xff]  ;;  %v7645_v43 = vld [vmem:[#allocation124_spill] sm:$0xff] }
 0x188   :  { %v1201_v1 = vmul.f32 %v1163_v45, %v7626_v48  ;;  %v1202_v56 = vmul.f32 %v1164_v50, %v7628_v39  ;;  %v1203_v47 = vmul.f32 %v1165_v28, %v7630_v53  ;;  %v7636_v15 = vsub.f32 1.0, %v7635_v24  ;;  %v7647_v21 = vld [vmem:[#allocation150_spill] sm:$0xff]  ;;  %v7649_v24 = vld [vmem:[#allocation32_spill] sm:$0xff] }
 0x189   :  { %v1204_v3 = vmul.f32 %v1166_v20, %v7632_v25  ;;  %v1205_v40 = vmul.f32 %v1167_v36, %v7634_v8  ;;  %v7638_v52 = vsub.f32 1.0, %v7637_v42  ;;  %v7640_v45 = vsub.f32 1.0, %v7639_v54  ;;  %v7651_v42 = vld [vmem:[#allocation160_spill] sm:$0xff]  ;;  %v7653_v54 = vld [vmem:[#allocation53_spill] sm:$0xff] }
 0x18a   :  { %v1206_v16 = vmul.f32 %v1168_v33, %v7636_v15  ;;  %v7642_v50 = vsub.f32 1.0, %v7641_v62  ;;  %v7644_v28 = vsub.f32 1.0, %v7643_v46  ;;  %v7646_v20 = vsub.f32 1.0, %v7645_v43  ;;  %v7655_v62 = vld [vmem:[#allocation133_spill] sm:$0xff]  ;;  %v7659_v43 = vld [vmem:[#allocation60_spill] sm:$0xff] }
 0x18b   :  { %v1207_v10 = vmul.f32 %v1169_v26, %v7638_v52  ;;  %v1208_v48 = vmul.f32 %v1170_v58, %v7640_v45  ;;  %v7648_v36 = vsub.f32 1.0, %v7647_v21  ;;  %v7650_v33 = vsub.f32 1.0, %v7649_v24  ;;  %v7657_v46 = vld [vmem:[#allocation173_spill] sm:$0xff]  ;;  %v7662_v24 = vld [vmem:[#allocation167_spill] sm:$0xff] }
 0x18c   :  { %v1209_v39 = vmul.f32 %v1171_v2, %v7642_v50  ;;  %v1210_v53 = vmul.f32 %v1172_v38, %v7644_v28  ;;  %v1211_v25 = vmul.f32 %v1173_v63, %v7646_v20  ;;  %v7652_v26 = vsub.f32 1.0, %v7651_v42  ;;  %v7660_v20 = vld [vmem:[#allocation159_spill] sm:$0xff] }
 0x18d   :  { %v1212_v8 = vmul.f32 %v1174_v57, %v7648_v36  ;;  %v1213_v15 = vmul.f32 %v1175_v23, %v7650_v33  ;;  %v7654_v58 = vsub.f32 1.0, %v7653_v54  ;;  %v7656_v2 = vsub.f32 1.0, %v7655_v62  ;;  %v7661_v57 = vld [vmem:[#allocation165_spill] sm:$0xff]  ;;  %v7663_v33 = vld [vmem:[#allocation172_spill] sm:$0xff] }
 0x18e   :  { %v1214_v52 = vmul.f32 %v1176_v31, %v7652_v26  ;;  %v7658_v38 = vsub.f32 1.0, %v7657_v46  ;;  %v1218_v63 = vadd.f32 %v1180_v61, %v7659_v43  ;;  %v1219_v21 = vadd.f32 %v1181_v30, %v7660_v20  ;;  %v7664_v31 = vld [vmem:[#allocation178_spill] sm:$0xff]  ;;  %v7665_v54 = vld [vmem:[#allocation180_spill] sm:$0xff] }
 0x18f   :  { %v1215_v45 = vmul.f32 %v1177_v4, %v7654_v58  ;;  %v1216_v50 = vmul.f32 %v1178_v41, %v7656_v2  ;;  %v1220_v36 = vadd.f32 %v1182_v5, %v7661_v57  ;;  %v1221_v23 = vadd.f32 %v1183_v35, %v7662_v24  ;;  %v7666_v58 = vld [vmem:[#allocation68_spill] sm:$0xff]  ;;  %v7667_v41 = vld [vmem:[#allocation70_spill] sm:$0xff] }
 0x190   :  { %v1217_v28 = vmul.f32 %v1179_v59, %v7658_v38  ;;  %v1222_v42 = vadd.f32 %v1184_v51, %v7663_v33  ;;  %v1223_v26 = vadd.f32 %v1185_v37, %v7664_v31  ;;  %v1224_v4 = vadd.f32 %v1186_v60, %v7665_v54  ;;  %v7669_v38 = vld [vmem:[#allocation31_spill] sm:$0xff]  ;;  %v7670_v43 = vld [vmem:[#allocation14_spill] sm:$0xff]  ;;  %v7671_v20 = vld [vmem:[#allocation16_spill] sm:$0xff] }
 0x191   :  { %v1225_v62 = vadd.f32 %v1187_v7, %v7666_v58  ;;  %v1226_v2 = vadd.f32 %v1188_v19, %v7667_v41  ;;  %v1227_v59 = vadd.f32 %v1189_v9, %v7668_v18  ;;  %v1228_v61 = vadd.f32 %v1190_v22, %v7669_v38  ;;  %v7672_v57 = vld [vmem:[#allocation18_spill] sm:$0xff]  ;;  %v7673_v35 = vld [vmem:[#allocation20_spill] sm:$0xff]  ;;  %v7675_v31 = vld [vmem:[#allocation25_spill] sm:$0xff] }
 0x192   :  { %v1229_v30 = vadd.f32 %v1191_v11, %v7670_v43  ;;  %v1230_v5 = vadd.f32 %v1192_v34, %v7671_v20  ;;  %v1231_v24 = vadd.f32 %v1193_v13, %v7672_v57  ;;  %v1232_v51 = vadd.f32 %v1194_v17, %v7673_v35  ;;  %v7674_v33 = vld [vmem:[#allocation22_spill] sm:$0xff]  ;;  %v7676_v60 = vld [vmem:[#allocation37_spill] sm:$0xff]  ;;  %v7677_v58 = vld [vmem:[#allocation11_spill] sm:$0xff] }
 0x193   :  { %v1233_v37 = vadd.f32 %v1195_v12, %v7674_v33  ;;  %v1234_v54 = vadd.f32 %v1196_v6, %v7675_v31  ;;  %v1235_v7 = vadd.f32 %v1197_v27, %v7676_v60  ;;  %v1236_v19 = vadd.f32 %v1198_v55, %v7677_v58  ;;  %v7678_v41 = vld [vmem:[#allocation34_spill] sm:$0xff]  ;;  %v7679_v9 = vld [vmem:[#allocation48_spill] sm:$0xff]  ;;  %v7681_v43 = vld [vmem:[#allocation77_spill] sm:$0xff] }
 0x194   :  { %v1237_v18 = vadd.f32 %v1199_v44, %v7678_v41  ;;  %v1238_v22 = vadd.f32 %v1200_v49, %v7679_v9  ;;  %v7680_v38 = vld [vmem:[#allocation62_spill] sm:$0xff]  ;;  %v1240_v34 = vadd.f32 %v1202_v56, %v7681_v43  ;;  %v7682_v20 = vld [vmem:[#allocation79_spill] sm:$0xff]  ;;  %v7686_v31 = vld [vmem:[#allocation148_spill] sm:$0xff] }
 0x195   :  { %v1239_v11 = vadd.f32 %v1201_v1, %v7680_v38  ;;  %v1241_v13 = vadd.f32 %v1203_v47, %v7682_v20  ;;  %v7683_v57 = vld [vmem:[#allocation82_spill] sm:$0xff]  ;;  %v1245_v27 = vadd.f32 %v1207_v10, %v7686_v31  ;;  %v7687_v60 = vld [vmem:[#allocation128_spill] sm:$0xff]  ;;  %v7688_v58 = vld [vmem:[#allocation163_spill] sm:$0xff]  ;;  %v5336_v38 = vsub.f32 1.0, %v1218_v63 }
 0x196   :  { %v1242_v17 = vadd.f32 %v1204_v3, %v7683_v57  ;;  %v7684_v35 = vld [vmem:[#allocation86_spill] sm:$0xff]  ;;  %v1246_v55 = vadd.f32 %v1208_v48, %v7687_v60  ;;  %v1247_v44 = vadd.f32 %v1209_v39, %v7688_v58  ;;  %v7689_v41 = vld [vmem:[#allocation49_spill] sm:$0xff]  ;;  %v7690_v9 = vld [vmem:[#allocation111_spill] sm:$0xff]  ;;  %v5341_v57 = vsub.f32 1.0, %v1219_v21 }
 0x197   :  { %v1243_v12 = vadd.f32 %v1205_v40, %v7684_v35  ;;  %v7685_v33 = vld [vmem:[#allocation94_spill] sm:$0xff]  ;;  %v1248_v49 = vadd.f32 %v1210_v53, %v7689_v41  ;;  %v1249_v1 = vadd.f32 %v1211_v25, %v7690_v9  ;;  %v7691_v56 = vld [vmem:[#allocation59_spill] sm:$0xff]  ;;  %v7693_v20 = vld [vmem:[#allocation129_spill] sm:$0xff]  ;;  %v5346_v31 = vsub.f32 1.0, %v1220_v36 }
 0x198   :  { %v1244_v6 = vadd.f32 %v1206_v16, %v7685_v33  ;;  %v1250_v47 = vadd.f32 %v1212_v8, %v7691_v56  ;;  %v7692_v43 = vld [vmem:[#allocation162_spill] sm:$0xff]  ;;  %v1252_v40 = vadd.f32 %v1214_v52, %v7693_v20  ;;  %v7694_v16 = vld [vmem:[#allocation63_spill] sm:$0xff]  ;;  %v7695_v35 = vld [vmem:[#allocation152_spill] sm:$0xff]  ;;  %v5348_v53 = vsub.f32 1.0, %v1221_v23 }
 0x199   :  { %v1251_v3 = vadd.f32 %v1213_v15, %v7692_v43  ;;  %v1253_v10 = vadd.f32 %v1215_v45, %v7694_v16  ;;  %v1254_v48 = vadd.f32 %v1216_v50, %v7695_v35  ;;  %v7696_v33 = vld [vmem:[#allocation135_spill] sm:$0xff]  ;;  %v5350_v25 = vsub.f32 1.0, %v1222_v42 }
 0x19a   :  { %v1255_v39 = vadd.f32 %v1217_v28, %v7696_v33  ;;  %v5352_v63 = vsub.f32 1.0, %v1223_v26  ;;  %v5354_v8 = vsub.f32 1.0, %v1224_v4  ;;  %v5356_v15 = vsub.f32 1.0, %v1225_v62 }
 0x19b   :  { %v5358_v21 = vsub.f32 1.0, %v1226_v2  ;;  %v5360_v52 = vsub.f32 1.0, %v1227_v59  ;;  %2271 = vrsqrt.f32 %v5336_v38  ;;  %v5363_v45 = vsub.f32 1.0, %v1228_v61 }
 0x19c   :  { %v5365_v50 = vsub.f32 1.0, %v1229_v30  ;;  %v5367_v28 = vsub.f32 1.0, %v1230_v5  ;;  %2273 = vrsqrt.f32 %v5341_v57  ;;  %v5370_v42 = vsub.f32 1.0, %v1231_v24 }
 0x19d   :  { %7697 = vst [vmem:[#allocation154_spill] sm:$0xff] %v5360_v52  ;;  %7698 = vst [vmem:[#allocation76_spill] sm:$0xff] %v5363_v45  ;;  %v5372_v36 = vsub.f32 1.0, %v1232_v51  ;;  %v5374_v62 = vsub.f32 1.0, %v1233_v37  ;;  %2275 = vrsqrt.f32 %v5346_v31  ;;  %v5377_v23 = vsub.f32 1.0, %v1234_v54 }
 0x19e   :  { %7699 = vst [vmem:[#allocation35_spill] sm:$0xff] %v5365_v50  ;;  %7700 = vst [vmem:[#allocation58_spill] sm:$0xff] %v5367_v28  ;;  %v5379_v26 = vsub.f32 1.0, %v1235_v7  ;;  %v5381_v4 = vsub.f32 1.0, %v1236_v19  ;;  %2277 = vrsqrt.f32 %v5348_v53  ;;  %v5384_v2 = vsub.f32 1.0, %v1237_v18 }
 0x19f   :  { %7701 = vst [vmem:[#allocation168_spill] sm:$0xff] %v5370_v42  ;;  %7702 = vst [vmem:[#allocation116_spill] sm:$0xff] %v5372_v36  ;;  %v5386_v59 = vsub.f32 1.0, %v1238_v22  ;;  %v5388_v61 = vsub.f32 1.0, %v1239_v11  ;;  %2279 = vrsqrt.f32 %v5350_v25  ;;  %v5391_v30 = vsub.f32 1.0, %v1240_v34 }
 0x1a0   :  { %7703 = vst [vmem:[#allocation155_spill] sm:$0xff] %v5374_v62  ;;  %7704 = vst [vmem:[#allocation36_spill] sm:$0xff] %v5379_v26  ;;  %v5393_v5 = vsub.f32 1.0, %v1241_v13  ;;  %v5395_v24 = vsub.f32 1.0, %v1242_v17  ;;  %v5397_v51 = vsub.f32 1.0, %v1243_v12  ;;  %v5399_v37 = vsub.f32 1.0, %v1244_v6 }
 0x1a1   :  { %7705 = vst [vmem:[#allocation157_spill] sm:$0xff] %v5384_v2  ;;  %v5401_v54 = vsub.f32 1.0, %v1245_v27  ;;  %v5403_v7 = vsub.f32 1.0, %v1246_v55  ;;  %2281 = vrsqrt.f32 %v5352_v63  ;;  %v5406_v19 = vsub.f32 1.0, %v1247_v44 }
 0x1a2   :  { %7706 = vst [vmem:[#allocation39_spill] sm:$0xff] %v5397_v51  ;;  %7707 = vst [vmem:[#allocation164_spill] sm:$0xff] %v5399_v37  ;;  %v5408_v18 = vsub.f32 1.0, %v1248_v49  ;;  %v5410_v22 = vsub.f32 1.0, %v1249_v1  ;;  %2283 = vrsqrt.f32 %v5354_v8  ;;  %v5413_v11 = vsub.f32 1.0, %v1250_v47 }
 0x1a3   :  { %7708 = vst [vmem:[#allocation136_spill] sm:$0xff] %v5401_v54  ;;  %7709 = vst [vmem:[#allocation126_spill] sm:$0xff] %v5403_v7  ;;  %v5415_v34 = vsub.f32 1.0, %v1251_v3  ;;  %v5417_v13 = vsub.f32 1.0, %v1252_v40  ;;  %2285 = vrsqrt.f32 %v5356_v15  ;;  %v5420_v17 = vsub.f32 1.0, %v1253_v10 }
 0x1a4   :  { %7710 = vst [vmem:[#allocation143_spill] sm:$0xff] %v5406_v19  ;;  %7711 = vst [vmem:[#allocation65_spill] sm:$0xff] %v5408_v18  ;;  %v5422_v12 = vsub.f32 1.0, %v1254_v48  ;;  %v5424_v6 = vsub.f32 1.0, %v1255_v39  ;;  %2287 = vrsqrt.f32 %v5358_v21  ;;  %vm1296_vm8 = vcmp.eq.f32.partialorder %v5336_v38, inf }
 0x1a5   :  { %7712 = vst [vmem:[#allocation42_spill] sm:$0xff] %v5410_v22  ;;  %7713 = vst [vmem:[#allocation66_spill] sm:$0xff] %v5413_v11  ;;  %v2272_v27 = vpop.eup %2271  ;;  %vm1303_vm9 = vcmp.eq.f32.partialorder %v5341_v57, inf  ;;  %2289 = vrsqrt.f32 %v5360_v52  ;;  %vm1298_vm15 = vcmp.eq.f32.partialorder %v5336_v38, 0.0  ;;  %vm1305_vm0 = vcmp.eq.f32.partialorder %v5341_v57, 0.0 }
 0x1a6   :  { %7714 = vst [vmem:[#allocation138_spill] sm:$0xff] %v5415_v34  ;;  %v2274_v55 = vpop.eup %2273  ;;  %vm1310_vm6 = vcmp.eq.f32.partialorder %v5346_v31, inf  ;;  %2291 = vrsqrt.f32 %v5363_v45  ;;  %vm1312_vm7 = vcmp.eq.f32.partialorder %v5346_v31, 0.0  ;;  %vm1317_vm10 = vcmp.eq.f32.partialorder %v5348_v53, inf }
 0x1a7   :  { %v2276_v44 = vpop.eup %2275  ;;  %2293 = vrsqrt.f32 %v5365_v50  ;;  %vm1319_vm11 = vcmp.eq.f32.partialorder %v5348_v53, 0.0  ;;  %v1320_v9 = vand.u32 2147483648, %v5348_v53  ;;  %vm1324_vm12 = vcmp.eq.f32.partialorder %v5350_v25, inf }
 0x1a8   :  { %v2278_v49 = vpop.eup %2277  ;;  %vm1326_vm13 = vcmp.eq.f32.partialorder %v5350_v25, 0.0  ;;  %2295 = vrsqrt.f32 %v5367_v28  ;;  %v1327_v56 = vand.u32 2147483648, %v5350_v25  ;;  %vm1331_vm1 = vcmp.eq.f32.partialorder %v5352_v63, inf }
 0x1a9   :  { %v2280_v1 = vpop.eup %2279  ;;  %vm1338_vm2 = vcmp.eq.f32.partialorder %v5354_v8, inf  ;;  %v1295_v43 = vmul.f32 %v2272_v27, %v5336_v38  ;;  %v1302_v3 = vmul.f32 %v2274_v55, %v5341_v57  ;;  %v1309_v16 = vmul.f32 %v2276_v44, %v5346_v31 }
 0x1aa   :  { %2297 = vrsqrt.f32 %v5370_v42  ;;  %v1316_v48 = vmul.f32 %v2278_v49, %v5348_v53  ;;  %v1323_v33 = vmul.f32 %v2280_v1, %v5350_v25  ;;  %v1355_v39 = vand.u32 2147483648, %v5358_v21 }
 0x1ab   :  { %v2282_v40 = vpop.eup %2281  ;;  %vm1359_vm14 = vcmp.eq.f32.partialorder %v5360_v52, inf  ;;  %v1362_v55 = vand.u32 2147483648, %v5360_v52  ;;  %2299 = vrsqrt.f32 %v5372_v36  ;;  %v1297_v1 = vsel %vm1296_vm8, %v5336_v38, %v1295_v43 }
 0x1ac   :  { %v2284_v35 = vpop.eup %2283  ;;  %v1304_v10 = vsel %vm1303_vm9, %v5341_v57, %v1302_v3  ;;  %v1330_v20 = vmul.f32 %v2282_v40, %v5352_v63  ;;  %vm1361_vm4 = vcmp.eq.f32.partialorder %v5360_v52, 0.0  ;;  %vm1373_vm3 = vcmp.eq.f32.partialorder %v5365_v50, inf }
 0x1ad   :  { %v2286_v27 = vpop.eup %2285  ;;  %v1311_v44 = vsel %vm1310_vm6, %v5346_v31, %v1309_v16  ;;  %v1337_v41 = vmul.f32 %v2284_v35, %v5354_v8  ;;  %vm1368_vm5 = vcmp.eq.f32.partialorder %v5363_v45, 0.0  ;;  %v1376_v43 = vand.u32 2147483648, %v5365_v50 }
 0x1ae   :  { %v2288_v49 = vpop.eup %2287  ;;  %vm1380_vm8 = vcmp.eq.f32.partialorder %v5367_v28, inf  ;;  %v1318_v40 = vsel %vm1317_vm10, %v5348_v53, %v1316_v48  ;;  %v1325_v58 = vsel %vm1324_vm12, %v5350_v25, %v1323_v33  ;;  %v1344_v60 = vmul.f32 %v2286_v27, %v5356_v15 }
 0x1af   :  { %v2290_v47 = vpop.eup %2289  ;;  %vm1375_vm9 = vcmp.eq.f32.partialorder %v5365_v50, 0.0  ;;  %2301 = vrsqrt.f32 %v5374_v62  ;;  %v7715_v35 = vand.u32 2147483648, %v5336_v38  ;;  %v7716_v14 = vand.u32 2147483648, %v5341_v57 }
 0x1b0   :  { %v2292_v3 = vpop.eup %2291  ;;  %v1351_v33 = vmul.f32 %v2288_v49, %v5358_v21  ;;  %vm1382_vm6 = vcmp.eq.f32.partialorder %v5367_v28, 0.0  ;;  %v1383_v27 = vand.u32 2147483648, %v5367_v28  ;;  %v7717_v0 = vand.u32 2147483648, %v5346_v31 }
 0x1b1   :  { %v2294_v16 = vpop.eup %2293  ;;  %v5498_v32 = vsel %vm1298_vm15, %v7715_v35, %v1297_v1  ;;  %v5504_v48 = vsel %vm1305_vm0, %v7716_v14, %v1304_v10  ;;  %v1332_v1 = vsel %vm1331_vm1, %v5352_v63, %v1330_v20  ;;  %v1358_v14 = vmul.f32 %v2290_v47, %v5360_v52 }
 0x1b2   :  { %v2296_v29 = vpop.eup %2295  ;;  %v5513_v46 = vsel %vm1312_vm7, %v7717_v0, %v1311_v44  ;;  %vm1387_vm15 = vcmp.eq.f32.partialorder %v5370_v42, inf  ;;  %v5522_v10 = vsel %vm1319_vm11, %v1320_v9, %v1318_v40  ;;  %v5526_v49 = vsel %vm1326_vm13, %v1327_v56, %v1325_v58 }
 0x1b3   :  { %v1339_v0 = vsel %vm1338_vm2, %v5354_v8, %v1337_v41  ;;  %v1365_v44 = vmul.f32 %v2292_v3, %v5363_v45  ;;  %vm7718_vm0 = vcmp.eq.f32.partialorder %v5356_v15, inf  ;;  %v1372_v20 = vmul.f32 %v2294_v16, %v5365_v50 }
 0x1b4   :  { %v1346_v47 = vsel %vm7718_vm0, %v5356_v15, %v1344_v60  ;;  %vm1389_vm7 = vcmp.eq.f32.partialorder %v5370_v42, 0.0  ;;  %v1390_v9 = vand.u32 2147483648, %v5370_v42  ;;  %2303 = vrsqrt.f32 %v5377_v23  ;;  %v2298_v58 = vpop.eup %2297 }
 0x1b5   :  { %v7719_v56 = vand.u32 2147483648, %v5352_v63  ;;  %vm7720_vm10 = vcmp.eq.f32.partialorder %v5352_v63, 0.0  ;;  %vm7721_vm11 = vcmp.eq.f32.partialorder %v5358_v21, inf  ;;  %v1379_v60 = vmul.f32 %v2296_v29, %v5367_v28 }
 0x1b6   :  { %v1353_v3 = vsel %vm7721_vm11, %v5358_v21, %v1351_v33  ;;  %2305 = vrsqrt.f32 %v5379_v26  ;;  %v7722_v40 = vand.u32 2147483648, %v5354_v8  ;;  %vm7723_vm12 = vcmp.eq.f32.partialorder %v5354_v8, 0.0 }
 0x1b7   :  { %v5543_v41 = vsel %vm7720_vm10, %v7719_v56, %v1332_v1  ;;  %v1360_v35 = vsel %vm1359_vm14, %v5360_v52, %v1358_v14  ;;  %vm1394_vm13 = vcmp.eq.f32.partialorder %v5372_v36, inf  ;;  %2307 = vrsqrt.f32 %v5381_v4  ;;  %v2300_v1 = vpop.eup %2299 }
 0x1b8   :  { %v5554_v16 = vsel %vm7723_vm12, %v7722_v40, %v1339_v0  ;;  %v7724_v33 = vand.u32 2147483648, %v5356_v15  ;;  %vm7725_vm1 = vcmp.eq.f32.partialorder %v5356_v15, 0.0  ;;  %vm7726_vm2 = vcmp.eq.f32.partialorder %v5363_v45, inf }
 0x1b9   :  { %v1367_v0 = vsel %vm7726_vm2, %v5363_v45, %v1365_v44  ;;  %vm1396_vm0 = vcmp.eq.f32.partialorder %v5372_v36, 0.0  ;;  %2309 = vrsqrt.f32 %v5384_v2  ;;  %vm7727_vm14 = vcmp.eq.f32.partialorder %v5358_v21, 0.0 }
 0x1ba   :  { %v5565_v29 = vsel %vm7725_vm1, %v7724_v33, %v1346_v47  ;;  %v5574_v14 = vsel %vm7727_vm14, %v1355_v39, %v1353_v3  ;;  %v1374_v56 = vsel %vm1373_vm3, %v5365_v50, %v1372_v20  ;;  %v1386_v40 = vmul.f32 %v2298_v58, %v5370_v42  ;;  %v2302_v39 = vpop.eup %2301 }
 0x1bb   :  { %2311 = vrsqrt.f32 %v5386_v59  ;;  %v5583_v47 = vsel %vm1361_vm4, %v1362_v55, %v1360_v35  ;;  %v1381_v44 = vsel %vm1380_vm8, %v5367_v28, %v1379_v60  ;;  %v1397_v33 = vand.u32 2147483648, %v5372_v36 }
 0x1bc   :  { %7728 = vst [vmem:[#allocation166_spill] sm:$0xff] %v5583_v47  ;;  %2313 = vrsqrt.f32 %v5388_v61  ;;  %v7729_v3 = vand.u32 2147483648, %v5363_v45  ;;  %v1393_v58 = vmul.f32 %v2300_v1, %v5372_v36  ;;  %vm1401_vm3 = vcmp.eq.f32.partialorder %v5374_v62, inf }
 0x1bd   :  { %2315 = vrsqrt.f32 %v5391_v30  ;;  %v5601_v55 = vsel %vm1375_vm9, %v1376_v43, %v1374_v56  ;;  %vm1403_vm4 = vcmp.eq.f32.partialorder %v5374_v62, 0.0  ;;  %v1404_v60 = vand.u32 2147483648, %v5374_v62 }
 0x1be   :  { %v5594_v20 = vsel %vm1368_vm5, %v7729_v3, %v1367_v0  ;;  %7731 = vst [vmem:[#allocation171_spill] sm:$0xff] %v5601_v55  ;;  %2317 = vrsqrt.f32 %v5393_v5  ;;  %v5608_v35 = vsel %vm1382_vm6, %v1383_v27, %v1381_v44  ;;  %v1388_v1 = vsel %vm1387_vm15, %v5370_v42, %v1386_v40  ;;  %v2304_v56 = vpop.eup %2303 }
 0x1bf   :  { %7730 = vst [vmem:[#allocation141_spill] sm:$0xff] %v5594_v20  ;;  %7732 = vst [vmem:[#allocation145_spill] sm:$0xff] %v5608_v35  ;;  %vm1408_vm5 = vcmp.eq.f32.partialorder %v5377_v23, inf  ;;  %2319 = vrsqrt.f32 %v5395_v24  ;;  %v1400_v43 = vmul.f32 %v2302_v39, %v5374_v62  ;;  %vm1410_vm8 = vcmp.eq.f32.partialorder %v5377_v23, 0.0 }
 0x1c0   :  { %v1411_v0 = vand.u32 2147483648, %v5377_v23  ;;  %vm1415_vm9 = vcmp.eq.f32.partialorder %v5379_v26, inf  ;;  %v1395_v27 = vsel %vm1394_vm13, %v5372_v36, %v1393_v58  ;;  %vm1422_vm6 = vcmp.eq.f32.partialorder %v5381_v4, inf  ;;  %v2306_v40 = vpop.eup %2305 }
 0x1c1   :  { %2321 = vrsqrt.f32 %v5397_v51  ;;  %v5627_v39 = vsel %vm1389_vm7, %v1390_v9, %v1388_v1  ;;  %vm1417_vm15 = vcmp.eq.f32.partialorder %v5379_v26, 0.0  ;;  %vm1424_vm10 = vcmp.eq.f32.partialorder %v5381_v4, 0.0  ;;  %v2308_v58 = vpop.eup %2307 }
 0x1c2   :  { %7733 = vst [vmem:[#allocation176_spill] sm:$0xff] %v5627_v39  ;;  %v1425_v3 = vand.u32 2147483648, %v5381_v4  ;;  %vm1429_vm11 = vcmp.eq.f32.partialorder %v5384_v2, inf  ;;  %vm1431_vm12 = vcmp.eq.f32.partialorder %v5384_v2, 0.0  ;;  %v1432_v44 = vand.u32 2147483648, %v5384_v2 }
 0x1c3   :  { %vm1436_vm13 = vcmp.eq.f32.partialorder %v5386_v59, inf  ;;  %2323 = vrsqrt.f32 %v5399_v37  ;;  %v2310_v9 = vpop.eup %2309  ;;  %v5640_v1 = vsel %vm1396_vm0, %v1397_v33, %v1395_v27  ;;  %v1402_v39 = vsel %vm1401_vm3, %v5374_v62, %v1400_v43 }
 0x1c4   :  { %7734 = vst [vmem:[#allocation118_spill] sm:$0xff] %v5640_v1  ;;  %v1407_v42 = vmul.f32 %v2304_v56, %v5377_v23  ;;  %vm1443_vm7 = vcmp.eq.f32.partialorder %v5388_v61, inf  ;;  %v1414_v55 = vmul.f32 %v2306_v40, %v5379_v26  ;;  %v1446_v35 = vand.u32 2147483648, %v5388_v61 }
 0x1c5   :  { %v2312_v28 = vpop.eup %2311  ;;  %vm1450_vm2 = vcmp.eq.f32.partialorder %v5391_v30, inf  ;;  %2325 = vrsqrt.f32 %v5401_v54  ;;  %v1421_v27 = vmul.f32 %v2308_v58, %v5381_v4  ;;  %v1453_v43 = vand.u32 2147483648, %v5391_v30 }
 0x1c6   :  { %v2314_v33 = vpop.eup %2313  ;;  %vm1457_vm3 = vcmp.eq.f32.partialorder %v5393_v5, inf  ;;  %2327 = vrsqrt.f32 %v5403_v7  ;;  %v5660_v40 = vsel %vm1403_vm4, %v1404_v60, %v1402_v39  ;;  %v1428_v1 = vmul.f32 %v2310_v9, %v5384_v2 }
 0x1c7   :  { %v2316_v56 = vpop.eup %2315  ;;  %7735 = vst [vmem:[#allocation127_spill] sm:$0xff] %v5660_v40  ;;  %v1460_v36 = vand.u32 2147483648, %v5393_v5  ;;  %vm1464_vm1 = vcmp.eq.f32.partialorder %v5395_v24, inf  ;;  %v1409_v50 = vsel %vm1408_vm5, %v5377_v23, %v1407_v42  ;;  %vm1459_vm14 = vcmp.eq.f32.partialorder %v5393_v5, 0.0 }
 0x1c8   :  { %v2318_v58 = vpop.eup %2317  ;;  %vm1466_vm0 = vcmp.eq.f32.partialorder %v5395_v24, 0.0  ;;  %v1467_v20 = vand.u32 2147483648, %v5395_v24  ;;  %vm1471_vm4 = vcmp.eq.f32.partialorder %v5397_v51, inf  ;;  %2329 = vrsqrt.f32 %v5406_v19 }
 0x1c9   :  { %v2320_v60 = vpop.eup %2319  ;;  %v1416_v39 = vsel %vm1415_vm9, %v5379_v26, %v1414_v55  ;;  %v1435_v9 = vmul.f32 %v2312_v28, %v5386_v59  ;;  %v1474_v40 = vand.u32 2147483648, %v5397_v51  ;;  %2331 = vrsqrt.f32 %v5408_v18 }
 0x1ca   :  { %v1423_v42 = vsel %vm1422_vm6, %v5381_v4, %v1421_v27  ;;  %v1442_v62 = vmul.f32 %v2314_v33, %v5388_v61  ;;  %v1449_v45 = vmul.f32 %v2316_v56, %v5391_v30  ;;  %vm1473_vm5 = vcmp.eq.f32.partialorder %v5397_v51, 0.0 }
 0x1cb   :  { %2333 = vrsqrt.f32 %v5424_v6  ;;  %v2322_v47 = vpop.eup %2321  ;;  %v5688_v28 = vsel %vm1410_vm8, %v1411_v0, %v1409_v50  ;;  %v1430_v55 = vsel %vm1429_vm11, %v5384_v2, %v1428_v1  ;;  %vm1478_vm9 = vcmp.eq.f32.partialorder %v5399_v37, inf }
 0x1cc   :  { %2335 = vrsqrt.f32 %v5410_v22  ;;  %v1456_v33 = vmul.f32 %v2318_v58, %v5393_v5  ;;  %v1463_v27 = vmul.f32 %v2320_v60, %v5395_v24  ;;  %vm1480_vm6 = vcmp.eq.f32.partialorder %v5399_v37, 0.0 }
 0x1cd   :  { %v1481_v56 = vand.u32 2147483648, %v5399_v37  ;;  %v2324_v52 = vpop.eup %2323  ;;  %v7736_v50 = vand.u32 2147483648, %v5379_v26  ;;  %v5707_v1 = vsel %vm1424_vm10, %v1425_v3, %v1423_v42  ;;  %v1437_v58 = vsel %vm1436_vm13, %v5386_v59, %v1435_v9 }
 0x1ce   :  { %vm1485_vm8 = vcmp.eq.f32.partialorder %v5401_v54, inf  ;;  %v5715_v60 = vsel %vm1431_vm12, %v1432_v44, %v1430_v55  ;;  %v1444_v26 = vsel %vm1443_vm7, %v5388_v61, %v1442_v62  ;;  %v1470_v3 = vmul.f32 %v2322_v47, %v5397_v51 }
 0x1cf   :  { %v5703_v0 = vsel %vm1417_vm15, %v7736_v50, %v1416_v39  ;;  %7737 = vst [vmem:[#allocation43_spill] sm:$0xff] %v5715_v60  ;;  %v1451_v39 = vsel %vm1450_vm2, %v5391_v30, %v1449_v45  ;;  %vm1487_vm15 = vcmp.eq.f32.partialorder %v5401_v54, 0.0  ;;  %v2326_v42 = vpop.eup %2325  ;;  %v1488_v9 = vand.u32 2147483648, %v5401_v54 }
 0x1d0   :  { %vm1492_vm10 = vcmp.eq.f32.partialorder %v5403_v7, inf  ;;  %vm1494_vm11 = vcmp.eq.f32.partialorder %v5403_v7, 0.0  ;;  %2337 = vrsqrt.f32 %v5413_v11  ;;  %v2328_v44 = vpop.eup %2327  ;;  %v7738_v62 = vand.u32 2147483648, %v5386_v59 }
 0x1d1   :  { %vm7739_vm12 = vcmp.eq.f32.partialorder %v5386_v59, 0.0  ;;  %v1458_v45 = vsel %vm1457_vm3, %v5393_v5, %v1456_v33  ;;  %v1465_v47 = vsel %vm1464_vm1, %v5395_v24, %v1463_v27  ;;  %v1477_v50 = vmul.f32 %v2324_v52, %v5399_v37 }
 0x1d2   :  { %v5733_v55 = vsel %vm7739_vm12, %v7738_v62, %v1437_v58  ;;  %vm7740_vm13 = vcmp.eq.f32.partialorder %v5388_v61, 0.0  ;;  %vm7741_vm7 = vcmp.eq.f32.partialorder %v5391_v30, 0.0  ;;  %v1495_v58 = vand.u32 2147483648, %v5403_v7  ;;  %v2330_v62 = vpop.eup %2329 }
 0x1d3   :  { %v5744_v60 = vsel %vm7740_vm13, %v1446_v35, %v1444_v26  ;;  %v5748_v2 = vsel %vm7741_vm7, %v1453_v43, %v1451_v39  ;;  %vm1499_vm2 = vcmp.eq.f32.partialorder %v5406_v19, inf  ;;  %v1472_v33 = vsel %vm1471_vm4, %v5397_v51, %v1470_v3  ;;  %v2332_v52 = vpop.eup %2331 }
 0x1d4   :  { %v1484_v27 = vmul.f32 %v2326_v42, %v5401_v54  ;;  %vm1501_vm1 = vcmp.eq.f32.partialorder %v5406_v19, 0.0  ;;  %2339 = vrsqrt.f32 %v5415_v34  ;;  %v5760_v26 = vsel %vm1459_vm14, %v1460_v36, %v1458_v45 }
 0x1d5   :  { %v5764_v35 = vsel %vm1466_vm0, %v1467_v20, %v1465_v47  ;;  %v1491_v43 = vmul.f32 %v2328_v44, %v5403_v7  ;;  %v1502_v39 = vand.u32 2147483648, %v5406_v19  ;;  %v2334_v3 = vpop.eup %2333  ;;  %v1479_v42 = vsel %vm1478_vm9, %v5399_v37, %v1477_v50  ;;  %v7779_v37 = vld [vmem:[#allocation168_spill] sm:$0xff] }
 0x1d6   :  { %vm1506_vm3 = vcmp.eq.f32.partialorder %v5408_v18, inf  ;;  %vm1508_vm4 = vcmp.eq.f32.partialorder %v5408_v18, 0.0  ;;  %v1509_v36 = vand.u32 2147483648, %v5408_v18  ;;  %v2336_v45 = vpop.eup %2335  ;;  %v5776_v20 = vsel %vm1473_vm5, %v1474_v40, %v1472_v33 }
 0x1d7   :  { %7742 = vst [vmem:[#allocation67_spill] sm:$0xff] %v5776_v20  ;;  %v1498_v44 = vmul.f32 %v2330_v62, %v5406_v19  ;;  %vm1513_vm0 = vcmp.eq.f32.partialorder %v5410_v22, inf  ;;  %vm1515_vm14 = vcmp.eq.f32.partialorder %v5410_v22, 0.0  ;;  %v1486_v47 = vsel %vm1485_vm8, %v5401_v54, %v1484_v27 }
 0x1d8   :  { %v1516_v50 = vand.u32 2147483648, %v5410_v22  ;;  %vm1520_vm9 = vcmp.eq.f32.partialorder %v5413_v11, inf  ;;  %2341 = vrsqrt.f32 %v5417_v13  ;;  %v5789_v40 = vsel %vm1480_vm6, %v1481_v56, %v1479_v42 }
 0x1d9   :  { %7743 = vst [vmem:[#allocation144_spill] sm:$0xff] %v5789_v40  ;;  %v1493_v62 = vsel %vm1492_vm10, %v5403_v7, %v1491_v43  ;;  %v1505_v33 = vmul.f32 %v2332_v52, %v5408_v18  ;;  %v1554_v20 = vmul.f32 %v2334_v3, %v5424_v6  ;;  %v1512_v27 = vmul.f32 %v2336_v45, %v5410_v22 }
 0x1da   :  { %vm1522_vm5 = vcmp.eq.f32.partialorder %v5413_v11, 0.0  ;;  %v1523_v51 = vand.u32 2147483648, %v5413_v11  ;;  %vm1527_vm8 = vcmp.eq.f32.partialorder %v5415_v34, inf  ;;  %vm1555_vm12 = vcmp.eq.f32.partialorder %v5424_v6, inf  ;;  %v2338_v56 = vpop.eup %2337 }
 0x1db   :  { %v5803_v42 = vsel %vm1487_vm15, %v1488_v9, %v1486_v47  ;;  %v1500_v52 = vsel %vm1499_vm2, %v5406_v19, %v1498_v44  ;;  %v5812_v45 = vsel %vm1494_vm11, %v1495_v58, %v1493_v62  ;;  %2343 = vrsqrt.f32 %v5420_v17 }
 0x1dc   :  { %7744 = vst [vmem:[#allocation169_spill] sm:$0xff] %v5803_v42  ;;  %7745 = vst [vmem:[#allocation146_spill] sm:$0xff] %v5812_v45  ;;  %v1558_v54 = vand.u32 2147483648, %v5424_v6  ;;  %v1507_v9 = vsel %vm1506_vm3, %v5408_v18, %v1505_v33  ;;  %2345 = vrsqrt.f32 %v5422_v12  ;;  %v1556_v44 = vsel %vm1555_vm12, %v5424_v6, %v1554_v20  ;;  %v2426_v18 = vld [vmem:[#allocation5 + $0x18] sm:$0xff] }
 0x1dd   :  { %vm1557_vm6 = vcmp.eq.f32.partialorder %v5424_v6, 0.0  ;;  %v5825_v58 = vsel %vm1501_vm1, %v1502_v39, %v1500_v52  ;;  %v1514_v62 = vsel %vm1513_vm0, %v5410_v22, %v1512_v27  ;;  %v1519_v40 = vmul.f32 %v2338_v56, %v5413_v11 }
 0x1de   :  { %v2340_v47 = vpop.eup %2339  ;;  %7746 = vst [vmem:[#allocation174_spill] sm:$0xff] %v5825_v58  ;;  %vm1529_vm15 = vcmp.eq.f32.partialorder %v5415_v34, 0.0  ;;  %v1560_v20 = vmul.f32 %v5498_v32, %v5336_v38  ;;  %v1561_v3 = vmul.f32 %v5504_v48, %v5341_v57  ;;  %v1562_v39 = vmul.f32 %v5513_v46, %v5346_v31  ;;  %v7750_v48 = vld [vmem:[#allocation166_spill] sm:$0xff]  ;;  %v7767_v58 = vld [vmem:[#allocation109_spill] sm:$0xff] }
 0x1df   :  { %v1563_v52 = vmul.f32 %v5522_v10, %v5348_v53  ;;  %v5843_v27 = vsel %vm1508_vm4, %v1509_v36, %v1507_v9  ;;  %v1559_v56 = vsel %vm1557_vm6, %v1558_v54, %v1556_v44  ;;  %v1564_v33 = vmul.f32 %v5526_v49, %v5350_v25  ;;  %v7749_v54 = vld [vmem:[#allocation154_spill] sm:$0xff]  ;;  %v7751_v49 = vld [vmem:[#allocation76_spill] sm:$0xff]  ;;  %v7753_v36 = vld [vmem:[#allocation173_spill] sm:$0xff] }
 0x1e0   :  { %7747 = vst [vmem:[#allocation149_spill] sm:$0xff] %v5843_v27  ;;  %v5849_v32 = vmul.f32 %v5543_v41, %v5352_v63  ;;  %v5853_v38 = vsel %vm1515_vm14, %v1516_v50, %v1514_v62  ;;  %v1526_v46 = vmul.f32 %v2340_v47, %v5415_v34  ;;  %v5858_v57 = vmul.f32 %v5554_v16, %v5354_v8  ;;  %v7752_v8 = vld [vmem:[#allocation141_spill] sm:$0xff]  ;;  %v2423_v16 = vld [vmem:[#allocation5] sm:$0xff] }
 0x1e1   :  { %7748 = vst [vmem:[#allocation177_spill] sm:$0xff] %v5853_v38  ;;  %v5862_v31 = vmul.f32 %v5565_v29, %v5356_v15  ;;  %v1521_v25 = vsel %vm1520_vm9, %v5413_v11, %v1519_v40  ;;  %v5869_v63 = vmul.f32 %v5574_v14, %v5358_v21  ;;  %v5873_v10 = vmul.f32 %v7750_v48, %v7749_v54  ;;  %v2424_v44 = vld [vmem:[#allocation5 + $0x8] sm:$0xff]  ;;  %v7757_v54 = vld [vmem:[#allocation158_spill] sm:$0xff] }
 0x1e2   :  { %v2342_v53 = vpop.eup %2341  ;;  %v5877_v41 = vmul.f32 %v7752_v8, %v7751_v49  ;;  %v1597_v15 = vmul.f32 %v1559_v56, %v5424_v6  ;;  %v1636_v29 = vmul.f32 0.25, %v2423_v16  ;;  %v1673_v50 = vmul.f32 0.25, %v7753_v36  ;;  %v7755_v14 = vld [vmem:[#allocation93_spill] sm:$0xff]  ;;  %v7760_v8 = vld [vmem:[#allocation35_spill] sm:$0xff] }
 0x1e3   :  { %v7754_v40 = vsub.f32 1.0, %v7753_v36  ;;  %v1637_v21 = vmul.f32 0.25, %v2424_v44  ;;  %v7756_v47 = vsub.f32 1.0, %v7755_v14  ;;  %v7758_v48 = vsub.f32 1.0, %v7757_v54  ;;  %v7761_v16 = vld [vmem:[#allocation171_spill] sm:$0xff]  ;;  %v7762_v44 = vld [vmem:[#allocation112_spill] sm:$0xff] }
 0x1e4   :  { %v1788_v38 = vlaneseq  ;;  %v5889_v49 = vsel %vm1522_vm5, %v1523_v51, %v1521_v25  ;;  %v1528_v6 = vsel %vm1527_vm8, %v5415_v34, %v1526_v46  ;;  %v1533_v56 = vmul.f32 %v2342_v53, %v5417_v13  ;;  %v7765_v46 = vld [vmem:[#allocation90_spill] sm:$0xff]  ;;  %v7766_v53 = vld [vmem:[#allocation132_spill] sm:$0xff] }
 0x1e5   :  { %v1711_v9 = vmul.f32 0.75, %v7754_v40  ;;  %v1674_v62 = vmul.f32 0.75, %v7756_v47  ;;  %v1675_v43 = vmul.f32 0.75, %v7758_v48  ;;  %7759 = vst [vmem:[#allocation44_spill] sm:$0xff] %v5889_v49  ;;  %v5897_v36 = vmul.f32 %v7761_v16, %v7760_v8  ;;  %v2344_v40 = vpop.eup %2343  ;;  %v2425_v47 = vld [vmem:[#allocation5 + $0x10] sm:$0xff]  ;;  %v7763_v48 = vld [vmem:[#allocation161_spill] sm:$0xff] }
 0x1e6   :  { %vm1534_vm10 = vcmp.eq.f32.partialorder %v5417_v13, inf  ;;  %v1598_v14 = vmul.f32 %v1560_v20, %v7762_v44  ;;  %v1638_v54 = vmul.f32 0.25, %v2425_v47  ;;  %v7764_v51 = vsub.f32 1.0, %v7763_v48  ;;  %v5903_v11 = vpop.eup %2345 }
 0x1e7   :  { %v1789_v49 = vshrl.u32 %v1788_v38, 7  ;;  %v1599_v22 = vmul.f32 %v1561_v3, %v7765_v46  ;;  %v1635_v27 = vmul.f32 %v1597_v15, %v7766_v53  ;;  %v1639_v8 = vmul.f32 0.25, %v2426_v18  ;;  %v7771_v3 = vld [vmem:[#allocation58_spill] sm:$0xff]  ;;  %v7772_v15 = vld [vmem:[#allocation145_spill] sm:$0xff] }
 0x1e8   :  { %v1676_v25 = vmul.f32 0.75, %v7764_v51  ;;  %v1749_v16 = vadd.f32 %v1711_v9, %v1673_v50  ;;  %v7768_v19 = vsub.f32 1.0, %v7767_v58  ;;  %v1712_v7 = vadd.f32 %v1674_v62, %v1636_v29  ;;  %v7773_v58 = vld [vmem:[#allocation95_spill] sm:$0xff]  ;;  %v2427_v29 = vld [vmem:[#allocation5 + $0x20] sm:$0xff]  ;;  %v7774_v50 = vld [vmem:[#allocation170_spill] sm:$0xff] }
 0x1e9   :  { %v1713_v20 = vadd.f32 %v1675_v43, %v1637_v21  ;;  %v1826_v44 = vadd.s32 296, %v1789_v49  ;;  %v7769_v47 = vand.u32 2147483648, %v5415_v34  ;;  %v5916_v51 = vmul.f32 %v2344_v40, %v5420_v17  ;;  %v7776_v49 = vld [vmem:[#allocation38_spill] sm:$0xff]  ;;  %v2428_v53 = vld [vmem:[#allocation5 + $0x28] sm:$0xff]  ;;  %v7777_v40 = vld [vmem:[#allocation175_spill] sm:$0xff] }
 0x1ea   :  { %v1677_v45 = vmul.f32 0.75, %v7768_v19  ;;  %v5920_v46 = vmul.f32 %v7772_v15, %v7771_v3  ;;  %v5922_v18 = vand.u32 127, %v1788_v38  ;;  %v1600_v19 = vmul.f32 %v1562_v39, %v7773_v58  ;;  %v7780_v39 = vld [vmem:[#allocation176_spill] sm:$0xff] }
 0x1eb   :  { %v5913_v48 = vsel %vm1529_vm15, %v7769_v47, %v1528_v6  ;;  %v1640_v43 = vmul.f32 0.25, %v2427_v29  ;;  %v7775_v9 = vsub.f32 1.0, %v7774_v50  ;;  %v1714_v62 = vadd.f32 %v1676_v25, %v1638_v54  ;;  %v7781_v29 = vld [vmem:[#allocation116_spill] sm:$0xff]  ;;  %v7782_v50 = vld [vmem:[#allocation118_spill] sm:$0xff]  ;;  %v7783_v54 = vld [vmem:[#allocation91_spill] sm:$0xff] }
 0x1ec   :  { %7770 = vst [vmem:[#allocation45_spill] sm:$0xff] %v5913_v48  ;;  %v1601_v6 = vmul.f32 %v1563_v52, %v7776_v49  ;;  %v1641_v47 = vmul.f32 0.25, %v2428_v53  ;;  %v7778_v48 = vsub.f32 1.0, %v7777_v40  ;;  %v1787_v42 = vmul.f32 %v1749_v16, %v1635_v27  ;;  %v2429_v25 = vld [vmem:[#allocation5 + $0x30] sm:$0xff]  ;;  %v7786_v16 = vld [vmem:[#allocation97_spill] sm:$0xff] }
 0x1ed   :  { %v1678_v21 = vmul.f32 0.75, %v7775_v9  ;;  %v1715_v3 = vadd.f32 %v1677_v45, %v1639_v8  ;;  %v1750_v15 = vmul.f32 %v1712_v7, %v1598_v14  ;;  %v1751_v38 = vmul.f32 %v1713_v20, %v1599_v22  ;;  %v7784_v45 = vld [vmem:[#allocation179_spill] sm:$0xff] }
 0x1ee   :  { %v1679_v34 = vmul.f32 0.75, %v7778_v48  ;;  %vm1904_vm11 = vcmp.lt.s32.totalorder %v1826_v44, 300  ;;  %v5932_v58 = vmul.f32 %v7780_v39, %v7779_v37  ;;  %v5936_v9 = vmul.f32 %v7782_v50, %v7781_v29  ;;  %v2430_v20 = vld [vmem:[#allocation5 + $0x38] sm:$0xff]  ;;  %v7787_v48 = vld [vmem:[#allocation181_spill] sm:$0xff] }
 0x1ef   :  { %v1602_v52 = vmul.f32 %v1564_v33, %v7783_v54  ;;  %vm1945_vm13 = vcmp.lt.s32.totalorder %v5922_v18, 80  ;;  %vm1536_vm7 = vcmp.eq.f32.partialorder %v5417_v13, 0.0  ;;  %v1642_v27 = vmul.f32 0.25, %v2429_v25 }
 0x1f0   :  { %v7785_v7 = vsub.f32 1.0, %v7784_v45  ;;  %v1716_v14 = vadd.f32 %v1678_v21, %v1640_v43  ;;  %v1752_v8 = vmul.f32 %v1714_v62, %v1600_v19  ;;  %v1603_v37 = vmul.f32 %v5849_v32, %v7786_v16  ;;  %v7789_v19 = vld [vmem:[#allocation96_spill] sm:$0xff]  ;;  %v7794_v45 = vld [vmem:[#allocation41_spill] sm:$0xff] }
 0x1f1   :  { %v1643_v44 = vmul.f32 0.25, %v2430_v20  ;;  %v7788_v49 = vsub.f32 1.0, %v7787_v48  ;;  %v1942_v33 = vsel %vm1904_vm11, %v1787_v42, 0.0  ;;  %vm1541_vm2 = vcmp.eq.f32.partialorder %v5420_v17, inf  ;;  %v2431_v62 = vld [vmem:[#allocation5 + $0x40] sm:$0xff]  ;;  %v7790_v42 = vld [vmem:[#allocation69_spill] sm:$0xff] }
 0x1f2   :  { %v1680_v22 = vmul.f32 0.75, %v7785_v7  ;;  %v1717_v40 = vadd.f32 %v1679_v34, %v1641_v47  ;;  %v1753_v39 = vmul.f32 %v1715_v3, %v1601_v6  ;;  %v1946_v29 = vsel %vm1945_vm13, %v1750_v15, 0.0  ;;  %v7792_v15 = vld [vmem:[#allocation155_spill] sm:$0xff]  ;;  %v2432_v7 = vld [vmem:[#allocation5 + $0x48] sm:$0xff] }
 0x1f3   :  { %v1681_v53 = vmul.f32 0.75, %v7788_v49  ;;  %v1947_v43 = vsel %vm1945_vm13, %v1751_v38, 0.0  ;;  %v1535_v32 = vsel %vm1534_vm10, %v5417_v13, %v1533_v56  ;;  %v1604_v21 = vmul.f32 %v5858_v57, %v7789_v19  ;;  %v7793_v38 = vld [vmem:[#allocation127_spill] sm:$0xff] }
 0x1f4   :  { %v1644_v50 = vmul.f32 0.25, %v2431_v62  ;;  %v7791_v54 = vsub.f32 1.0, %v7790_v42  ;;  %v1718_v34 = vadd.f32 %v1680_v22, %v1642_v27  ;;  %v1754_v6 = vmul.f32 %v1716_v14, %v1602_v52  ;;  %v7795_v48 = vld [vmem:[#allocation71_spill] sm:$0xff]  ;;  %v2433_v62 = vld [vmem:[#allocation5 + $0x50] sm:$0xff] }
 0x1f5   :  { %v1948_v47 = vsel %vm1945_vm13, %v1752_v8, 0.0  ;;  %v5963_v3 = vsel %vm1945_vm13, %v1942_v33, 0.0  ;;  %v5967_v56 = vmul.f32 %v7793_v38, %v7792_v15  ;;  %v1605_v57 = vmul.f32 %v5862_v31, %v7794_v45  ;;  %v7797_v33 = vld [vmem:[#allocation98_spill] sm:$0xff]  ;;  %v7802_v38 = vld [vmem:[#allocation13_spill] sm:$0xff] }
 0x1f6   :  { %v1682_v25 = vmul.f32 0.75, %v7791_v54  ;;  %v1645_v16 = vmul.f32 0.25, %v2432_v7  ;;  %v1984_v20 = vadd.f32 %v1947_v43, %v1946_v29  ;;  %v7796_v27 = vsub.f32 1.0, %v7795_v48  ;;  %v7798_v29 = vld [vmem:[#allocation74_spill] sm:$0xff] }
 0x1f7   :  { %v1719_v22 = vadd.f32 %v1681_v53, %v1643_v44  ;;  %v1755_v14 = vmul.f32 %v1717_v40, %v1603_v37  ;;  %v1949_v8 = vsel %vm1945_vm13, %v1753_v39, 0.0  ;;  %v5977_v49 = vmul.f32 %v5688_v28, %v5377_v23  ;;  %v7800_v40 = vld [vmem:[#allocation36_spill] sm:$0xff]  ;;  %v2434_v39 = vld [vmem:[#allocation5 + $0x58] sm:$0xff] }
 0x1f8   :  { %v1683_v52 = vmul.f32 0.75, %v7796_v27  ;;  %v1606_v19 = vmul.f32 %v5869_v63, %v7797_v33  ;;  %v1646_v31 = vmul.f32 0.25, %v2433_v62  ;;  %v1985_v42 = vadd.f32 %v1984_v20, %v1948_v47  ;;  %v7801_v28 = vld [vmem:[#allocation108_spill] sm:$0xff] }
 0x1f9   :  { %vm1543_vm1 = vcmp.eq.f32.partialorder %v5420_v17, 0.0  ;;  %v7799_v43 = vsub.f32 1.0, %v7798_v29  ;;  %v1720_v44 = vadd.f32 %v1682_v25, %v1644_v50  ;;  %v1756_v37 = vmul.f32 %v1718_v34, %v1604_v21  ;;  %v7805_v25 = vld [vmem:[#allocation46_spill] sm:$0xff]  ;;  %v2435_v34 = vld [vmem:[#allocation5 + $0x60] sm:$0xff] }
 0x1fa   :  { %v1950_v53 = vsel %vm1945_vm13, %v1754_v6, 0.0  ;;  %v5988_v23 = vmul.f32 %v5703_v0, %v7800_v40  ;;  %v1607_v63 = vmul.f32 %v5873_v10, %v7801_v28  ;;  %v1647_v15 = vmul.f32 0.25, %v2434_v39 }
 0x1fb   :  { %v1684_v54 = vmul.f32 0.75, %v7799_v43  ;;  %v1986_v47 = vadd.f32 %v1985_v42, %v1949_v8  ;;  %v7803_v45 = vsub.f32 1.0, %v7802_v38  ;;  %v1721_v20 = vadd.f32 %v1683_v52, %v1645_v16  ;;  %v7806_v8 = vld [vmem:[#allocation15_spill] sm:$0xff]  ;;  %v7809_v43 = vld [vmem:[#allocation17_spill] sm:$0xff] }
 0x1fc   :  { %v1757_v48 = vmul.f32 %v1719_v22, %v1605_v57  ;;  %v1951_v21 = vsel %vm1945_vm13, %v1755_v14, 0.0  ;;  %v7804_v50 = vand.u32 2147483648, %v5417_v13  ;;  %v1608_v10 = vmul.f32 %v5877_v41, %v7805_v25  ;;  %v7808_v22 = vld [vmem:[#allocation100_spill] sm:$0xff]  ;;  %v2436_v41 = vld [vmem:[#allocation5 + $0x68] sm:$0xff] }
 0x1fd   :  { %v1685_v7 = vmul.f32 0.75, %v7803_v45  ;;  %v1648_v6 = vmul.f32 0.25, %v2435_v34  ;;  %v1987_v27 = vadd.f32 %v1986_v47, %v1950_v53  ;;  %v7807_v33 = vsub.f32 1.0, %v7806_v8  ;;  %v7812_v47 = vld [vmem:[#allocation19_spill] sm:$0xff]  ;;  %v7815_v25 = vld [vmem:[#allocation21_spill] sm:$0xff] }
 0x1fe   :  { %v6000_v0 = vsel %vm1536_vm7, %v7804_v50, %v1535_v32  ;;  %v1722_v16 = vadd.f32 %v1684_v54, %v1646_v31  ;;  %v1758_v57 = vmul.f32 %v1720_v44, %v1606_v19  ;;  %v1952_v52 = vsel %vm1945_vm13, %v1756_v37, 0.0 }
 0x1ff   :  { %v1686_v62 = vmul.f32 0.75, %v7807_v33  ;;  %v1542_v32 = vsel %vm1541_vm2, %v5420_v17, %v5916_v51  ;;  %v1609_v14 = vmul.f32 %v5897_v36, %v7808_v22  ;;  %v1649_v42 = vmul.f32 0.25, %v2436_v41  ;;  %v7811_v51 = vld [vmem:[#allocation99_spill] sm:$0xff]  ;;  %v2437_v36 = vld [vmem:[#allocation5 + $0x70] sm:$0xff] }
 0x200   :  { %v1988_v29 = vadd.f32 %v1987_v27, %v1951_v21  ;;  %vm1548_vm3 = vcmp.eq.f32.partialorder %v5422_v12, inf  ;;  %v7810_v53 = vsub.f32 1.0, %v7809_v43  ;;  %v1723_v19 = vadd.f32 %v1685_v7, %v1647_v15  ;;  %v7814_v7 = vld [vmem:[#allocation113_spill] sm:$0xff] }
 0x201   :  { %v1759_v54 = vmul.f32 %v1721_v20, %v1607_v63  ;;  %v1953_v44 = vsel %vm1945_vm13, %v1757_v48, 0.0  ;;  %v1547_v37 = vmul.f32 %v5903_v11, %v5422_v12  ;;  %v1610_v40 = vmul.f32 %v5920_v46, %v7811_v51  ;;  %v2438_v20 = vld [vmem:[#allocation5 + $0x78] sm:$0xff]  ;;  %v7821_v43 = vld [vmem:[#allocation157_spill] sm:$0xff] }
 0x202   :  { %v1687_v31 = vmul.f32 0.75, %v7810_v53  ;;  %v1650_v28 = vmul.f32 0.25, %v2437_v36  ;;  %v1989_v39 = vadd.f32 %v1988_v29, %v1952_v52  ;;  %v7813_v38 = vsub.f32 1.0, %v7812_v47  ;;  %v7819_v52 = vld [vmem:[#allocation23_spill] sm:$0xff]  ;;  %v7824_v51 = vld [vmem:[#allocation33_spill] sm:$0xff] }
 0x203   :  { %v1724_v21 = vadd.f32 %v1686_v62, %v1648_v6  ;;  %v1760_v50 = vmul.f32 %v1722_v16, %v1608_v10  ;;  %v1954_v63 = vsel %vm1945_vm13, %v1758_v57, 0.0  ;;  %v1578_v15 = vmul.f32 %v5707_v1, %v5381_v4  ;;  %v7818_v4 = vld [vmem:[#allocation51_spill] sm:$0xff] }
 0x204   :  { %v1688_v45 = vmul.f32 0.75, %v7813_v38  ;;  %v1611_v11 = vmul.f32 %v5932_v58, %v7814_v7  ;;  %v1651_v48 = vmul.f32 0.25, %v2438_v20  ;;  %v1990_v46 = vadd.f32 %v1989_v39, %v1953_v44  ;;  %v2439_v58 = vld [vmem:[#allocation5 + $0x80] sm:$0xff]  ;;  %v7822_v53 = vld [vmem:[#allocation43_spill] sm:$0xff]  ;;  %v7827_v7 = vld [vmem:[#allocation50_spill] sm:$0xff] }
 0x205   :  { %v7816_v34 = vsub.f32 1.0, %v7815_v25  ;;  %v1725_v8 = vadd.f32 %v1687_v31, %v1649_v42  ;;  %v1761_v33 = vmul.f32 %v1723_v19, %v1609_v14  ;;  %v1955_v10 = vsel %vm1945_vm13, %v1759_v54, 0.0  ;;  %v7823_v19 = vld [vmem:[#allocation102_spill] sm:$0xff]  ;;  %v2440_v54 = vld [vmem:[#allocation5 + $0x88] sm:$0xff] }
 0x206   :  { %v7817_v6 = vand.u32 2147483648, %v5420_v17  ;;  %v1612_v1 = vmul.f32 %v5936_v9, %v7818_v4  ;;  %v1652_v16 = vmul.f32 0.25, %v2439_v58  ;;  %v1991_v57 = vadd.f32 %v1990_v46, %v1954_v63 }
 0x207   :  { %v1689_v27 = vmul.f32 0.75, %v7816_v34  ;;  %v7820_v22 = vsub.f32 1.0, %v7819_v52  ;;  %v1726_v42 = vadd.f32 %v1688_v45, %v1650_v28  ;;  %v1762_v14 = vmul.f32 %v1724_v21, %v1610_v40  ;;  %v7826_v45 = vld [vmem:[#allocation101_spill] sm:$0xff] }
 0x208   :  { %v6039_v62 = vsel %vm1543_vm1, %v7817_v6, %v1542_v32  ;;  %v1956_v29 = vsel %vm1945_vm13, %v1760_v50, 0.0  ;;  %v1579_v31 = vmul.f32 %v7822_v53, %v7821_v43  ;;  %v1613_v32 = vmul.f32 %v5967_v56, %v7823_v19  ;;  %v2441_v56 = vld [vmem:[#allocation5 + $0x90] sm:$0xff] }
 0x209   :  { %v1690_v41 = vmul.f32 0.75, %v7820_v22  ;;  %v1653_v44 = vmul.f32 0.25, %v2440_v54  ;;  %v1992_v9 = vadd.f32 %v1991_v57, %v1955_v10  ;;  %vm1550_vm4 = vcmp.eq.f32.partialorder %v5422_v12, 0.0  ;;  %v7832_v57 = vld [vmem:[#allocation57_spill] sm:$0xff] }
 0x20a   :  { %v7825_v36 = vsub.f32 1.0, %v7824_v51  ;;  %v1727_v47 = vadd.f32 %v1689_v27, %v1651_v48  ;;  %v1763_v28 = vmul.f32 %v1725_v8, %v1611_v11  ;;  %v1957_v40 = vsel %vm1945_vm13, %v1761_v33, 0.0  ;;  %v7829_v27 = vld [vmem:[#allocation115_spill] sm:$0xff]  ;;  %v7830_v33 = vld [vmem:[#allocation29_spill] sm:$0xff] }
 0x20b   :  { %v1580_v38 = vmul.f32 %v5733_v55, %v5386_v59  ;;  %v1614_v21 = vmul.f32 %v5977_v49, %v7826_v45  ;;  %v1654_v50 = vmul.f32 0.25, %v2441_v56  ;;  %v1993_v63 = vadd.f32 %v1992_v9, %v1956_v29  ;;  %v2442_v55 = vld [vmem:[#allocation5 + $0x98] sm:$0xff] }
 0x20c   :  { %v1691_v39 = vmul.f32 0.75, %v7825_v36  ;;  %v7828_v20 = vsub.f32 1.0, %v7827_v7  ;;  %v1728_v25 = vadd.f32 %v1690_v41, %v1652_v16  ;;  %v1764_v34 = vmul.f32 %v1726_v42, %v1612_v1 }
 0x20d   :  { %v1958_v11 = vsel %vm1945_vm13, %v1762_v14, 0.0  ;;  %v1549_v48 = vsel %vm1548_vm3, %v5422_v12, %v1547_v37  ;;  %v1615_v59 = vmul.f32 %v5988_v23, %v7829_v27  ;;  %v1655_v49 = vmul.f32 0.25, %v2442_v55  ;;  %v2443_v37 = vld [vmem:[#allocation5 + $0xa0] sm:$0xff]  ;;  %v7843_v27 = vld [vmem:[#allocation78_spill] sm:$0xff] }
 0x20e   :  { %v1692_v46 = vmul.f32 0.75, %v7828_v20  ;;  %v1994_v8 = vadd.f32 %v1993_v63, %v1957_v40  ;;  %v7831_v10 = vsub.f32 1.0, %v7830_v33  ;;  %v1729_v4 = vadd.f32 %v1691_v39, %v1653_v44  ;;  %v7833_v23 = vld [vmem:[#allocation40_spill] sm:$0xff]  ;;  %v2444_v44 = vld [vmem:[#allocation5 + $0xa8] sm:$0xff] }
 0x20f   :  { %v1765_v58 = vmul.f32 %v1727_v47, %v1613_v32  ;;  %v1959_v1 = vsel %vm1945_vm13, %v1763_v28, 0.0  ;;  %v1581_v16 = vmul.f32 %v5744_v60, %v5388_v61  ;;  %v1616_v52 = vmul.f32 %v1578_v15, %v7832_v57  ;;  %v7835_v32 = vld [vmem:[#allocation103_spill] sm:$0xff]  ;;  %v7836_v15 = vld [vmem:[#allocation54_spill] sm:$0xff]  ;;  %v7838_v40 = vld [vmem:[#allocation104_spill] sm:$0xff] }
 0x210   :  { %v1693_v6 = vmul.f32 0.75, %v7831_v10  ;;  %v1656_v22 = vmul.f32 0.25, %v2443_v37  ;;  %v1995_v41 = vadd.f32 %v1994_v8, %v1958_v11  ;;  %v7834_v42 = vsub.f32 1.0, %v7833_v23  ;;  %v7848_v23 = vld [vmem:[#allocation39_spill] sm:$0xff] }
 0x211   :  { %v1730_v29 = vadd.f32 %v1692_v46, %v1654_v50  ;;  %v1766_v43 = vmul.f32 %v1728_v25, %v1614_v21  ;;  %v1960_v53 = vsel %vm1945_vm13, %v1764_v34, 0.0  ;;  %v1582_v19 = vmul.f32 %v5748_v2, %v5391_v30  ;;  %v2445_v21 = vld [vmem:[#allocation5 + $0xb0] sm:$0xff] }
 0x212   :  { %v1694_v14 = vmul.f32 0.75, %v7834_v42  ;;  %v1617_v54 = vmul.f32 %v1579_v31, %v7835_v32  ;;  %v1657_v61 = vmul.f32 0.25, %v2444_v44  ;;  %v1996_v60 = vadd.f32 %v1995_v41, %v1959_v1  ;;  %v7839_v31 = vld [vmem:[#allocation75_spill] sm:$0xff] }
 0x213   :  { %v7837_v9 = vsub.f32 1.0, %v7836_v15  ;;  %v1731_v36 = vadd.f32 %v1693_v6, %v1655_v49  ;;  %v1767_v39 = vmul.f32 %v1729_v4, %v1615_v59  ;;  %v1961_v47 = vsel %vm1945_vm13, %v1765_v58, 0.0  ;;  %v7845_v6 = vld [vmem:[#allocation24_spill] sm:$0xff]  ;;  %v7849_v42 = vld [vmem:[#allocation67_spill] sm:$0xff] }
 0x214   :  { %v1583_v28 = vmul.f32 %v5760_v26, %v5393_v5  ;;  %v1618_v45 = vmul.f32 %v1580_v38, %v7838_v40  ;;  %v1658_v2 = vmul.f32 0.25, %v2445_v21  ;;  %v1997_v30 = vadd.f32 %v1996_v60, %v1960_v53  ;;  %v7842_v5 = vld [vmem:[#allocation117_spill] sm:$0xff]  ;;  %v2446_v38 = vld [vmem:[#allocation5 + $0xb8] sm:$0xff]  ;;  %v7853_v15 = vld [vmem:[#allocation164_spill] sm:$0xff] }
 0x215   :  { %v1695_v51 = vmul.f32 0.75, %v7837_v9  ;;  %v7840_v56 = vsub.f32 1.0, %v7839_v31  ;;  %v1732_v63 = vadd.f32 %v1694_v14, %v1656_v22  ;;  %v1768_v7 = vmul.f32 %v1730_v29, %v1616_v52  ;;  %v7850_v29 = vld [vmem:[#allocation107_spill] sm:$0xff]  ;;  %v2448_v53 = vld [vmem:[#allocation5 + $0xc8] sm:$0xff]  ;;  %v7854_v9 = vld [vmem:[#allocation144_spill] sm:$0xff] }
 0x216   :  { %v1962_v20 = vsel %vm1945_vm13, %v1766_v43, 0.0  ;;  %v7841_v46 = vand.u32 2147483648, %v5422_v12  ;;  %v1619_v26 = vmul.f32 %v1581_v16, %v7842_v5  ;;  %v1659_v34 = vmul.f32 0.25, %v2446_v38  ;;  %v7846_v16 = vld [vmem:[#allocation81_spill] sm:$0xff]  ;;  %v2450_v5 = vld [vmem:[#allocation5 + $0xd8] sm:$0xff] }
 0x217   :  { %v1696_v50 = vmul.f32 0.75, %v7840_v56  ;;  %v1998_v11 = vadd.f32 %v1997_v30, %v1961_v47  ;;  %v7844_v59 = vsub.f32 1.0, %v7843_v27  ;;  %v1733_v49 = vadd.f32 %v1695_v51, %v1657_v61  ;;  %v2449_v47 = vld [vmem:[#allocation5 + $0xd0] sm:$0xff] }
 0x218   :  { %v6098_v25 = vsel %vm1550_vm4, %v7841_v46, %v1549_v48  ;;  %v1769_v8 = vmul.f32 %v1731_v36, %v1617_v54  ;;  %v1963_v33 = vsel %vm1945_vm13, %v1767_v39, 0.0  ;;  %v1584_v10 = vmul.f32 %v5764_v35, %v5395_v24  ;;  %v2447_v48 = vld [vmem:[#allocation5 + $0xc0] sm:$0xff]  ;;  %v7855_v36 = vld [vmem:[#allocation106_spill] sm:$0xff] }
 0x219   :  { %v1697_v55 = vmul.f32 0.75, %v7844_v59  ;;  %v1620_v4 = vmul.f32 %v1582_v19, %v7845_v6  ;;  %v1660_v58 = vmul.f32 0.25, %v2447_v48  ;;  %v1999_v1 = vadd.f32 %v1998_v11, %v1962_v20  ;;  %v7851_v19 = vld [vmem:[#allocation84_spill] sm:$0xff]  ;;  %v7860_v20 = vld [vmem:[#allocation119_spill] sm:$0xff]  ;;  %v7865_v6 = vld [vmem:[#allocation105_spill] sm:$0xff] }
 0x21a   :  { %v7847_v57 = vsub.f32 1.0, %v7846_v16  ;;  %v1734_v37 = vadd.f32 %v1696_v50, %v1658_v2  ;;  %v1770_v22 = vmul.f32 %v1732_v63, %v1618_v45  ;;  %v1964_v41 = vsel %vm1945_vm13, %v1768_v7, 0.0  ;;  %v7858_v50 = vld [vmem:[#allocation136_spill] sm:$0xff]  ;;  %v7859_v63 = vld [vmem:[#allocation169_spill] sm:$0xff]  ;;  %v7866_v16 = vld [vmem:[#allocation151_spill] sm:$0xff] }
 0x21b   :  { %v1585_v14 = vmul.f32 %v7849_v42, %v7848_v23  ;;  %v1621_v43 = vmul.f32 %v1583_v28, %v7850_v29  ;;  %v1661_v24 = vmul.f32 0.25, %v2448_v53  ;;  %v2000_v35 = vadd.f32 %v1999_v1, %v1963_v33  ;;  %v7856_v28 = vld [vmem:[#allocation88_spill] sm:$0xff]  ;;  %v7864_v33 = vld [vmem:[#allocation146_spill] sm:$0xff]  ;;  %v7868_v23 = vld [vmem:[#allocation143_spill] sm:$0xff] }
 0x21c   :  { %v1698_v52 = vmul.f32 0.75, %v7847_v57  ;;  %v7852_v32 = vsub.f32 1.0, %v7851_v19  ;;  %v1735_v44 = vadd.f32 %v1697_v55, %v1659_v34  ;;  %v1771_v61 = vmul.f32 %v1733_v49, %v1619_v26  ;;  %v7861_v34 = vld [vmem:[#allocation125_spill] sm:$0xff]  ;;  %v2451_v48 = vld [vmem:[#allocation5 + $0xe0] sm:$0xff]  ;;  %v7869_v42 = vld [vmem:[#allocation174_spill] sm:$0xff] }
 0x21d   :  { %v1965_v60 = vsel %vm1945_vm13, %v1769_v8, 0.0  ;;  %v1586_v51 = vmul.f32 %v7854_v9, %v7853_v15  ;;  %v1622_v39 = vmul.f32 %v1584_v10, %v7855_v36  ;;  %v1662_v40 = vmul.f32 0.25, %v2449_v47  ;;  %v7863_v8 = vld [vmem:[#allocation126_spill] sm:$0xff]  ;;  %v2452_v53 = vld [vmem:[#allocation5 + $0xe8] sm:$0xff] }
 0x21e   :  { %v1699_v54 = vmul.f32 0.75, %v7852_v32  ;;  %v2001_v45 = vadd.f32 %v2000_v35, %v1964_v41  ;;  %v7857_v21 = vsub.f32 1.0, %v7856_v28  ;;  %v1736_v30 = vadd.f32 %v1698_v52, %v1660_v58  ;;  %v7870_v29 = vld [vmem:[#allocation26_spill] sm:$0xff]  ;;  %v7873_v15 = vld [vmem:[#allocation65_spill] sm:$0xff] }
 0x21f   :  { %v1772_v31 = vmul.f32 %v1734_v37, %v1620_v4  ;;  %v1966_v56 = vsel %vm1945_vm13, %v1770_v22, 0.0  ;;  %v1587_v7 = vmul.f32 %v7859_v63, %v7858_v50  ;;  %v1623_v46 = vmul.f32 %v1585_v14, %v7860_v20  ;;  %v7871_v19 = vld [vmem:[#allocation122_spill] sm:$0xff]  ;;  %v7874_v9 = vld [vmem:[#allocation149_spill] sm:$0xff] }
 0x220   :  { %v1700_v2 = vmul.f32 0.75, %v7857_v21  ;;  %v1663_v26 = vmul.f32 0.25, %v2450_v5  ;;  %v2002_v38 = vadd.f32 %v2001_v45, %v1965_v60  ;;  %v7862_v11 = vsub.f32 1.0, %v7861_v34  ;;  %v7875_v36 = vld [vmem:[#allocation110_spill] sm:$0xff]  ;;  %v7879_v63 = vld [vmem:[#allocation177_spill] sm:$0xff]  ;;  %v2454_v5 = vld [vmem:[#allocation5 + $0xf8] sm:$0xff] }
 0x221   :  { %v1737_v59 = vadd.f32 %v1699_v54, %v1661_v24  ;;  %v1773_v55 = vmul.f32 %v1735_v44, %v1621_v43  ;;  %v1967_v49 = vsel %vm1945_vm13, %v1771_v61, 0.0  ;;  %v1588_v10 = vmul.f32 %v7864_v33, %v7863_v8  ;;  %v2453_v47 = vld [vmem:[#allocation5 + $0xf0] sm:$0xff]  ;;  %v7881_v34 = vld [vmem:[#allocation124_spill] sm:$0xff] }
 0x222   :  { %v1701_v27 = vmul.f32 0.75, %v7862_v11  ;;  %v1624_v4 = vmul.f32 %v1586_v51, %v7865_v6  ;;  %v1664_v58 = vmul.f32 0.25, %v2451_v48  ;;  %v2003_v1 = vadd.f32 %v2002_v38, %v1966_v56  ;;  %v7876_v28 = vld [vmem:[#allocation134_spill] sm:$0xff]  ;;  %v7884_v33 = vld [vmem:[#allocation44_spill] sm:$0xff] }
 0x223   :  { %v7867_v57 = vsub.f32 1.0, %v7866_v16  ;;  %v1738_v37 = vadd.f32 %v1700_v2, %v1662_v40  ;;  %v1774_v22 = vmul.f32 %v1736_v30, %v1622_v39  ;;  %v1968_v41 = vsel %vm1945_vm13, %v1772_v31, 0.0  ;;  %v7878_v50 = vld [vmem:[#allocation42_spill] sm:$0xff]  ;;  %v7885_v6 = vld [vmem:[#allocation120_spill] sm:$0xff] }
 0x224   :  { %v1589_v14 = vmul.f32 %v7869_v42, %v7868_v23  ;;  %v1625_v43 = vmul.f32 %v1587_v7, %v7870_v29  ;;  %v1665_v24 = vmul.f32 0.25, %v2452_v53  ;;  %v2004_v35 = vadd.f32 %v2003_v1, %v1967_v49  ;;  %v7880_v20 = vld [vmem:[#allocation114_spill] sm:$0xff]  ;;  %v2455_v48 = vld [vmem:[#allocation5 + $0x100] sm:$0xff]  ;;  %v7889_v42 = vld [vmem:[#allocation45_spill] sm:$0xff] }
 0x225   :  { %v1702_v52 = vmul.f32 0.75, %v7867_v57  ;;  %v7872_v32 = vsub.f32 1.0, %v7871_v19  ;;  %v1739_v44 = vadd.f32 %v1701_v27, %v1663_v26  ;;  %v1775_v61 = vmul.f32 %v1737_v59, %v1623_v46  ;;  %v7883_v8 = vld [vmem:[#allocation66_spill] sm:$0xff]  ;;  %v7890_v29 = vld [vmem:[#allocation12_spill] sm:$0xff]  ;;  %v2456_v53 = vld [vmem:[#allocation5 + $0x108] sm:$0xff] }
 0x226   :  { %v1969_v60 = vsel %vm1945_vm13, %v1773_v55, 0.0  ;;  %v1590_v51 = vmul.f32 %v7874_v9, %v7873_v15  ;;  %v1626_v39 = vmul.f32 %v1588_v10, %v7875_v36  ;;  %v1666_v40 = vmul.f32 0.25, %v2453_v47  ;;  %v7886_v16 = vld [vmem:[#allocation150_spill] sm:$0xff]  ;;  %v7891_v19 = vld [vmem:[#allocation32_spill] sm:$0xff]  ;;  %v7893_v9 = vld [vmem:[#allocation27_spill] sm:$0xff] }
 0x227   :  { %v1703_v54 = vmul.f32 0.75, %v7872_v32  ;;  %v2005_v45 = vadd.f32 %v2004_v35, %v1968_v41  ;;  %v7877_v21 = vsub.f32 1.0, %v7876_v28  ;;  %v1740_v30 = vadd.f32 %v1702_v52, %v1664_v58  ;;  %v7888_v23 = vld [vmem:[#allocation138_spill] sm:$0xff] }
 0x228   :  { %v1776_v31 = vmul.f32 %v1738_v37, %v1624_v4  ;;  %v1970_v56 = vsel %vm1945_vm13, %v1774_v22, 0.0  ;;  %v1591_v7 = vmul.f32 %v7879_v63, %v7878_v50  ;;  %v1627_v46 = vmul.f32 %v1589_v14, %v7880_v20  ;;  %v2457_v36 = vld [vmem:[#allocation5 + $0x110] sm:$0xff]  ;;  %v2458_v63 = vld [vmem:[#allocation5 + $0x118] sm:$0xff] }
 0x229   :  { %v1704_v2 = vmul.f32 0.75, %v7877_v21  ;;  %v1667_v26 = vmul.f32 0.25, %v2454_v5  ;;  %v2006_v38 = vadd.f32 %v2005_v45, %v1969_v60  ;;  %v7882_v11 = vsub.f32 1.0, %v7881_v34 }
 0x22a   :  { %v1741_v59 = vadd.f32 %v1703_v54, %v1665_v24  ;;  %v1777_v55 = vmul.f32 %v1739_v44, %v1625_v43  ;;  %v1971_v49 = vsel %vm1945_vm13, %v1775_v61, 0.0  ;;  %v1592_v10 = vmul.f32 %v7884_v33, %v7883_v8 }
 0x22b   :  { %v1705_v27 = vmul.f32 0.75, %v7882_v11  ;;  %v1628_v4 = vmul.f32 %v1590_v51, %v7885_v6  ;;  %v1668_v58 = vmul.f32 0.25, %v2455_v48  ;;  %v2007_v1 = vadd.f32 %v2006_v38, %v1970_v56  ;;  %v7896_v56 = vld [vmem:[#allocation130_spill] sm:$0xff]  ;;  %v7902_v48 = vld [vmem:[#allocation121_spill] sm:$0xff] }
 0x22c   :  { %v7887_v57 = vsub.f32 1.0, %v7886_v16  ;;  %v1742_v37 = vadd.f32 %v1704_v2, %v1666_v40  ;;  %v1778_v22 = vmul.f32 %v1740_v30, %v1626_v39  ;;  %v1972_v41 = vsel %vm1945_vm13, %v1776_v31, 0.0  ;;  %v7894_v40 = vld [vmem:[#allocation160_spill] sm:$0xff]  ;;  %v7899_v11 = vld [vmem:[#allocation30_spill] sm:$0xff] }
 0x22d   :  { %v1593_v14 = vmul.f32 %v7889_v42, %v7888_v23  ;;  %v1629_v43 = vmul.f32 %v1591_v7, %v7890_v29  ;;  %v1669_v24 = vmul.f32 0.25, %v2456_v53  ;;  %v2008_v35 = vadd.f32 %v2007_v1, %v1971_v49  ;;  %v7897_v7 = vld [vmem:[#allocation53_spill] sm:$0xff] }
 0x22e   :  { %v1706_v52 = vmul.f32 0.75, %v7887_v57  ;;  %v7892_v32 = vsub.f32 1.0, %v7891_v19  ;;  %v1743_v44 = vadd.f32 %v1705_v27, %v1667_v26  ;;  %v1779_v61 = vmul.f32 %v1741_v59, %v1627_v46  ;;  %v2459_v59 = vld [vmem:[#allocation5 + $0x120] sm:$0xff]  ;;  %v7903_v57 = vld [vmem:[#allocation123_spill] sm:$0xff] }
 0x22f   :  { %v1973_v60 = vsel %vm1945_vm13, %v1777_v55, 0.0  ;;  %v1594_v15 = vmul.f32 %v6000_v0, %v5417_v13  ;;  %v1630_v51 = vmul.f32 %v1592_v10, %v7893_v9  ;;  %v1670_v39 = vmul.f32 0.25, %v2457_v36  ;;  %v7900_v55 = vld [vmem:[#allocation133_spill] sm:$0xff] }
 0x230   :  { %v1707_v54 = vmul.f32 0.75, %v7892_v32  ;;  %v2009_v47 = vadd.f32 %v2008_v35, %v1972_v41  ;;  %v7895_v45 = vsub.f32 1.0, %v7894_v40  ;;  %v1744_v21 = vadd.f32 %v1706_v52, %v1668_v58 }
 0x231   :  { %v1780_v2 = vmul.f32 %v1742_v37, %v1628_v4  ;;  %v1974_v30 = vsel %vm1945_vm13, %v1778_v22, 0.0  ;;  %v1595_v31 = vmul.f32 %v6039_v62, %v5420_v17  ;;  %v1631_v50 = vmul.f32 %v1593_v14, %v7896_v56 }
 0x232   :  { %v1708_v28 = vmul.f32 0.75, %v7895_v45  ;;  %v1671_v13 = vmul.f32 0.25, %v2458_v63  ;;  %v2010_v0 = vadd.f32 %v2009_v47, %v1973_v60  ;;  %v7898_v20 = vsub.f32 1.0, %v7897_v7 }
 0x233   :  { %v1745_v5 = vadd.f32 %v1707_v54, %v1669_v24  ;;  %v1781_v26 = vmul.f32 %v1743_v44, %v1629_v43  ;;  %v1975_v38 = vsel %vm1945_vm13, %v1779_v61, 0.0  ;;  %v1596_v34 = vmul.f32 %v6098_v25, %v5422_v12 }
 0x234   :  { %v1709_v46 = vmul.f32 0.75, %v7898_v20  ;;  %v1632_v27 = vmul.f32 %v1594_v15, %v7899_v11  ;;  %v1672_v17 = vmul.f32 0.25, %v2459_v59  ;;  %v2011_v62 = vadd.f32 %v2010_v0, %v1974_v30 }
 0x235   :  { %v7901_v49 = vsub.f32 1.0, %v7900_v55  ;;  %v1746_v33 = vadd.f32 %v1708_v28, %v1670_v39  ;;  %v1782_v10 = vmul.f32 %v1744_v21, %v1630_v51  ;;  %v1976_v6 = vsel %vm1945_vm13, %v1780_v2, 0.0 }
 0x236   :  { %v2012_v4 = vadd.f32 %v2011_v62, %v1975_v38  ;;  %v1633_v58 = vmul.f32 %v1595_v31, %v7902_v48  ;;  %v1747_v1 = vadd.f32 %v1709_v46, %v1671_v13  ;;  %v1783_v16 = vmul.f32 %v1745_v5, %v1631_v50 }
 0x237   :  { %v1710_v8 = vmul.f32 0.75, %v7901_v49  ;;  %v1977_v12 = vsel %vm1945_vm13, %v1781_v26, 0.0  ;;  %v1634_v52 = vmul.f32 %v1596_v34, %v7903_v57  ;;  %v1784_v22 = vmul.f32 %v1746_v33, %v1632_v27 }
 0x238   :  { %v2013_v25 = vadd.f32 %v2012_v4, %v1976_v6  ;;  %v1978_v41 = vsel %vm1945_vm13, %v1782_v10, 0.0  ;;  %v1785_v42 = vmul.f32 %v1747_v1, %v1633_v58  ;;  %v1979_v14 = vsel %vm1945_vm13, %v1783_v16, 0.0 }
 0x239   :  { %v1748_v37 = vadd.f32 %v1710_v8, %v1672_v17  ;;  %v1980_v53 = vsel %vm1945_vm13, %v1784_v22, 0.0 }
 0x23a   :  { %v2014_v23 = vadd.f32 %v2013_v25, %v1977_v12  ;;  %v1981_v35 = vsel %vm1945_vm13, %v1785_v42, 0.0 }
 0x23b   :  { %v1786_v43 = vmul.f32 %v1748_v37, %v1634_v52 }
 0x23c   :  { %v2015_v29 = vadd.f32 %v2014_v23, %v1978_v41 }
 0x23d   :  { %v1982_v32 = vsel %vm1945_vm13, %v1786_v43, 0.0 }
 0x23e   :  { %v2016_v24 = vadd.f32 %v2015_v29, %v1979_v14 }
 0x240   :  { %v2017_v19 = vadd.f32 %v2016_v24, %v1980_v53 }
 0x242   :  { %v2018_v54 = vadd.f32 %v2017_v19, %v1981_v35 }
 0x244   :  { %v2019_v44 = vadd.f32 %v2018_v54, %v1982_v32 }
 0x246   :  { %v2020_v61 = vadd.f32 %v2019_v44, %v5963_v3 }
 0x248   :  { %2021 = vst [vmem:[#allocation7] sm:$0xff] %v2020_v61 }
 0x249   :  { %2515 = shalt.err (!%p2512_p6)
}
 0x24a   :  { %s2516_s10 = scalar_lea.hbm %s6225_s2, 128 }
 0x24b   :  { %p2517_p7 = scmp.ne.s32.totalorder %s6225_s2, %s2516_s10  ;;  %p2520_p8 = scmp.lt.u32.totalorder %s2516_s10, %s6225_s2 }
 0x24d   :  { %p2522_p9 = pnand %p2520_p8, %p2517_p7 }
 0x24f   :  { %2525 = shalt.err (!%p2522_p9)
}
 0x250   :  { %2031 = dma.vmem_to_hbm [thread:$0]  %s2029_s6, 128, %s6225_s2, [#allocation4]  }
 0x251   :  { %2530 = dma.done.wait [#allocation4], 128  }
 0x252   :  { %2531 = vsyncadd [#allocation4], 4294967168 }
 0x253   :  { %2035 = vsyncpa [#allocation3], 1 }
 0x254   :  { %2036 = vsyncpa [#allocation6], 1 }
 0x255   :  { %2037 = vsyncpa [#allocation4], 1 }

</bundles_post_ra>
